<compile_context>
chip_gen: v5e
topology: v5e:2x2
jax: 0.10.0
libtpu: 0.0.40
codegen_flags: <defaults>
</compile_context>

<pallas_src>
import jax
import jax.numpy as jnp
from jax.experimental import pallas as pl
from jax.experimental.pallas import tpu as pltpu

# ---- sizes (module default INPUT_DIM=7891; kept small for the demo) ----------
INPUT_DIM = 600            # small demo size; exercises padding + multi-tile streaming
LABEL_DIM = 2
ASYM_DIM = 3
COV_DIM = LABEL_DIM + ASYM_DIM      # 5
COV_PAD = 8                          # covariates zero-padded to a friendly width
LATENT_DIM = 16
H1 = 1024                  # encoder_fc1 / decoder_fc2 width
H2 = 256                   # encoder_fc2 / decoder_fc1 width
C1, C2 = 64, 32            # classifier hidden widths
BATCH = 8
LN_EPS = 1e-5              # PyTorch nn.LayerNorm default eps

# ---- tiling ------------------------------------------------------------------
def _round_up(n, m):
    return ((n + m - 1) // m) * m

_BIG_TILE = 2048           # per perf review: 4 MiB bf16 weight tiles for INPUT_DIM=7891
_SMALL_TILE = 256          # used when INPUT_DIM is small (demo)
TK = _BIG_TILE if INPUT_DIM > 1024 else _SMALL_TILE   # K-tile of encoder_fc1 weight
TN = TK                                               # N-tile of decoder_out weight
K_PAD = _round_up(INPUT_DIM, TK)
N_PAD = _round_up(INPUT_DIM, TN)
K_TILES = K_PAD // TK
N_TILES = N_PAD // TN
VMEM_LIMIT = 32 * 1024 * 1024        # safe on v5e/v6e/v7x (v7x has 64 MiB physical)

# ---- packed "small vector" slab layout (one DMA for all tiny (1,N) params) ----
VEC_ROWS = [
    ("eb1", H1), ("eg1", H1), ("ebeta1", H1),
    ("eb2", H2), ("eg2", H2), ("ebeta2", H2),
    ("bmu", LATENT_DIM), ("blv", LATENT_DIM),
    ("db1", H2), ("dg1", H2), ("dbeta1", H2),
    ("db2", H1), ("dg2", H1), ("dbeta2", H1),
    ("cb1", C1), ("cb2", C2), ("cb3", LABEL_DIM),
]
VEC_IDX = {name: i for i, (name, _) in enumerate(VEC_ROWS)}


# ---- the fused kernel ----------------------------------------------------------
def _cvae2_fused_kernel(
    # inputs
    x_ref, yasym_ref, eps_ref,
    ew1x_ref, ew1c_ref, ew2_ref, wmu_ref, wlv_ref,
    dw1z_ref, dw1c_ref, dw2_ref,
    cw1_ref, cw2_ref, cw3_ref,
    vecs_ref, dwo_ref, dbo_ref,
    # outputs
    mlc_ref,     # (B, 128): mu | logvar | logits | zero pad   (lane-dense slab)
    xrec_ref,    # (B, TN) column tile of x_recon
    # scratch
    acc_ref,     # (B, H1) f32 accumulator for the streamed encoder_fc1 matmul
    hdec_ref,    # (B, H1) bf16 decoder hidden, consumed by the decoder_out phase
):
    k = pl.program_id(0)

    # -------- phase 1: stream encoder_fc1's big weight over K tiles ----------
    @pl.when(k == 0)
    def _():
        acc_ref[...] = jnp.zeros_like(acc_ref)

    @pl.when(k < K_TILES)
    def _():
        acc_ref[...] += jnp.dot(
            x_ref[...].astype(jnp.bfloat16), ew1x_ref[...],
            preferred_element_type=jnp.float32)

    # -------- phase 1 epilogue: rest of the network on tiny resident data ----
    @pl.when(k == K_TILES - 1)
    def _():
        def vec(name, n):                      # static slice of the packed slab
            r = VEC_IDX[name]
            return vecs_ref[r:r + 1, :][:, :n]

        def layernorm(h, g, b):
            m = jnp.mean(h, axis=-1, keepdims=True)
            v = jnp.mean((h - m) ** 2, axis=-1, keepdims=True)
            return (h - m) * jax.lax.rsqrt(v + LN_EPS) * g + b

        def relu(h):
            return jnp.maximum(h, 0.0)

        yasym = yasym_ref[...]                 # (B, COV_PAD) f32, zero-padded

        # encoder_fc1: cat([x, y, asym]) @ W == x @ W_x + [y,asym] @ W_c
        h1 = (acc_ref[...]
              + jnp.dot(yasym, ew1c_ref[...], preferred_element_type=jnp.float32)
              + vec("eb1", H1))
        h1 = relu(layernorm(h1, vec("eg1", H1), vec("ebeta1", H1)))

        # encoder_fc2 + mu / logvar
        h2 = (jnp.dot(h1.astype(jnp.bfloat16), ew2_ref[...],
                      preferred_element_type=jnp.float32) + vec("eb2", H2))
        h2 = relu(layernorm(h2, vec("eg2", H2), vec("ebeta2", H2)))
        mu = jnp.dot(h2, wmu_ref[...],
                     preferred_element_type=jnp.float32) + vec("bmu", LATENT_DIM)
        logvar = jnp.dot(h2, wlv_ref[...],
                         preferred_element_type=jnp.float32) + vec("blv", LATENT_DIM)

        # reparameterize: z = mu + eps * exp(0.5 * logvar)
        z = mu + eps_ref[...] * jnp.exp(0.5 * logvar)

        # decoder_fc1 (split weight) + decoder_fc2 -> hdec (bf16, stays in VMEM)
        d1 = (jnp.dot(z, dw1z_ref[...], preferred_element_type=jnp.float32)
              + jnp.dot(yasym, dw1c_ref[...], preferred_element_type=jnp.float32)
              + vec("db1", H2))
        d1 = relu(layernorm(d1, vec("dg1", H2), vec("dbeta1", H2)))
        d2 = (jnp.dot(d1.astype(jnp.bfloat16), dw2_ref[...],
                      preferred_element_type=jnp.float32) + vec("db2", H1))
        d2 = relu(layernorm(d2, vec("dg2", H1), vec("dbeta2", H1)))
        hdec_ref[...] = d2.astype(jnp.bfloat16)     # cast once; reused below

        # classifier
        c = relu(jnp.dot(z, cw1_ref[...],
                         preferred_element_type=jnp.float32) + vec("cb1", C1))
        c = relu(jnp.dot(c, cw2_ref[...],
                         preferred_element_type=jnp.float32) + vec("cb2", C2))
        logits = jnp.dot(c, cw3_ref[...],
                         preferred_element_type=jnp.float32) + vec("cb3", LABEL_DIM)

        # lane-dense epilogue: one (B, 128) slab instead of three tiny outputs
        pad = jnp.zeros((mu.shape[0], 128 - 2 * LATENT_DIM - LABEL_DIM), jnp.float32)
        mlc_ref[...] = jnp.concatenate([mu, logvar, logits, pad], axis=1)

    # -------- phase 2: stream decoder_out's big weight over N tiles ----------
    @pl.when(k >= K_TILES)
    def _():
        xrec_ref[...] = (
            jnp.dot(hdec_ref[...], dwo_ref[...], preferred_element_type=jnp.float32)
            + dbo_ref[...])


# ---- parameter init (PyTorch-Linear-style uniform) -----------------------------
def init_params(key):
    def linear_params(k, fan_in, fan_out, w_dtype=jnp.float32):
        k1, k2 = jax.random.split(k)
        bound = 1.0 / float(fan_in) ** 0.5
        w = jax.random.uniform(k1, (fan_in, fan_out), jnp.float32, -bound, bound)
        b = jax.random.uniform(k2, (1, fan_out), jnp.float32, -bound, bound)
        return w.astype(w_dtype), b

    keys = jax.random.split(key, 10)
    p = {}
    ew1, p["eb1"] = linear_params(keys[0], INPUT_DIM + COV_DIM, H1)
    p["ew1x"] = ew1[:INPUT_DIM].astype(jnp.bfloat16)   # big weight -> bf16
    p["ew1c"] = ew1[INPUT_DIM:]                        # tiny covariate part -> f32
    p["eg1"], p["ebeta1"] = jnp.ones((1, H1), jnp.float32), jnp.zeros((1, H1), jnp.float32)
    p["ew2"], p["eb2"] = linear_params(keys[1], H1, H2, jnp.bfloat16)
    p["eg2"], p["ebeta2"] = jnp.ones((1, H2), jnp.float32), jnp.zeros((1, H2), jnp.float32)
    p["wmu"], p["bmu"] = linear_params(keys[2], H2, LATENT_DIM)
    p["wlv"], p["blv"] = linear_params(keys[3], H2, LATENT_DIM)
    dw1, p["db1"] = linear_params(keys[4], LATENT_DIM + COV_DIM, H2)
    p["dw1z"], p["dw1c"] = dw1[:LATENT_DIM], dw1[LATENT_DIM:]
    p["dg1"], p["dbeta1"] = jnp.ones((1, H2), jnp.float32), jnp.zeros((1, H2), jnp.float32)
    p["dw2"], p["db2"] = linear_params(keys[5], H2, H1, jnp.bfloat16)
    p["dg2"], p["dbeta2"] = jnp.ones((1, H1), jnp.float32), jnp.zeros((1, H1), jnp.float32)
    p["dwo"], p["dbo"] = linear_params(keys[6], H1, INPUT_DIM, jnp.bfloat16)
    p["cw1"], p["cb1"] = linear_params(keys[7], LATENT_DIM, C1)
    p["cw2"], p["cb2"] = linear_params(keys[8], C1, C2)
    p["cw3"], p["cb3"] = linear_params(keys[9], C2, LABEL_DIM)
    return p


def pack_for_kernel(p):
    """One-time packing: pad big weights to tile-aligned shapes, pad covariate
    weights to COV_PAD rows, and pack all tiny (1, N) params into one slab."""
    vecs = jnp.zeros((len(VEC_ROWS), H1), jnp.float32)
    for i, (name, w) in enumerate(VEC_ROWS):
        vecs = vecs.at[i, :w].set(p[name][0])
    ew1x = jnp.pad(p["ew1x"], ((0, K_PAD - INPUT_DIM), (0, 0)))   # zero rows: no-op
    ew1c = jnp.pad(p["ew1c"], ((0, COV_PAD - COV_DIM), (0, 0)))
    dw1c = jnp.pad(p["dw1c"], ((0, COV_PAD - COV_DIM), (0, 0)))
    dwo = jnp.pad(p["dwo"], ((0, 0), (0, N_PAD - INPUT_DIM)))
    dbo = jnp.pad(p["dbo"], ((0, 0), (0, N_PAD - INPUT_DIM)))
    return (ew1x, ew1c, p["ew2"], p["wmu"], p["wlv"],
            p["dw1z"], dw1c, p["dw2"], p["cw1"], p["cw2"], p["cw3"],
            vecs, dwo, dbo)


def _nbytes(a):
    n = 1
    for d in a.shape:
        n *= int(d)
    return n * jnp.dtype(a.dtype).itemsize


# ---- wrapper --------------------------------------------------------------------
@jax.jit
def cvae2_forward(packed, x, y, asym, eps):
    (ew1x, ew1c, ew2, wmu, wlv, dw1z, dw1c, dw2,
     cw1, cw2, cw3, vecs, dwo, dbo) = packed
    B = x.shape[0]

    yasym = jnp.concatenate([y, asym], axis=1)                    # (B, 5)
    yasym = jnp.pad(yasym, ((0, 0), (0, COV_PAD - COV_DIM)))      # (B, 8)
    x_pad = jnp.pad(x, ((0, 0), (0, K_PAD - INPUT_DIM)))          # no-op if aligned

    # Block-index clamps for the fused two-phase grid.
    def enc(k):                       # encoder-phase tile index (frozen afterwards)
        return jnp.minimum(k, K_TILES - 1)

    def dec(k):                       # decoder-phase tile index (0 before phase 2)
        return jnp.maximum(k - K_TILES, 0)

    def full(a):                      # resident, grid-invariant block
        return pl.BlockSpec(a.shape, lambda k: (0, 0))

    inputs = (x_pad, yasym, eps, ew1x, ew1c, ew2, wmu, wlv,
              dw1z, dw1c, dw2, cw1, cw2, cw3, vecs, dwo, dbo)

    # NOTE: grid-invariant blocks could use pipeline_mode=pl.Buffered(1) to save
    # ~2.5 MiB of double-buffering; left at the default for robustness.
    in_specs = [
        pl.BlockSpec((B, TK), lambda k: (0, enc(k))),     # x: streamed K tiles
        full(yasym), full(eps),
        pl.BlockSpec((TK, H1), lambda k: (enc(k), 0)),    # encoder_fc1 weight (bf16)
        full(ew1c), full(ew2), full(wmu), full(wlv),
        full(dw1z), full(dw1c), full(dw2),
        full(cw1), full(cw2), full(cw3), full(vecs),
        pl.BlockSpec((H1, TN), lambda k: (0, dec(k))),    # decoder_out weight (bf16)
        pl.BlockSpec((1, TN), lambda k: (0, dec(k))),     # decoder_out bias
    ]

    out_shape = (
        jax.ShapeDtypeStruct((B, 128), jnp.float32),      # mu | logvar | logits slab
        jax.ShapeDtypeStruct((B, N_PAD), jnp.float32),    # x_recon (padded columns)
    )
    out_specs = (
        pl.BlockSpec((B, 128), lambda k: (0, 0)),
        pl.BlockSpec((B, TN), lambda k: (0, dec(k))),
    )

    flops = 2 * B * (K_PAD * H1 + COV_PAD * H1 + H1 * H2 + 2 * H2 * LATENT_DIM
                     + (LATENT_DIM + COV_PAD) * H2 + H2 * H1
                     + LATENT_DIM * C1 + C1 * C2 + C2 * LABEL_DIM
                     + H1 * N_PAD)
    cost = pl.CostEstimate(
        flops=flops,
        transcendentals=B * (LATENT_DIM + 4),
        bytes_accessed=sum(_nbytes(a) for a in inputs)
        + sum(_nbytes(s) for s in out_shape))

    mlc, xrec_pad = pl.pallas_call(
        _cvae2_fused_kernel,
        out_shape=out_shape,
        grid=(K_TILES + N_TILES,),
        in_specs=in_specs,
        out_specs=out_specs,
        scratch_shapes=[pltpu.VMEM((B, H1), jnp.float32),     # encoder_fc1 accumulator
                        pltpu.VMEM((B, H1), jnp.bfloat16)],   # decoder hidden (bf16)
        compiler_params=pltpu.CompilerParams(
            dimension_semantics=("arbitrary",),   # mixed reduction + column stream
            vmem_limit_bytes=VMEM_LIMIT),
        cost_estimate=cost,
    )(*inputs)

    mu = mlc[:, :LATENT_DIM]
    logvar = mlc[:, LATENT_DIM:2 * LATENT_DIM]
    logits = mlc[:, 2 * LATENT_DIM:2 * LATENT_DIM + LABEL_DIM]
    x_recon = xrec_pad[:, :INPUT_DIM]
    return x_recon, mu, logvar, logits


# ---- pure-JAX reference (same stored weights, f32 activations) --------------------
def cvae2_reference(p, x, y, asym, eps):
    f32 = lambda w: w.astype(jnp.float32)

    def ln(h, g, b):
        m = jnp.mean(h, -1, keepdims=True)
        v = jnp.mean((h - m) ** 2, -1, keepdims=True)
        return (h - m) / jnp.sqrt(v + LN_EPS) * g + b

    xcat = jnp.concatenate([x, y, asym], 1)
    ew1 = jnp.concatenate([f32(p["ew1x"]), f32(p["ew1c"])], 0)
    h = jax.nn.relu(ln(xcat @ ew1 + p["eb1"], p["eg1"], p["ebeta1"]))
    h = jax.nn.relu(ln(h @ f32(p["ew2"]) + p["eb2"], p["eg2"], p["ebeta2"]))
    mu = h @ f32(p["wmu"]) + p["bmu"]
    lv = h @ f32(p["wlv"]) + p["blv"]
    z = mu + eps * jnp.exp(0.5 * lv)
    dcat = jnp.concatenate([z, y, asym], 1)
    dw1 = jnp.concatenate([f32(p["dw1z"]), f32(p["dw1c"])], 0)
    h = jax.nn.relu(ln(dcat @ dw1 + p["db1"], p["dg1"], p["dbeta1"]))
    h = jax.nn.relu(ln(h @ f32(p["dw2"]) + p["db2"], p["dg2"], p["dbeta2"]))
    xrec = h @ f32(p["dwo"]) + p["dbo"]
    c = jax.nn.relu(z @ f32(p["cw1"]) + p["cb1"])
    c = jax.nn.relu(c @ f32(p["cw2"]) + p["cb2"])
    logits = c @ f32(p["cw3"]) + p["cb3"]
    return xrec, mu, lv, logits


if __name__ == "__main__":
    key = jax.random.PRNGKey(0)
    k_param, k_x, k_y, k_asym, k_eps = jax.random.split(key, 5)

    params = init_params(k_param)
    packed = pack_for_kernel(params)

    x = jax.random.normal(k_x, (BATCH, INPUT_DIM), jnp.float32)
    labels = jax.random.randint(k_y, (BATCH,), 0, LABEL_DIM)
    y = jax.nn.one_hot(labels, LABEL_DIM, dtype=jnp.float32)
    asym = jax.random.normal(k_asym, (BATCH, ASYM_DIM), jnp.float32)
    # eps plays the role of torch.randn_like(std) in reparameterize()
    eps = jax.random.normal(k_eps, (BATCH, LATENT_DIM), jnp.float32)

    x_recon, mu, logvar, y_logits = jax.block_until_ready(
        cvae2_forward(packed, x, y, asym, eps))

    # sanity-check against the pure-JAX reference (bf16 big weights in both; the
    # kernel additionally rounds MXU activations to bf16 -> loose tolerance)
    r_xrec, r_mu, r_lv, r_logits = cvae2_reference(params, x, y, asym, eps)
    assert jnp.allclose(x_recon, r_xrec, atol=5e-2, rtol=5e-2), "x_recon mismatch"
    assert jnp.allclose(mu, r_mu, atol=5e-2, rtol=5e-2), "mu mismatch"
    assert jnp.allclose(logvar, r_lv, atol=5e-2, rtol=5e-2), "logvar mismatch"
    assert jnp.allclose(y_logits, r_logits, atol=5e-2, rtol=5e-2), "logits mismatch"

    print("KERNEL_OK")
</pallas_src>

<mosaic_0001>
module attributes {stable_mosaic.version = 11 : i64} {
  func.func @_cvae2_fused_kernel(%arg0: i32, %arg1: memref<8x256xf32, #tpu.memory_space<vmem>>, %arg2: memref<8x8xf32, #tpu.memory_space<vmem>>, %arg3: memref<8x16xf32, #tpu.memory_space<vmem>>, %arg4: memref<256x1024xbf16, #tpu.memory_space<vmem>>, %arg5: memref<8x1024xf32, #tpu.memory_space<vmem>>, %arg6: memref<1024x256xbf16, #tpu.memory_space<vmem>>, %arg7: memref<256x16xf32, #tpu.memory_space<vmem>>, %arg8: memref<256x16xf32, #tpu.memory_space<vmem>>, %arg9: memref<16x256xf32, #tpu.memory_space<vmem>>, %arg10: memref<8x256xf32, #tpu.memory_space<vmem>>, %arg11: memref<256x1024xbf16, #tpu.memory_space<vmem>>, %arg12: memref<16x64xf32, #tpu.memory_space<vmem>>, %arg13: memref<64x32xf32, #tpu.memory_space<vmem>>, %arg14: memref<32x2xf32, #tpu.memory_space<vmem>>, %arg15: memref<17x1024xf32, #tpu.memory_space<vmem>>, %arg16: memref<1024x256xbf16, #tpu.memory_space<vmem>>, %arg17: memref<1x256xf32, #tpu.memory_space<vmem>>, %arg18: memref<8x128xf32, #tpu.memory_space<vmem>>, %arg19: memref<8x256xf32, #tpu.memory_space<vmem>>, %arg20: memref<8x1024xf32, #tpu.memory_space<vmem>>, %arg21: memref<8x1024xbf16, #tpu.memory_space<vmem>>) attributes {dimension_semantics = [#tpu.dimension_semantics<arbitrary>], iteration_bounds = array<i64: 6>, scalar_prefetch = 0 : i64, scratch_operands = 2 : i64, tpu.core_type = #tpu.core_type<tc>, window_params = [{transform_indices = @transform_0, window_bounds = array<i64: 8, 256>}, {pipeline_mode = #tpu.pipeline_mode<synchronous>, transform_indices = @transform_1, window_bounds = array<i64: 8, 8>}, {pipeline_mode = #tpu.pipeline_mode<synchronous>, transform_indices = @transform_2, window_bounds = array<i64: 8, 16>}, {transform_indices = @transform_3, window_bounds = array<i64: 256, 1024>}, {pipeline_mode = #tpu.pipeline_mode<synchronous>, transform_indices = @transform_4, window_bounds = array<i64: 8, 1024>}, {pipeline_mode = #tpu.pipeline_mode<synchronous>, transform_indices = @transform_5, window_bounds = array<i64: 1024, 256>}, {pipeline_mode = #tpu.pipeline_mode<synchronous>, transform_indices = @transform_6, window_bounds = array<i64: 256, 16>}, {pipeline_mode = #tpu.pipeline_mode<synchronous>, transform_indices = @transform_7, window_bounds = array<i64: 256, 16>}, {pipeline_mode = #tpu.pipeline_mode<synchronous>, transform_indices = @transform_8, window_bounds = array<i64: 16, 256>}, {pipeline_mode = #tpu.pipeline_mode<synchronous>, transform_indices = @transform_9, window_bounds = array<i64: 8, 256>}, {pipeline_mode = #tpu.pipeline_mode<synchronous>, transform_indices = @transform_10, window_bounds = array<i64: 256, 1024>}, {pipeline_mode = #tpu.pipeline_mode<synchronous>, transform_indices = @transform_11, window_bounds = array<i64: 16, 64>}, {pipeline_mode = #tpu.pipeline_mode<synchronous>, transform_indices = @transform_12, window_bounds = array<i64: 64, 32>}, {pipeline_mode = #tpu.pipeline_mode<synchronous>, transform_indices = @transform_13, window_bounds = array<i64: 32, 2>}, {pipeline_mode = #tpu.pipeline_mode<synchronous>, transform_indices = @transform_14, window_bounds = array<i64: 17, 1024>}, {transform_indices = @transform_15, window_bounds = array<i64: 1024, 256>}, {transform_indices = @transform_16, window_bounds = array<i64: 1, 256>}, {pipeline_mode = #tpu.pipeline_mode<synchronous>, transform_indices = @transform_17, window_bounds = array<i64: 8, 128>}, {transform_indices = @transform_18, window_bounds = array<i64: 8, 256>}]} {
    %c0_i32 = arith.constant 0 : i32
    %0 = arith.cmpi eq, %arg0, %c0_i32 : i32
    %1 = arith.extui %0 : i1 to i32
    %c0_i32_0 = arith.constant 0 : i32
    %2 = arith.cmpi ne, %1, %c0_i32_0 : i32
    scf.if %2 {
      %cst = arith.constant 0.000000e+00 : f32
      %12 = vector.broadcast %cst : f32 to vector<8x1024xf32>
      %c0 = arith.constant 0 : index
      %c0_5 = arith.constant 0 : index
      %13 = vector.load %arg20[%c0, %c0_5] : memref<8x1024xf32, #tpu.memory_space<vmem>>, vector<8x1024xf32>
      tpu.vector_store %arg20[%c0, %c0_5], %12 {strides = array<i32>} : memref<8x1024xf32, #tpu.memory_space<vmem>>, vector<8x1024xf32>,
    } else {
    }
    %c3_i32 = arith.constant 3 : i32
    %3 = arith.cmpi slt, %arg0, %c3_i32 : i32
    %4 = arith.extui %3 : i1 to i32
    %c0_i32_1 = arith.constant 0 : i32
    %5 = arith.cmpi ne, %4, %c0_i32_1 : i32
    scf.if %5 {
      %c0 = arith.constant 0 : index
      %c0_5 = arith.constant 0 : index
      %12 = vector.load %arg20[%c0, %c0_5] : memref<8x1024xf32, #tpu.memory_space<vmem>>, vector<8x1024xf32>
      %c0_6 = arith.constant 0 : index
      %c0_7 = arith.constant 0 : index
      %13 = vector.load %arg1[%c0_6, %c0_7] : memref<8x256xf32, #tpu.memory_space<vmem>>, vector<8x256xf32>
      %14 = arith.truncf %13 : vector<8x256xf32> to vector<8x256xbf16>
      %c0_8 = arith.constant 0 : index
      %c0_9 = arith.constant 0 : index
      %15 = vector.load %arg4[%c0_8, %c0_9] : memref<256x1024xbf16, #tpu.memory_space<vmem>>, vector<256x1024xbf16>
      %cst = arith.constant dense<0.000000e+00> : vector<8x1024xf32>
      %16 = tpu.matmul %14, %15, %cst {dimension_numbers = #tpu.dot_dimension_numbers<[1], [0], [0], [1], [0, 0, 1, 1], [], []>} : vector<8x256xbf16>, vector<256x1024xbf16>, vector<8x1024xf32> -> vector<8x1024xf32>
      %17 = arith.addf %12, %16 : vector<8x1024xf32>
      %c0_10 = arith.constant 0 : index
      %c0_11 = arith.constant 0 : index
      %18 = vector.load %arg20[%c0_10, %c0_11] : memref<8x1024xf32, #tpu.memory_space<vmem>>, vector<8x1024xf32>
      tpu.vector_store %arg20[%c0_10, %c0_11], %17 {strides = array<i32>} : memref<8x1024xf32, #tpu.memory_space<vmem>>, vector<8x1024xf32>,
    } else {
    }
    %c2_i32 = arith.constant 2 : i32
    %6 = arith.cmpi eq, %arg0, %c2_i32 : i32
    %7 = arith.extui %6 : i1 to i32
    %c0_i32_2 = arith.constant 0 : i32
    %8 = arith.cmpi ne, %7, %c0_i32_2 : i32
    scf.if %8 {
      %c0 = arith.constant 0 : index
      %c0_5 = arith.constant 0 : index
      %12 = vector.load %arg2[%c0, %c0_5] : memref<8x8xf32, #tpu.memory_space<vmem>>, vector<8x8xf32>
      %c0_6 = arith.constant 0 : index
      %c0_7 = arith.constant 0 : index
      %13 = vector.load %arg20[%c0_6, %c0_7] : memref<8x1024xf32, #tpu.memory_space<vmem>>, vector<8x1024xf32>
      %c0_8 = arith.constant 0 : index
      %c0_9 = arith.constant 0 : index
      %14 = vector.load %arg5[%c0_8, %c0_9] : memref<8x1024xf32, #tpu.memory_space<vmem>>, vector<8x1024xf32>
      %cst = arith.constant dense<0.000000e+00> : vector<8x1024xf32>
      %15 = tpu.matmul %12, %14, %cst {dimension_numbers = #tpu.dot_dimension_numbers<[1], [0], [0], [1], [0, 0, 1, 1], [], []>} : vector<8x8xf32>, vector<8x1024xf32>, vector<8x1024xf32> -> vector<8x1024xf32>
      %16 = arith.addf %13, %15 : vector<8x1024xf32>
      %c0_10 = arith.constant 0 : index
      %c0_11 = arith.constant 0 : index
      %17 = vector.load %arg15[%c0_10, %c0_11] : memref<17x1024xf32, #tpu.memory_space<vmem>>, vector<1x1024xf32>
      %18 = vector.broadcast %17 : vector<1x1024xf32> to vector<8x1024xf32>
      %19 = arith.addf %16, %18 : vector<8x1024xf32>
      %c1 = arith.constant 1 : index
      %c0_12 = arith.constant 0 : index
      %20 = vector.load %arg15[%c1, %c0_12] : memref<17x1024xf32, #tpu.memory_space<vmem>>, vector<1x1024xf32>
      %c2 = arith.constant 2 : index
      %c0_13 = arith.constant 0 : index
      %21 = vector.load %arg15[%c2, %c0_13] : memref<17x1024xf32, #tpu.memory_space<vmem>>, vector<1x1024xf32>
      %cst_14 = arith.constant dense<0.000000e+00> : vector<8xf32>
      %22 = vector.multi_reduction <add>, %19, %cst_14 [1] : vector<8x1024xf32> to vector<8xf32>
      %23 = vector.shape_cast %22 : vector<8xf32> to vector<8x1xf32>
      %cst_15 = arith.constant 1.024000e+03 : f32
      %24 = vector.broadcast %cst_15 : f32 to vector<8x1xf32>
      %25 = arith.divf %23, %24 : vector<8x1xf32>
      %26 = vector.broadcast %25 : vector<8x1xf32> to vector<8x1024xf32>
      %27 = arith.subf %19, %26 : vector<8x1024xf32>
      %28 = arith.mulf %27, %27 : vector<8x1024xf32>
      %cst_16 = arith.constant dense<0.000000e+00> : vector<8xf32>
      %29 = vector.multi_reduction <add>, %28, %cst_16 [1] : vector<8x1024xf32> to vector<8xf32>
      %30 = vector.shape_cast %29 : vector<8xf32> to vector<8x1xf32>
      %cst_17 = arith.constant 1.024000e+03 : f32
      %31 = vector.broadcast %cst_17 : f32 to vector<8x1xf32>
      %32 = arith.divf %30, %31 : vector<8x1xf32>
      %33 = vector.broadcast %25 : vector<8x1xf32> to vector<8x1024xf32>
      %34 = arith.subf %19, %33 : vector<8x1024xf32>
      %cst_18 = arith.constant 9.99999974E-6 : f32
      %35 = vector.broadcast %cst_18 : f32 to vector<8x1xf32>
      %36 = arith.addf %32, %35 : vector<8x1xf32>
      %37 = math.rsqrt %36 : vector<8x1xf32>
      %38 = vector.broadcast %37 : vector<8x1xf32> to vector<8x1024xf32>
      %39 = arith.mulf %34, %38 : vector<8x1024xf32>
      %40 = vector.broadcast %20 : vector<1x1024xf32> to vector<8x1024xf32>
      %41 = arith.mulf %39, %40 : vector<8x1024xf32>
      %42 = vector.broadcast %21 : vector<1x1024xf32> to vector<8x1024xf32>
      %43 = arith.addf %41, %42 : vector<8x1024xf32>
      %cst_19 = arith.constant 0.000000e+00 : f32
      %44 = vector.broadcast %cst_19 : f32 to vector<8x1024xf32>
      %45 = arith.maximumf %43, %44 : vector<8x1024xf32>
      %46 = arith.truncf %45 : vector<8x1024xf32> to vector<8x1024xbf16>
      %c0_20 = arith.constant 0 : index
      %c0_21 = arith.constant 0 : index
      %47 = vector.load %arg6[%c0_20, %c0_21] : memref<1024x256xbf16, #tpu.memory_space<vmem>>, vector<1024x256xbf16>
      %cst_22 = arith.constant dense<0.000000e+00> : vector<8x256xf32>
      %48 = tpu.matmul %46, %47, %cst_22 {dimension_numbers = #tpu.dot_dimension_numbers<[1], [0], [0], [1], [0, 0, 1, 1], [], []>} : vector<8x1024xbf16>, vector<1024x256xbf16>, vector<8x256xf32> -> vector<8x256xf32>
      %c3 = arith.constant 3 : index
      %c0_23 = arith.constant 0 : index
      %49 = vector.load %arg15[%c3, %c0_23] : memref<17x1024xf32, #tpu.memory_space<vmem>>, vector<1x1024xf32>
      %50 = vector.extract_strided_slice %49 {offsets = [0, 0], sizes = [1, 256], strides = [1, 1]} : vector<1x1024xf32> to vector<1x256xf32>
      %51 = vector.broadcast %50 : vector<1x256xf32> to vector<8x256xf32>
      %52 = arith.addf %48, %51 : vector<8x256xf32>
      %c4 = arith.constant 4 : index
      %c0_24 = arith.constant 0 : index
      %53 = vector.load %arg15[%c4, %c0_24] : memref<17x1024xf32, #tpu.memory_space<vmem>>, vector<1x1024xf32>
      %54 = vector.extract_strided_slice %53 {offsets = [0, 0], sizes = [1, 256], strides = [1, 1]} : vector<1x1024xf32> to vector<1x256xf32>
      %c5 = arith.constant 5 : index
      %c0_25 = arith.constant 0 : index
      %55 = vector.load %arg15[%c5, %c0_25] : memref<17x1024xf32, #tpu.memory_space<vmem>>, vector<1x1024xf32>
      %56 = vector.extract_strided_slice %55 {offsets = [0, 0], sizes = [1, 256], strides = [1, 1]} : vector<1x1024xf32> to vector<1x256xf32>
      %cst_26 = arith.constant dense<0.000000e+00> : vector<8xf32>
      %57 = vector.multi_reduction <add>, %52, %cst_26 [1] : vector<8x256xf32> to vector<8xf32>
      %58 = vector.shape_cast %57 : vector<8xf32> to vector<8x1xf32>
      %cst_27 = arith.constant 2.560000e+02 : f32
      %59 = vector.broadcast %cst_27 : f32 to vector<8x1xf32>
      %60 = arith.divf %58, %59 : vector<8x1xf32>
      %61 = vector.broadcast %60 : vector<8x1xf32> to vector<8x256xf32>
      %62 = arith.subf %52, %61 : vector<8x256xf32>
      %63 = arith.mulf %62, %62 : vector<8x256xf32>
      %cst_28 = arith.constant dense<0.000000e+00> : vector<8xf32>
      %64 = vector.multi_reduction <add>, %63, %cst_28 [1] : vector<8x256xf32> to vector<8xf32>
      %65 = vector.shape_cast %64 : vector<8xf32> to vector<8x1xf32>
      %cst_29 = arith.constant 2.560000e+02 : f32
      %66 = vector.broadcast %cst_29 : f32 to vector<8x1xf32>
      %67 = arith.divf %65, %66 : vector<8x1xf32>
      %68 = vector.broadcast %60 : vector<8x1xf32> to vector<8x256xf32>
      %69 = arith.subf %52, %68 : vector<8x256xf32>
      %cst_30 = arith.constant 9.99999974E-6 : f32
      %70 = vector.broadcast %cst_30 : f32 to vector<8x1xf32>
      %71 = arith.addf %67, %70 : vector<8x1xf32>
      %72 = math.rsqrt %71 : vector<8x1xf32>
      %73 = vector.broadcast %72 : vector<8x1xf32> to vector<8x256xf32>
      %74 = arith.mulf %69, %73 : vector<8x256xf32>
      %75 = vector.broadcast %54 : vector<1x256xf32> to vector<8x256xf32>
      %76 = arith.mulf %74, %75 : vector<8x256xf32>
      %77 = vector.broadcast %56 : vector<1x256xf32> to vector<8x256xf32>
      %78 = arith.addf %76, %77 : vector<8x256xf32>
      %cst_31 = arith.constant 0.000000e+00 : f32
      %79 = vector.broadcast %cst_31 : f32 to vector<8x256xf32>
      %80 = arith.maximumf %78, %79 : vector<8x256xf32>
      %c0_32 = arith.constant 0 : index
      %c0_33 = arith.constant 0 : index
      %81 = vector.load %arg7[%c0_32, %c0_33] : memref<256x16xf32, #tpu.memory_space<vmem>>, vector<256x16xf32>
      %cst_34 = arith.constant dense<0.000000e+00> : vector<8x16xf32>
      %82 = tpu.matmul %80, %81, %cst_34 {dimension_numbers = #tpu.dot_dimension_numbers<[1], [0], [0], [1], [0, 0, 1, 1], [], []>} : vector<8x256xf32>, vector<256x16xf32>, vector<8x16xf32> -> vector<8x16xf32>
      %c6 = arith.constant 6 : index
      %c0_35 = arith.constant 0 : index
      %83 = vector.load %arg15[%c6, %c0_35] : memref<17x1024xf32, #tpu.memory_space<vmem>>, vector<1x1024xf32>
      %84 = vector.extract_strided_slice %83 {offsets = [0, 0], sizes = [1, 16], strides = [1, 1]} : vector<1x1024xf32> to vector<1x16xf32>
      %85 = vector.broadcast %84 : vector<1x16xf32> to vector<8x16xf32>
      %86 = arith.addf %82, %85 : vector<8x16xf32>
      %c0_36 = arith.constant 0 : index
      %c0_37 = arith.constant 0 : index
      %87 = vector.load %arg8[%c0_36, %c0_37] : memref<256x16xf32, #tpu.memory_space<vmem>>, vector<256x16xf32>
      %cst_38 = arith.constant dense<0.000000e+00> : vector<8x16xf32>
      %88 = tpu.matmul %80, %87, %cst_38 {dimension_numbers = #tpu.dot_dimension_numbers<[1], [0], [0], [1], [0, 0, 1, 1], [], []>} : vector<8x256xf32>, vector<256x16xf32>, vector<8x16xf32> -> vector<8x16xf32>
      %c7 = arith.constant 7 : index
      %c0_39 = arith.constant 0 : index
      %89 = vector.load %arg15[%c7, %c0_39] : memref<17x1024xf32, #tpu.memory_space<vmem>>, vector<1x1024xf32>
      %90 = vector.extract_strided_slice %89 {offsets = [0, 0], sizes = [1, 16], strides = [1, 1]} : vector<1x1024xf32> to vector<1x16xf32>
      %91 = vector.broadcast %90 : vector<1x16xf32> to vector<8x16xf32>
      %92 = arith.addf %88, %91 : vector<8x16xf32>
      %c0_40 = arith.constant 0 : index
      %c0_41 = arith.constant 0 : index
      %93 = vector.load %arg3[%c0_40, %c0_41] : memref<8x16xf32, #tpu.memory_space<vmem>>, vector<8x16xf32>
      %cst_42 = arith.constant 5.000000e-01 : f32
      %94 = vector.broadcast %cst_42 : f32 to vector<8x16xf32>
      %95 = arith.mulf %94, %92 : vector<8x16xf32>
      %96 = math.exp %95 : vector<8x16xf32>
      %97 = arith.mulf %93, %96 : vector<8x16xf32>
      %98 = arith.addf %86, %97 : vector<8x16xf32>
      %c0_43 = arith.constant 0 : index
      %c0_44 = arith.constant 0 : index
      %99 = vector.load %arg9[%c0_43, %c0_44] : memref<16x256xf32, #tpu.memory_space<vmem>>, vector<16x256xf32>
      %cst_45 = arith.constant dense<0.000000e+00> : vector<8x256xf32>
      %100 = tpu.matmul %98, %99, %cst_45 {dimension_numbers = #tpu.dot_dimension_numbers<[1], [0], [0], [1], [0, 0, 1, 1], [], []>} : vector<8x16xf32>, vector<16x256xf32>, vector<8x256xf32> -> vector<8x256xf32>
      %c0_46 = arith.constant 0 : index
      %c0_47 = arith.constant 0 : index
      %101 = vector.load %arg10[%c0_46, %c0_47] : memref<8x256xf32, #tpu.memory_space<vmem>>, vector<8x256xf32>
      %cst_48 = arith.constant dense<0.000000e+00> : vector<8x256xf32>
      %102 = tpu.matmul %12, %101, %cst_48 {dimension_numbers = #tpu.dot_dimension_numbers<[1], [0], [0], [1], [0, 0, 1, 1], [], []>} : vector<8x8xf32>, vector<8x256xf32>, vector<8x256xf32> -> vector<8x256xf32>
      %103 = arith.addf %100, %102 : vector<8x256xf32>
      %c8 = arith.constant 8 : index
      %c0_49 = arith.constant 0 : index
      %104 = vector.load %arg15[%c8, %c0_49] : memref<17x1024xf32, #tpu.memory_space<vmem>>, vector<1x1024xf32>
      %105 = vector.extract_strided_slice %104 {offsets = [0, 0], sizes = [1, 256], strides = [1, 1]} : vector<1x1024xf32> to vector<1x256xf32>
      %106 = vector.broadcast %105 : vector<1x256xf32> to vector<8x256xf32>
      %107 = arith.addf %103, %106 : vector<8x256xf32>
      %c9 = arith.constant 9 : index
      %c0_50 = arith.constant 0 : index
      %108 = vector.load %arg15[%c9, %c0_50] : memref<17x1024xf32, #tpu.memory_space<vmem>>, vector<1x1024xf32>
      %109 = vector.extract_strided_slice %108 {offsets = [0, 0], sizes = [1, 256], strides = [1, 1]} : vector<1x1024xf32> to vector<1x256xf32>
      %c10 = arith.constant 10 : index
      %c0_51 = arith.constant 0 : index
      %110 = vector.load %arg15[%c10, %c0_51] : memref<17x1024xf32, #tpu.memory_space<vmem>>, vector<1x1024xf32>
      %111 = vector.extract_strided_slice %110 {offsets = [0, 0], sizes = [1, 256], strides = [1, 1]} : vector<1x1024xf32> to vector<1x256xf32>
      %cst_52 = arith.constant dense<0.000000e+00> : vector<8xf32>
      %112 = vector.multi_reduction <add>, %107, %cst_52 [1] : vector<8x256xf32> to vector<8xf32>
      %113 = vector.shape_cast %112 : vector<8xf32> to vector<8x1xf32>
      %cst_53 = arith.constant 2.560000e+02 : f32
      %114 = vector.broadcast %cst_53 : f32 to vector<8x1xf32>
      %115 = arith.divf %113, %114 : vector<8x1xf32>
      %116 = vector.broadcast %115 : vector<8x1xf32> to vector<8x256xf32>
      %117 = arith.subf %107, %116 : vector<8x256xf32>
      %118 = arith.mulf %117, %117 : vector<8x256xf32>
      %cst_54 = arith.constant dense<0.000000e+00> : vector<8xf32>
      %119 = vector.multi_reduction <add>, %118, %cst_54 [1] : vector<8x256xf32> to vector<8xf32>
      %120 = vector.shape_cast %119 : vector<8xf32> to vector<8x1xf32>
      %cst_55 = arith.constant 2.560000e+02 : f32
      %121 = vector.broadcast %cst_55 : f32 to vector<8x1xf32>
      %122 = arith.divf %120, %121 : vector<8x1xf32>
      %123 = vector.broadcast %115 : vector<8x1xf32> to vector<8x256xf32>
      %124 = arith.subf %107, %123 : vector<8x256xf32>
      %cst_56 = arith.constant 9.99999974E-6 : f32
      %125 = vector.broadcast %cst_56 : f32 to vector<8x1xf32>
      %126 = arith.addf %122, %125 : vector<8x1xf32>
      %127 = math.rsqrt %126 : vector<8x1xf32>
      %128 = vector.broadcast %127 : vector<8x1xf32> to vector<8x256xf32>
      %129 = arith.mulf %124, %128 : vector<8x256xf32>
      %130 = vector.broadcast %109 : vector<1x256xf32> to vector<8x256xf32>
      %131 = arith.mulf %129, %130 : vector<8x256xf32>
      %132 = vector.broadcast %111 : vector<1x256xf32> to vector<8x256xf32>
      %133 = arith.addf %131, %132 : vector<8x256xf32>
      %cst_57 = arith.constant 0.000000e+00 : f32
      %134 = vector.broadcast %cst_57 : f32 to vector<8x256xf32>
      %135 = arith.maximumf %133, %134 : vector<8x256xf32>
      %136 = arith.truncf %135 : vector<8x256xf32> to vector<8x256xbf16>
      %c0_58 = arith.constant 0 : index
      %c0_59 = arith.constant 0 : index
      %137 = vector.load %arg11[%c0_58, %c0_59] : memref<256x1024xbf16, #tpu.memory_space<vmem>>, vector<256x1024xbf16>
      %cst_60 = arith.constant dense<0.000000e+00> : vector<8x1024xf32>
      %138 = tpu.matmul %136, %137, %cst_60 {dimension_numbers = #tpu.dot_dimension_numbers<[1], [0], [0], [1], [0, 0, 1, 1], [], []>} : vector<8x256xbf16>, vector<256x1024xbf16>, vector<8x1024xf32> -> vector<8x1024xf32>
      %c11 = arith.constant 11 : index
      %c0_61 = arith.constant 0 : index
      %139 = vector.load %arg15[%c11, %c0_61] : memref<17x1024xf32, #tpu.memory_space<vmem>>, vector<1x1024xf32>
      %140 = vector.broadcast %139 : vector<1x1024xf32> to vector<8x1024xf32>
      %141 = arith.addf %138, %140 : vector<8x1024xf32>
      %c12 = arith.constant 12 : index
      %c0_62 = arith.constant 0 : index
      %142 = vector.load %arg15[%c12, %c0_62] : memref<17x1024xf32, #tpu.memory_space<vmem>>, vector<1x1024xf32>
      %c13 = arith.constant 13 : index
      %c0_63 = arith.constant 0 : index
      %143 = vector.load %arg15[%c13, %c0_63] : memref<17x1024xf32, #tpu.memory_space<vmem>>, vector<1x1024xf32>
      %cst_64 = arith.constant dense<0.000000e+00> : vector<8xf32>
      %144 = vector.multi_reduction <add>, %141, %cst_64 [1] : vector<8x1024xf32> to vector<8xf32>
      %145 = vector.shape_cast %144 : vector<8xf32> to vector<8x1xf32>
      %cst_65 = arith.constant 1.024000e+03 : f32
      %146 = vector.broadcast %cst_65 : f32 to vector<8x1xf32>
      %147 = arith.divf %145, %146 : vector<8x1xf32>
      %148 = vector.broadcast %147 : vector<8x1xf32> to vector<8x1024xf32>
      %149 = arith.subf %141, %148 : vector<8x1024xf32>
      %150 = arith.mulf %149, %149 : vector<8x1024xf32>
      %cst_66 = arith.constant dense<0.000000e+00> : vector<8xf32>
      %151 = vector.multi_reduction <add>, %150, %cst_66 [1] : vector<8x1024xf32> to vector<8xf32>
      %152 = vector.shape_cast %151 : vector<8xf32> to vector<8x1xf32>
      %cst_67 = arith.constant 1.024000e+03 : f32
      %153 = vector.broadcast %cst_67 : f32 to vector<8x1xf32>
      %154 = arith.divf %152, %153 : vector<8x1xf32>
      %155 = vector.broadcast %147 : vector<8x1xf32> to vector<8x1024xf32>
      %156 = arith.subf %141, %155 : vector<8x1024xf32>
      %cst_68 = arith.constant 9.99999974E-6 : f32
      %157 = vector.broadcast %cst_68 : f32 to vector<8x1xf32>
      %158 = arith.addf %154, %157 : vector<8x1xf32>
      %159 = math.rsqrt %158 : vector<8x1xf32>
      %160 = vector.broadcast %159 : vector<8x1xf32> to vector<8x1024xf32>
      %161 = arith.mulf %156, %160 : vector<8x1024xf32>
      %162 = vector.broadcast %142 : vector<1x1024xf32> to vector<8x1024xf32>
      %163 = arith.mulf %161, %162 : vector<8x1024xf32>
      %164 = vector.broadcast %143 : vector<1x1024xf32> to vector<8x1024xf32>
      %165 = arith.addf %163, %164 : vector<8x1024xf32>
      %cst_69 = arith.constant 0.000000e+00 : f32
      %166 = vector.broadcast %cst_69 : f32 to vector<8x1024xf32>
      %167 = arith.maximumf %165, %166 : vector<8x1024xf32>
      %168 = arith.truncf %167 : vector<8x1024xf32> to vector<8x1024xbf16>
      %c0_70 = arith.constant 0 : index
      %c0_71 = arith.constant 0 : index
      %169 = vector.load %arg21[%c0_70, %c0_71] : memref<8x1024xbf16, #tpu.memory_space<vmem>>, vector<8x1024xbf16>
      tpu.vector_store %arg21[%c0_70, %c0_71], %168 {strides = array<i32>} : memref<8x1024xbf16, #tpu.memory_space<vmem>>, vector<8x1024xbf16>,
      %c0_72 = arith.constant 0 : index
      %c0_73 = arith.constant 0 : index
      %170 = vector.load %arg12[%c0_72, %c0_73] : memref<16x64xf32, #tpu.memory_space<vmem>>, vector<16x64xf32>
      %cst_74 = arith.constant dense<0.000000e+00> : vector<8x64xf32>
      %171 = tpu.matmul %98, %170, %cst_74 {dimension_numbers = #tpu.dot_dimension_numbers<[1], [0], [0], [1], [0, 0, 1, 1], [], []>} : vector<8x16xf32>, vector<16x64xf32>, vector<8x64xf32> -> vector<8x64xf32>
      %c14 = arith.constant 14 : index
      %c0_75 = arith.constant 0 : index
      %172 = vector.load %arg15[%c14, %c0_75] : memref<17x1024xf32, #tpu.memory_space<vmem>>, vector<1x1024xf32>
      %173 = vector.extract_strided_slice %172 {offsets = [0, 0], sizes = [1, 64], strides = [1, 1]} : vector<1x1024xf32> to vector<1x64xf32>
      %174 = vector.broadcast %173 : vector<1x64xf32> to vector<8x64xf32>
      %175 = arith.addf %171, %174 : vector<8x64xf32>
      %cst_76 = arith.constant 0.000000e+00 : f32
      %176 = vector.broadcast %cst_76 : f32 to vector<8x64xf32>
      %177 = arith.maximumf %175, %176 : vector<8x64xf32>
      %c0_77 = arith.constant 0 : index
      %c0_78 = arith.constant 0 : index
      %178 = vector.load %arg13[%c0_77, %c0_78] : memref<64x32xf32, #tpu.memory_space<vmem>>, vector<64x32xf32>
      %cst_79 = arith.constant dense<0.000000e+00> : vector<8x32xf32>
      %179 = tpu.matmul %177, %178, %cst_79 {dimension_numbers = #tpu.dot_dimension_numbers<[1], [0], [0], [1], [0, 0, 1, 1], [], []>} : vector<8x64xf32>, vector<64x32xf32>, vector<8x32xf32> -> vector<8x32xf32>
      %c15 = arith.constant 15 : index
      %c0_80 = arith.constant 0 : index
      %180 = vector.load %arg15[%c15, %c0_80] : memref<17x1024xf32, #tpu.memory_space<vmem>>, vector<1x1024xf32>
      %181 = vector.extract_strided_slice %180 {offsets = [0, 0], sizes = [1, 32], strides = [1, 1]} : vector<1x1024xf32> to vector<1x32xf32>
      %182 = vector.broadcast %181 : vector<1x32xf32> to vector<8x32xf32>
      %183 = arith.addf %179, %182 : vector<8x32xf32>
      %cst_81 = arith.constant 0.000000e+00 : f32
      %184 = vector.broadcast %cst_81 : f32 to vector<8x32xf32>
      %185 = arith.maximumf %183, %184 : vector<8x32xf32>
      %c0_82 = arith.constant 0 : index
      %c0_83 = arith.constant 0 : index
      %186 = vector.load %arg14[%c0_82, %c0_83] : memref<32x2xf32, #tpu.memory_space<vmem>>, vector<32x2xf32>
      %cst_84 = arith.constant dense<0.000000e+00> : vector<8x2xf32>
      %187 = tpu.matmul %185, %186, %cst_84 {dimension_numbers = #tpu.dot_dimension_numbers<[1], [0], [0], [1], [0, 0, 1, 1], [], []>} : vector<8x32xf32>, vector<32x2xf32>, vector<8x2xf32> -> vector<8x2xf32>
      %c16 = arith.constant 16 : index
      %c0_85 = arith.constant 0 : index
      %188 = vector.load %arg15[%c16, %c0_85] : memref<17x1024xf32, #tpu.memory_space<vmem>>, vector<1x1024xf32>
      %189 = vector.extract_strided_slice %188 {offsets = [0, 0], sizes = [1, 2], strides = [1, 1]} : vector<1x1024xf32> to vector<1x2xf32>
      %190 = vector.broadcast %189 : vector<1x2xf32> to vector<8x2xf32>
      %191 = arith.addf %187, %190 : vector<8x2xf32>
      %cst_86 = arith.constant 0.000000e+00 : f32
      %192 = vector.broadcast %cst_86 : f32 to vector<8x94xf32>
      %193 = tpu.concatenate %86, %92, %191, %192 in 1 : vector<8x16xf32>, vector<8x16xf32>, vector<8x2xf32>, vector<8x94xf32> -> vector<8x128xf32>
      %c0_87 = arith.constant 0 : index
      %c0_88 = arith.constant 0 : index
      %194 = vector.load %arg18[%c0_87, %c0_88] : memref<8x128xf32, #tpu.memory_space<vmem>>, vector<8x128xf32>
      tpu.vector_store %arg18[%c0_87, %c0_88], %193 {strides = array<i32>} : memref<8x128xf32, #tpu.memory_space<vmem>>, vector<8x128xf32>,
    } else {
    }
    %c3_i32_3 = arith.constant 3 : i32
    %9 = arith.cmpi sge, %arg0, %c3_i32_3 : i32
    %10 = arith.extui %9 : i1 to i32
    %c0_i32_4 = arith.constant 0 : i32
    %11 = arith.cmpi ne, %10, %c0_i32_4 : i32
    scf.if %11 {
      %c0 = arith.constant 0 : index
      %c0_5 = arith.constant 0 : index
      %12 = vector.load %arg21[%c0, %c0_5] : memref<8x1024xbf16, #tpu.memory_space<vmem>>, vector<8x1024xbf16>
      %c0_6 = arith.constant 0 : index
      %c0_7 = arith.constant 0 : index
      %13 = vector.load %arg16[%c0_6, %c0_7] : memref<1024x256xbf16, #tpu.memory_space<vmem>>, vector<1024x256xbf16>
      %cst = arith.constant dense<0.000000e+00> : vector<8x256xf32>
      %14 = tpu.matmul %12, %13, %cst {dimension_numbers = #tpu.dot_dimension_numbers<[1], [0], [0], [1], [0, 0, 1, 1], [], []>} : vector<8x1024xbf16>, vector<1024x256xbf16>, vector<8x256xf32> -> vector<8x256xf32>
      %c0_8 = arith.constant 0 : index
      %c0_9 = arith.constant 0 : index
      %15 = vector.load %arg17[%c0_8, %c0_9] : memref<1x256xf32, #tpu.memory_space<vmem>>, vector<1x256xf32>
      %16 = vector.broadcast %15 : vector<1x256xf32> to vector<8x256xf32>
      %17 = arith.addf %14, %16 : vector<8x256xf32>
      %c0_10 = arith.constant 0 : index
      %c0_11 = arith.constant 0 : index
      %18 = vector.load %arg19[%c0_10, %c0_11] : memref<8x256xf32, #tpu.memory_space<vmem>>, vector<8x256xf32>
      tpu.vector_store %arg19[%c0_10, %c0_11], %17 {strides = array<i32>} : memref<8x256xf32, #tpu.memory_space<vmem>>, vector<8x256xf32>,
    } else {
    }
    return
  }
  func.func @transform_0(%arg0: i32) -> (i32, i32) {
    %c2_i32 = arith.constant 2 : i32
    %0 = arith.minsi %arg0, %c2_i32 : i32
    %c0_i32 = arith.constant 0 : i32
    %c0_i32_0 = arith.constant 0 : i32
    return %c0_i32, %0 : i32, i32
  }
  func.func @transform_1(%arg0: i32) -> (i32, i32) {
    %c0_i32 = arith.constant 0 : i32
    %c0_i32_0 = arith.constant 0 : i32
    %c0_i32_1 = arith.constant 0 : i32
    return %c0_i32, %c0_i32_0 : i32, i32
  }
  func.func @transform_2(%arg0: i32) -> (i32, i32) {
    %c0_i32 = arith.constant 0 : i32
    %c0_i32_0 = arith.constant 0 : i32
    %c0_i32_1 = arith.constant 0 : i32
    return %c0_i32, %c0_i32_0 : i32, i32
  }
  func.func @transform_3(%arg0: i32) -> (i32, i32) {
    %c2_i32 = arith.constant 2 : i32
    %0 = arith.minsi %arg0, %c2_i32 : i32
    %c0_i32 = arith.constant 0 : i32
    %c0_i32_0 = arith.constant 0 : i32
    return %0, %c0_i32 : i32, i32
  }
  func.func @transform_4(%arg0: i32) -> (i32, i32) {
    %c0_i32 = arith.constant 0 : i32
    %c0_i32_0 = arith.constant 0 : i32
    %c0_i32_1 = arith.constant 0 : i32
    return %c0_i32, %c0_i32_0 : i32, i32
  }
  func.func @transform_5(%arg0: i32) -> (i32, i32) {
    %c0_i32 = arith.constant 0 : i32
    %c0_i32_0 = arith.constant 0 : i32
    %c0_i32_1 = arith.constant 0 : i32
    return %c0_i32, %c0_i32_0 : i32, i32
  }
  func.func @transform_6(%arg0: i32) -> (i32, i32) {
    %c0_i32 = arith.constant 0 : i32
    %c0_i32_0 = arith.constant 0 : i32
    %c0_i32_1 = arith.constant 0 : i32
    return %c0_i32, %c0_i32_0 : i32, i32
  }
  func.func @transform_7(%arg0: i32) -> (i32, i32) {
    %c0_i32 = arith.constant 0 : i32
    %c0_i32_0 = arith.constant 0 : i32
    %c0_i32_1 = arith.constant 0 : i32
    return %c0_i32, %c0_i32_0 : i32, i32
  }
  func.func @transform_8(%arg0: i32) -> (i32, i32) {
    %c0_i32 = arith.constant 0 : i32
    %c0_i32_0 = arith.constant 0 : i32
    %c0_i32_1 = arith.constant 0 : i32
    return %c0_i32, %c0_i32_0 : i32, i32
  }
  func.func @transform_9(%arg0: i32) -> (i32, i32) {
    %c0_i32 = arith.constant 0 : i32
    %c0_i32_0 = arith.constant 0 : i32
    %c0_i32_1 = arith.constant 0 : i32
    return %c0_i32, %c0_i32_0 : i32, i32
  }
  func.func @transform_10(%arg0: i32) -> (i32, i32) {
    %c0_i32 = arith.constant 0 : i32
    %c0_i32_0 = arith.constant 0 : i32
    %c0_i32_1 = arith.constant 0 : i32
    return %c0_i32, %c0_i32_0 : i32, i32
  }
  func.func @transform_11(%arg0: i32) -> (i32, i32) {
    %c0_i32 = arith.constant 0 : i32
    %c0_i32_0 = arith.constant 0 : i32
    %c0_i32_1 = arith.constant 0 : i32
    return %c0_i32, %c0_i32_0 : i32, i32
  }
  func.func @transform_12(%arg0: i32) -> (i32, i32) {
    %c0_i32 = arith.constant 0 : i32
    %c0_i32_0 = arith.constant 0 : i32
    %c0_i32_1 = arith.constant 0 : i32
    return %c0_i32, %c0_i32_0 : i32, i32
  }
  func.func @transform_13(%arg0: i32) -> (i32, i32) {
    %c0_i32 = arith.constant 0 : i32
    %c0_i32_0 = arith.constant 0 : i32
    %c0_i32_1 = arith.constant 0 : i32
    return %c0_i32, %c0_i32_0 : i32, i32
  }
  func.func @transform_14(%arg0: i32) -> (i32, i32) {
    %c0_i32 = arith.constant 0 : i32
    %c0_i32_0 = arith.constant 0 : i32
    %c0_i32_1 = arith.constant 0 : i32
    return %c0_i32, %c0_i32_0 : i32, i32
  }
  func.func @transform_15(%arg0: i32) -> (i32, i32) {
    %c3_i32 = arith.constant 3 : i32
    %0 = arith.subi %arg0, %c3_i32 : i32
    %c0_i32 = arith.constant 0 : i32
    %1 = arith.maxsi %0, %c0_i32 : i32
    %c0_i32_0 = arith.constant 0 : i32
    %c0_i32_1 = arith.constant 0 : i32
    return %c0_i32_0, %1 : i32, i32
  }
  func.func @transform_16(%arg0: i32) -> (i32, i32) {
    %c3_i32 = arith.constant 3 : i32
    %0 = arith.subi %arg0, %c3_i32 : i32
    %c0_i32 = arith.constant 0 : i32
    %1 = arith.maxsi %0, %c0_i32 : i32
    %c0_i32_0 = arith.constant 0 : i32
    %c0_i32_1 = arith.constant 0 : i32
    return %c0_i32_0, %1 : i32, i32
  }
  func.func @transform_17(%arg0: i32) -> (i32, i32) {
    %c0_i32 = arith.constant 0 : i32
    %c0_i32_0 = arith.constant 0 : i32
    %c0_i32_1 = arith.constant 0 : i32
    return %c0_i32, %c0_i32_0 : i32, i32
  }
  func.func @transform_18(%arg0: i32) -> (i32, i32) {
    %c3_i32 = arith.constant 3 : i32
    %0 = arith.subi %arg0, %c3_i32 : i32
    %c0_i32 = arith.constant 0 : i32
    %1 = arith.maxsi %0, %c0_i32 : i32
    %c0_i32_0 = arith.constant 0 : i32
    %c0_i32_1 = arith.constant 0 : i32
    return %c0_i32_0, %1 : i32, i32
  }
}

</mosaic_0001>

<bundles_post_ra>
// kernel: cvae2_forward.1
= control target key start
LH: loop header
LB: loop body
LE: loop exit
PB: predicated region body
PF: predicated region fallthrough
CT: control target
= control target key end

     0   :  { %s10829_s0 = inlined_call_operand.vmem [shape: f32[8,768], index: 0, kind: input, shape index: {}]   ;;  %s10830_s1 = inlined_call_operand.vmem [shape: f32[8,8], index: 1, kind: input, shape index: {}]   ;;  %s10831_s2 = inlined_call_operand.hbm [shape: f32[8,16], index: 2, kind: input, shape index: {}]   ;;  %s10832_s3 = inlined_call_operand.hbm [shape: bf16[768,1024], index: 3, kind: input, shape index: {}]   ;;  %s10833_s4 = inlined_call_operand.hbm [shape: f32[8,1024], index: 4, kind: input, shape index: {}]   ;;  %s10834_s5 = inlined_call_operand.hbm [shape: bf16[1024,256], index: 5, kind: input, shape index: {}]   ;;  %s10835_s6 = inlined_call_operand.vmem [shape: f32[256,16], index: 6, kind: input, shape index: {}]   ;;  %s10836_s7 = inlined_call_operand.vmem [shape: f32[256,16], index: 7, kind: input, shape index: {}]   ;;  %s10837_s8 = inlined_call_operand.hbm [shape: f32[16,256], index: 8, kind: input, shape index: {}]   ;;  %s10838_s9 = inlined_call_operand.hbm [shape: f32[8,256], index: 9, kind: input, shape index: {}]   ;;  %s10839_s10 = inlined_call_operand.hbm [shape: bf16[256,1024], index: 10, kind: input, shape index: {}]   ;;  %s10840_s11 = inlined_call_operand.hbm [shape: f32[16,64], index: 11, kind: input, shape index: {}]   ;;  %s10841_s12 = inlined_call_operand.vmem [shape: f32[64,32], index: 12, kind: input, shape index: {}]   ;;  %s10842_s13 = inlined_call_operand.vmem [shape: f32[32,2], index: 13, kind: input, shape index: {}]   ;;  %s10843_s14 = inlined_call_operand.hbm [shape: f32[17,1024], index: 14, kind: input, shape index: {}]   ;;  %s10844_s15 = inlined_call_operand.hbm [shape: bf16[1024,768], index: 15, kind: input, shape index: {}]   ;;  %s10845_s16 = inlined_call_operand.hbm [shape: f32[1,768], index: 16, kind: input, shape index: {}]   ;;  %s10846_s17 = inlined_call_operand.vmem [shape: f32[8,128], index: 17, kind: output, shape index: {0}]   ;;  %s10847_s18 = inlined_call_operand.vmem [shape: f32[8,768], index: 18, kind: output, shape index: {1}]  }
   0x1   :  { %10865 = sst [smem:[#allocation31_spill]] %s10829_s0 }
   0x2   :  { %10866 = sst [smem:[#allocation32_spill]] %s10830_s1 }
   0x3   :  { %10867 = sst [smem:[#allocation33_spill]] %s10831_s2 }
   0x4   :  { %10868 = sst [smem:[#allocation34_spill]] %s10833_s4 }
   0x5   :  { %10869 = sst [smem:[#allocation35_spill]] %s10834_s5 }
   0x6   :  { %10870 = sst [smem:[#allocation36_spill]] %s10835_s6 }
   0x7   :  { %10871 = sst [smem:[#allocation37_spill]] %s10836_s7 }
   0x8   :  { %10872 = sst [smem:[#allocation38_spill]] %s10837_s8 }
   0x9   :  { %10873 = sst [smem:[#allocation39_spill]] %s10838_s9 }
   0xa   :  { %10874 = sst [smem:[#allocation40_spill]] %s10839_s10 }
   0xb   :  { %10875 = sst [smem:[#allocation41_spill]] %s10840_s11 }
   0xc   :  { %10876 = sst [smem:[#allocation42_spill]] %s10841_s12 }
   0xd   :  { %10877 = sst [smem:[#allocation43_spill]] %s10842_s13 }
   0xe   :  { %10878 = sst [smem:[#allocation44_spill]] %s10843_s14 }
   0xf   :  { %10879 = sst [smem:[#allocation45_spill]] %s10844_s15 }
  0x10   :  { %10880 = sst [smem:[#allocation46_spill]] %s10845_s16 }
  0x11   :  { %10881 = sst [smem:[#allocation47_spill]] %s10846_s17 }
  0x12   :  { %10882 = sst [smem:[#allocation48_spill]] %s10847_s18 }
  0x13   :  { %24 = vsyncpa [#allocation5], 0 }
  0x14   :  { %25 = vsyncpa [#allocation7], 0 }
  0x15   :  { %27 = vsyncpa [#allocation7 + $0x1], 0 }
  0x16   :  { %28 = vsyncpa [#allocation10], 0 }
  0x17   :  { %29 = vsyncpa [#allocation13], 0 }
  0x18   :  { %30 = vsyncpa [#allocation16], 0 }
  0x19   :  { %31 = vsyncpa [#allocation19], 0 }
  0x1a   :  { %33 = vsyncpa [#allocation19 + $0x1], 0  ;;  %s9445_s27 = smov 0   ;;  %s9447_s28 = smov 0  }
  0x1b   :  { %s9449_s29 = smov 0   ;;  %s9451_s30 = smov 0  }
  0x1c   :  { %s9453_s0 = smov 0   ;;  %s9455_s19 = smov 0  }
  0x1d   :  { %s9457_s1 = smov 0  }
  0x1e LB: > { %10883 = sst [smem:[#allocation28_spill]] %s9306_s28  ;;  %s9484_s2 = sadd.s32 4294967295, %s9326_s1   ;;  %s9326_s1 = sphi %s9457_s1, %s10944_s1   ;;  %s9322_s19 = sphi %s9455_s19, %s10943_s19   ;;  %s9318_s0 = sphi %s9453_s0, %s10942_s0   ;;  %s9314_s30 = sphi %s9451_s30, %s10941_s30   ;;  %s9310_s29 = sphi %s9449_s29, %s10940_s29   ;;  %s9306_s28 = sphi %s9447_s28, %s10939_s28   ;;  %s9302_s27 = sphi %s9445_s27, %s10938_s27  }
  0x1f   : > { %s10884_s4 = sld [smem:[#allocation34_spill]]  ;;  %p6109_p0 = scmp.ge.s32.totalorder %s9326_s1, 1 }
  0x20   : > { %p10864_p1 = scmp.eq.s32.totalorder %s9484_s2, 0  ;;  %p494_p2 = scmp.lt.s32.totalorder %s9326_s1, 7 }
  0x21   : > { %s9328_s24 = smov [#allocation8]   ;;  %s10887_s5 = sld [smem:[#allocation35_spill]] }
  0x22   : > { %p9490_p4 = pnand %p6109_p0, %p494_p2  ;;  %s523_s25 = sshll.u32 %s9328_s24, 4  ;;  %s524_s25 = int_to_ptr.vmem [resolvable:$true] %s523_s25 }
  0x23   : > { %s9329_s17 = smov [#allocation9]   ;;  %s10853_s24 = smov 128  }
  0x24   : > { %s10885_s23 = scalar_select %p9490_p4, 1, 0 }
  0x25   : > { %s521_s22 = sshll.u32 %s10884_s4, 4  ;;  %p8769_p5 = pneg %p9490_p4  ;;  %s522_s22 = int_to_ptr.hbm [resolvable:$true] %s521_s22 }
  0x26   : > { %10886 = sst [smem:[#allocation29_spill]] %s10885_s23  ;;  %s534_s13 = sshll.u32 %s9329_s17, 4  ;;  %s535_s13 = int_to_ptr.vmem [resolvable:$true] %s534_s13 }
  0x27   : > { %s532_s21 = sshll.u32 %s10887_s5, 4  ;;  %p9501_p6 = pnand %p8769_p5, %p10864_p1  ;;  %s533_s21 = int_to_ptr.hbm [resolvable:$true] %s532_s21 }
  0x28   : > { %s10854_s26 = smov 8   ;;  %s10889_s9 = sld [smem:[#allocation39_spill]] }
  0x29   : > { %8775 = dma.hbm_to_vmem [thread:$0]  (!%p9501_p6), %s522_s22, 1024, %s524_s25, [#allocation7]  }
  0x2a   : > { %8778 = dma.hbm_to_vmem [thread:$0]  (!%p9501_p6), %s533_s21, 16384, %s535_s13, [#allocation10], %s10853_s24, %s10853_s24, %s10854_s26  }
  0x2b   : > { %s9332_s17 = smov [#allocation12]   ;;  %s10890_s11 = sld [smem:[#allocation41_spill]] }
  0x2c   : > { %s569_s22 = sshll.u32 %s9332_s17, 4  ;;  %s9333_s5 = smov [#allocation15]   ;;  %s570_s22 = int_to_ptr.vmem [resolvable:$true] %s569_s22 }
  0x2d   : > { %s594_s13 = sshll.u32 %s9333_s5, 4  ;;  %p130_p7 = scmp.eq.s32.totalorder %s9326_s1, 0  ;;  %s595_s13 = int_to_ptr.vmem [resolvable:$true] %s594_s13 }
  0x2e   : > { %s567_s12 = sshll.u32 %s10889_s9, 4  ;;  %s6103_s21 = sadd.s32 4294967293, %s9326_s1  ;;  %s568_s12 = int_to_ptr.hbm [resolvable:$true] %s567_s12 }
  0x2f   : > { %8784 = dma.hbm_to_vmem [thread:$0]  (!%p9501_p6), %s568_s12, 256, %s570_s22, [#allocation13]  }
  0x30   : > { %p377_p8 = scmp.gt.s32.totalorder %s6103_s21, 0  ;;  %p392_p9 = scmp.ne.s32.totalorder %s9310_s29, %s9306_s28 }
  0x31   : > { %s592_s6 = sshll.u32 %s10890_s11, 4  ;;  %p398_p10 = scmp.ne.s32.totalorder %s9306_s28, %s9302_s27  ;;  %s593_s6 = int_to_ptr.hbm [resolvable:$true] %s592_s6 }
  0x32   : > { %8790 = dma.hbm_to_vmem [thread:$0]  (!%p9501_p6), %s593_s6, 256, %s595_s13, [#allocation16], %s10853_s24, %s10853_s24, %s10854_s26  }
  0x33   : > { %s10946_s21 = smov (!%p377_p8, %s6103_s21), 0  ;;  %p9536_p11 = por %p392_p9, %p130_p7 }
  0x34   : > { %p9542_p12 = por %p398_p10, %p10864_p1  ;;  %p10856_p13 = scmp.lt.s32.totalorder %s9326_s1, 6 }
  0x35   : > { %s10855_s17 = sand.u32 1, %s9310_s29   ;;  %s8218_s22 = sshll.u32 %s10946_s21, 3 }
  0x36   : > { %s10892_s6 = scalar_select %p9542_p12, 1, 0 }
  0x37   : > { %s6123_s27 = sshll.u32 %s10855_s17, 10  ;;  %s10894_s15 = sld [smem:[#allocation45_spill]] }
  0x38   : > { %10893 = sst [smem:[#allocation30_spill]] %s10892_s6  ;;  %s670_s24 = scalar_lea.vmem [#allocation18], %s6123_s27 }
  0x39   : > { %s681_s26 = sshll.u32 %s670_s24, 4  ;;  %p9559_p0 = pnand %p10856_p13, %p9536_p11  ;;  %s682_s26 = int_to_ptr.vmem [resolvable:$true] %s681_s26 }
  0x3a   : > { %s10896_s18 = sld [smem:[#allocation33_spill]]  ;;  %s10897_s25 = sand.u32 1, %s9326_s1  }
  0x3b   : > { %p9038_p5 = pneg %p9559_p0 }
  0x3d   : > { %s678_s13 = scalar_lea.hbm %s10894_s15, %s8218_s22  ;;  %s9568_s22 = scalar_lea.sflag [#allocation19], %s10897_s25 }
  0x3e   : > { %s679_s7 = sshll.u32 %s678_s13, 4  ;;  %s9041_s11 = scalar_lea.hbm %s10894_s15, 3072  ;;  %s680_s7 = int_to_ptr.hbm [resolvable:$true] %s679_s7 }
  0x3f   : > { %s9034_s27 = sshra.s32 %s680_s7, 4  ;;  %s9035_s27 = int_to_ptr.hbm [resolvable:$true] %s9034_s27 }
  0x40   : > { %s509_s17 = sshll.u32 %s10896_s18, 4  ;;  %s9036_s24 = scalar_lea.hbm %s9035_s27, 1024  ;;  %s510_s17 = int_to_ptr.hbm [resolvable:$true] %s509_s17 }
  0x41   : > { %p9037_p2 = scmp.ne.s32.totalorder %s9035_s27, %s9036_s24  ;;  %p9042_p10 = scmp.lt.s32.totalorder %s9035_s27, %s10894_s15 }
  0x42   : > { %p9043_p11 = scmp.lt.s32.totalorder %s9041_s11, %s9036_s24 }
  0x43   : > { %p9039_p8 = pnand %p9038_p5, %p9037_p2 }
  0x44   : > { %p9044_p3 = por %p9043_p11, %p9042_p10 }
  0x45   : > { %p9040_p9 = pneg %p9039_p8 }
  0x47   : > { %p9045_p13 = pnand %p9044_p3, %p9040_p9 }
  0x49   : > { %9048 = shalt.err (!%p9045_p13)
}
  0x4a   : > { %s9334_s13 = smov 384   ;;  %s10898_s25 = smov 8  }
  0x4b   : > { %s10899_s6 = smov 128   ;;  %s9335_s28 = smov [#allocation4]  }
  0x4c   : > { %8800 = dma.hbm_to_vmem [thread:$0]  (!%p9559_p0), %s680_s7, 16384, %s682_s26, %s9568_s22, %s9334_s13, %s10899_s6, %s10898_s25  }
  0x4d   : > { %s511_s12 = sshll.u32 %s9335_s28, 4  ;;  %s10900_s8 = sld [smem:[#allocation38_spill]]  ;;  %s512_s12 = int_to_ptr.vmem [resolvable:$true] %s511_s12 }
  0x4e   : > { %8772 = dma.hbm_to_vmem [thread:$0]  (!%p9501_p6), %s510_s17, 128, %s512_s12, [#allocation5]  }
  0x4f   : > { %s9336_s27 = smov [#allocation11]   ;;  %s10901_s10 = sld [smem:[#allocation40_spill]] }
  0x50   : > { %s554_s24 = sshll.u32 %s9336_s27, 4  ;;  %s9337_s16 = smov 256   ;;  %s555_s24 = int_to_ptr.vmem [resolvable:$true] %s554_s24 }
  0x51   : > { %s9338_s26 = smov 16   ;;  %s9339_s28 = smov [#allocation14]  }
  0x52   : > { %s580_s23 = sshll.u32 %s9339_s28, 4  ;;  %s10862_s7 = smov 512   ;;  %s581_s23 = int_to_ptr.vmem [resolvable:$true] %s580_s23 }
  0x53   : > { %s552_s20 = sshll.u32 %s10900_s8, 4  ;;  %s10863_s6 = smov 32   ;;  %s553_s20 = int_to_ptr.hbm [resolvable:$true] %s552_s20 }
  0x54   : > { %8781 = dma.hbm_to_vmem [thread:$0]  (!%p9501_p6), %s553_s20, 512, %s555_s24, [#allocation10], %s9337_s16, %s9337_s16, %s9338_s26  }
  0x55   : > { %s578_s15 = sshll.u32 %s10901_s10, 4  ;;  %s10902_s14 = sld [smem:[#allocation44_spill]]  ;;  %s579_s15 = int_to_ptr.hbm [resolvable:$true] %s578_s15 }
  0x56   : > { %8787 = dma.hbm_to_vmem [thread:$0]  (!%p9501_p6), %s579_s15, 16384, %s581_s23, [#allocation13], %s10862_s7, %s10862_s7, %s10863_s6  }
  0x57   : > { %s9342_s25 = smov [#allocation17]   ;;  %s9343_s5 = smov 1024  }
  0x58   : > { %s614_s12 = sshll.u32 %s9342_s25, 4  ;;  %s9344_s20 = smov 64   ;;  %s615_s12 = int_to_ptr.vmem [resolvable:$true] %s614_s12 }
  0x59   : > { %s9607_s27 = sadd.s32 1, %s9326_s1   ;;  %p115_p3 = scmp.lt.s32.totalorder %s9326_s1, 2 }
  0x5a   : > { %p117_p13 = scmp.lt.s32.totalorder %s9607_s27, 2  ;;  %s122_s15 = sadd.s32 1, %s9322_s19 }
  0x5b   : > { %s612_s16 = sshll.u32 %s10902_s14, 4  ;;  %p129_p2 = scmp.ne.s32.totalorder %s9322_s19, %s9318_s0  ;;  %s613_s16 = int_to_ptr.hbm [resolvable:$true] %s612_s16 }
  0x5c   : > { %8793 = dma.hbm_to_vmem [thread:$0]  (!%p9501_p6), %s613_s16, 3072, %s615_s12, [#allocation16], %s9343_s5, %s9343_s5, %s9344_s20  }
  0x5d   : > { %s116_s24 = scalar_select %p115_p3, %s9326_s1, 2 }
  0x5e   : > { %s118_s11 = scalar_select %p117_p13, %s9607_s27, 2 }
  0x5f   : > { %p9618_p8 = por %p130_p7, %p129_p2  ;;  %p135_p9 = scmp.ne.s32.totalorder %s9318_s0, %s9314_s30 }
  0x60   : > { %s119_s4 = ssub.s32 %s116_s24, %s118_s11  ;;  %s6104_s26 = sadd.s32 4294967293, %s9607_s27 }
  0x61   : > { %p120_p6 = scmp.eq.s32.totalorder %s119_s4, 0  ;;  %p9627_p10 = por %p10864_p1, %p135_p9 }
  0x62   : > { %p380_p11 = scmp.gt.s32.totalorder %s6104_s26, 0  ;;  %s643_s30 = sand.u32 1, %s9322_s19  }
  0x63   : > { %s9632_s23 = scalar_select %p120_p6, %s9322_s19, %s122_s15  }
  0x64   : > { %s10948_s26 = smov (!%p380_p11, %s6104_s26), 0  ;;  %s8217_s17 = sshll.u32 %s116_s24, 10 }
  0x65   : > { %s382_s13 = ssub.s32 %s10946_s21, %s10948_s26  ;;  %s6119_s16 = sshll.u32 %s643_s30, 10 }
  0x66   : > { %p383_p7 = scmp.eq.s32.totalorder %s382_s13, 0  ;;  %s653_s5 = scalar_lea.hbm %s10832_s3, %s8217_s17 }
  0x67   : > { %s645_s20 = scalar_lea.vmem [#allocation6], %s6119_s16  ;;  %s10905_s4 = sadd.s32 1, %s9310_s29 }
  0x68   : > { %s656_s11 = sshll.u32 %s645_s20, 4  ;;  %s654_s6 = sshll.u32 %s653_s5, 4  ;;  %s657_s11 = int_to_ptr.vmem [resolvable:$true] %s656_s11  ;;  %s655_s6 = int_to_ptr.hbm [resolvable:$true] %s654_s6 }
  0x69   : > { %s9642_s7 = scalar_select %p383_p7, %s9310_s29, %s10905_s4  }
  0x6a   : > { %p10906_p3 = scmp.lt.s32.totalorder %s9326_s1, 6  ;;  %s10908_s24 = sand.u32 1, %s9310_s29  }
  0x6b   : > { %s6127_s26 = sshll.u32 %s10908_s24, 1  ;;  %s6129_s30 = sshll.u32 %s10946_s21, 1 }
  0x6c   : > { %p9648_p13 = pnand %p10906_p3, %p9618_p8  ;;  %s10909_s13 = sand.u32 1, %s9326_s1  }
  0x6d   : > { %s642_s17 = scalar_lea.sflag [#allocation7], %s10909_s13  ;;  %s9184_s16 = sshra.s32 %s655_s6, 4  ;;  %s9185_s16 = int_to_ptr.hbm [resolvable:$true] %s9184_s16 }
  0x6e   : > { %s9186_s25 = scalar_lea.hbm %s9185_s16, 1024  ;;  %p9188_p9 = pneg %p9648_p13 }
  0x6f   : > { %p9187_p2 = scmp.ne.s32.totalorder %s9185_s16, %s9186_s25  ;;  %s9191_s5 = scalar_lea.hbm %s10832_s3, 3072 }
  0x70   : > { %p9192_p8 = scmp.lt.s32.totalorder %s9185_s16, %s10832_s3  ;;  %p9193_p7 = scmp.lt.s32.totalorder %s9191_s5, %s9186_s25 }
  0x71   : > { %p9189_p6 = pnand %p9188_p9, %p9187_p2 }
  0x72   : > { %p9194_p3 = por %p9193_p7, %p9192_p8 }
  0x73   : > { %p9190_p11 = pneg %p9189_p6 }
  0x75   : > { %p9195_p1 = pnand %p9194_p3, %p9190_p11 }
  0x77   : > { %9198 = shalt.err (!%p9195_p1)
}
  0x78   : > { %s10910_s1 = smov 32   ;;  %s10911_s21 = smov 512  }
  0x79   : > { %8797 = dma.hbm_to_vmem [thread:$0]  (!%p9648_p13), %s655_s6, 16384, %s657_s11, %s642_s17, %s10911_s21, %s10911_s21, %s10910_s1  }
  0x7a   : > { %s10912_s8 = sld [smem:[#allocation46_spill]]  ;;  %s695_s12 = scalar_lea.vmem [#allocation20], %s6127_s26 }
  0x7b   : > { %s706_s10 = sshll.u32 %s695_s12, 4  ;;  %s707_s10 = int_to_ptr.vmem [resolvable:$true] %s706_s10 }
  0x80   : > { %s702_s18 = scalar_lea.hbm %s10912_s8, %s6129_s30  ;;  %s9221_s6 = scalar_lea.hbm %s10912_s8, 6 }
  0x81   : > { %s704_s14 = sshll.u32 %s702_s18, 4  ;;  %s705_s14 = int_to_ptr.hbm [resolvable:$true] %s704_s14 }
  0x82   : > { %s9214_s16 = sshra.s32 %s705_s14, 4  ;;  %s9215_s16 = int_to_ptr.hbm [resolvable:$true] %s9214_s16 }
  0x83   : > { %s9216_s25 = scalar_lea.hbm %s9215_s16, 2  ;;  %p9222_p13 = scmp.lt.s32.totalorder %s9215_s16, %s10912_s8 }
  0x84   : > { %p9217_p1 = scmp.ne.s32.totalorder %s9215_s16, %s9216_s25  ;;  %p9223_p6 = scmp.lt.s32.totalorder %s9221_s6, %s9216_s25 }
  0x86   : > { %p9219_p2 = pnand %p9217_p1, %p9038_p5  ;;  %p9224_p11 = por %p9223_p6, %p9222_p13 }
  0x88   : > { %p9220_p9 = pneg %p9219_p2 }
  0x8a   : > { %p9225_p8 = pnand %p9224_p11, %p9220_p9 }
  0x8c   : > { %9228 = shalt.err (!%p9225_p8)
}
  0x8d   : > { %8803 = dma.hbm_to_vmem [thread:$0]  (!%p9559_p0), %s705_s14, 32, %s707_s10, %s9568_s22  }
  0x8e   : > { %715 = sbr.rel (%p9490_p4) target bundleno = 2827 (0xb0b), region = 88  ;;  %p10914_p5 = scmp.eq.s32.totalorder (!%p9490_p4), %s9484_s2, 0 }
  0x93   : > { %9273 = dma.done.wait (%p10914_p5), [#allocation5], 128   ;;  %p10915_p7 = pmov %p10914_p5 }
  0x94   : > { %s722_s30 = sand.u32 1, %s9484_s2   ;;  %s724_s20 = sand.u32 1, %s9318_s0  }
  0x95   : > { %9275 = vsyncadd (%p10915_p7), [#allocation5], 4294967168  ;;  %s6132_s4 = sshll.u32 %s724_s20, 10  ;;  %s723_s1 = scalar_lea.sflag [#allocation7], %s722_s30 }
  0x96   : > { %s9693_s21 = scalar_lea.vmem [#allocation6], %s6132_s4 }
  0x97   : > { %9277 = dma.done.wait (%p9627_p10), %s723_s1, 16384  }
  0x98   : > { %9279 = vsyncadd (%p9627_p10), %s723_s1, 4294950912  ;;  %p10916_p4 = pmov %p10914_p5 }
  0x9a   : > { %9281 = dma.done.wait (%p10916_p4), [#allocation7], 1024   ;;  %p10917_p0 = pmov %p10916_p4 }
  0x9c   : > { %9283 = vsyncadd (%p10917_p0), [#allocation7], 4294966272  ;;  %p10918_p3 = pmov %p10917_p0 }
  0x9d   : > { %p10919_p1 = pmov %p10917_p0 }
  0x9e   : > { %9285 = dma.done.wait (%p10918_p3), [#allocation10], 16896  }
  0x9f   : > { %9287 = vsyncadd (%p10919_p1), [#allocation10], 4294950400  ;;  %p10920_p2 = pmov %p10917_p0 }
  0xa0   : > { %p10921_p9 = pmov %p10917_p0 }
  0xa1   : > { %9289 = dma.done.wait (%p10920_p2), [#allocation13], 16640  }
  0xa2   : > { %9291 = vsyncadd (%p10921_p9), [#allocation13], 4294950656  ;;  %p10922_p10 = pmov %p10917_p0 }
  0xa3   : > { %p10923_p13 = pmov %p10917_p0 }
  0xa4   : > { %9293 = dma.done.wait (%p10922_p10), [#allocation16], 3328  }
  0xa5   : > { %9295 = vsyncadd (%p10923_p13), [#allocation16], 4294963968  ;;  %s10924_s9 = sld [smem:[#allocation28_spill]]  ;;  %s768_s28 = scalar_lea.sflag [#allocation19], %s722_s30 }
  0xab   : > { %s769_s14 = sand.u32 1, %s10924_s9  }
  0xac   : > { %s6140_s22 = sshll.u32 %s769_s14, 10 }
  0xad   : > { %s9716_s24 = scalar_lea.vmem [#allocation18], %s6140_s22 }
  0xae   : > { %9297 = dma.done.wait (%p9542_p12), %s768_s28, 16416  }
  0xaf   : > { %9299 = vsyncadd (%p9542_p12), %s768_s28, 4294950880  ;;  %s9722_s13 = sshll.u32 %s769_s14, 1  ;;  %p855_p6 = scmp.lt.s32.totalorder %s9484_s2, 2 }
  0xb0   : > { %s6144_s18 = sadd.s32 4294967293, %s9484_s2  ;;  %s10926_s11 = sld [smem:[#allocation31_spill]] }
  0xb1   : > { %s856_s12 = scalar_select %p855_p6, %s9484_s2, 2 }
  0xb2   : > { %p877_p11 = scmp.gt.s32.totalorder %s6144_s18, 0  ;;  %s10927_s4 = sld [smem:[#allocation48_spill]] }
  0xb3   : > { %s6142_s16 = sshll.u32 %s856_s12, 1  ;;  %s781_s9 = scalar_lea.vmem [#allocation20], %s9722_s13 }
  0xb4   : > { %p858_p8 = scmp.lt.s32.totalorder %s6142_s16, 5  ;;  %s10950_s18 = smov (!%p877_p11, %s6144_s18), 0 }
  0xb5   : > { %s6145_s25 = sshll.u32 %s10950_s18, 1  ;;  %p10928_p12 = scmp.ne.s32.totalorder %s9484_s2, 0 }
  0xb6   : > { %s10952_s16 = smov (!%p858_p8, %s6142_s16), 5  ;;  %p880_p5 = scmp.lt.s32.totalorder %s6145_s25, 5 }
  0xb7   : > { %s6143_s15 = sshll.u32 %s10952_s16, 3  ;;  %891 = sbr.rel (%p10928_p12) target bundleno = 197 (0xc5), region = 136 }
  0xb8   : > { %s9730_s17 = scalar_lea.vmem %s10926_s11, %s6143_s15  ;;  %s10954_s25 = smov (!%p880_p5, %s6145_s25), 5 }
  0xb9   : > { %s6146_s26 = sshll.u32 %s10954_s25, 3 }
  0xba   : > { %s9735_s1 = scalar_lea.vmem %s10927_s4, %s6146_s26 }
  0xbc   : > { %v9345_v0 = vmov 0.0  }
  0xbd   : > { %892 = vst [vmem:[#allocation2 + $0x30] sm:$0xff] %v9345_v0 }
  0xbe   : > { %893 = vst [vmem:[#allocation2] sm:$0xff] %v9345_v0 }
  0xbf   : > { %894 = vst [vmem:[#allocation2 + $0x18] sm:$0xff] %v9345_v0 }
  0xc0   : > { %895 = vst [vmem:[#allocation2 + $0x10] sm:$0xff] %v9345_v0 }
  0xc1   : > { %896 = vst [vmem:[#allocation2 + $0x8] sm:$0xff] %v9345_v0 }
  0xc2   : > { %897 = vst [vmem:[#allocation2 + $0x20] sm:$0xff] %v9345_v0 }
  0xc3   : > { %898 = vst [vmem:[#allocation2 + $0x28] sm:$0xff] %v9345_v0 }
  0xc4   : > { %899 = vst [vmem:[#allocation2 + $0x38] sm:$0xff] %v9345_v0 }
  0xc5 PF: > { %p6148_p7 = scmp.ge.s32.totalorder %s9484_s2, 3 }
  0xc7   : > { %903 = sbr.rel (%p6148_p7) target bundleno = 477 (0x1dd), region = 140 }
  0xcc   : > { %v6375_v1 = vld [vmem:[%s9693_s21 + $0x1c0] sm:$0xf]  ;;  %v8275_v6 = vld [vmem:[%s9693_s21 + $0x1c4] sm:$0xf] }
  0xcd   : > { %v8279_v2 = vld [vmem:[%s9693_s21 + $0x1dc] sm:$0xf0]  ;;  %v6377_v7 = vld [vmem:[%s9693_s21 + $0x1e0] sm:$0xf0] }
  0xce   : > { %v6631_v3 = vld [vmem:[%s9693_s21 + $0x3c0] sm:$0xf]  ;;  %v6376_v4 = vor.u32 %v8279_v2, %v6375_v1  ;;  %v6380_v9 = vor.u32 %v8275_v6, %v6377_v7  ;;  %v8339_v10 = vld [vmem:[%s9693_s21 + $0x3c4] sm:$0xf] }
  0xcf   : > { %v8343_v5 = vld [vmem:[%s9693_s21 + $0x3dc] sm:$0xf0]  ;;  %v6633_v11 = vld [vmem:[%s9693_s21 + $0x3e0] sm:$0xf0] }
  0xd0   : > { %v6632_v8 = vor.u32 %v8343_v5, %v6631_v3  ;;  %v6343_v12 = vld [vmem:[%s9693_s21 + $0x180] sm:$0xf]  ;;  %1684 = vmatpush.bf16.msra.mxu0 %v6376_v4  ;;  %v6636_v13 = vor.u32 %v8339_v10, %v6633_v11  ;;  %1710 = vmatpush.bf16.msra.mxu2 %v6380_v9  ;;  %v8267_v19 = vld [vmem:[%s9693_s21 + $0x184] sm:$0xf] }
  0xd1   : > { %v8271_v14 = vld [vmem:[%s9693_s21 + $0x19c] sm:$0xf0]  ;;  %v6345_v20 = vld [vmem:[%s9693_s21 + $0x1a0] sm:$0xf0] }
  0xd2   : > { %v6599_v15 = vld [vmem:[%s9693_s21 + $0x380] sm:$0xf]  ;;  %1697 = vmatpush.bf16.msra.mxu1 %v6632_v8  ;;  %v6344_v17 = vor.u32 %v8271_v14, %v6343_v12  ;;  %v8331_v21 = vld [vmem:[%s9693_s21 + $0x384] sm:$0xf]  ;;  %1723 = vmatpush.bf16.msra.mxu3 %v6636_v13  ;;  %v6348_v22 = vor.u32 %v8267_v19, %v6345_v20 }
  0xd3   : > { %v8335_v16 = vld [vmem:[%s9693_s21 + $0x39c] sm:$0xf0]  ;;  %v6601_v23 = vld [vmem:[%s9693_s21 + $0x3a0] sm:$0xf0] }
  0xd4   : > { %v6600_v18 = vor.u32 %v8335_v16, %v6599_v15  ;;  %v6311_v24 = vld [vmem:[%s9693_s21 + $0x140] sm:$0xf]  ;;  %v6604_v26 = vor.u32 %v8331_v21, %v6601_v23  ;;  %v8259_v29 = vld [vmem:[%s9693_s21 + $0x144] sm:$0xf]  ;;  %1685 = vmatpush.bf16.msra.mxu0 %v6344_v17  ;;  %1711 = vmatpush.bf16.msra.mxu2 %v6348_v22 }
  0xd5   : > { %v8263_v25 = vld [vmem:[%s9693_s21 + $0x15c] sm:$0xf0]  ;;  %v6313_v31 = vld [vmem:[%s9693_s21 + $0x160] sm:$0xf0] }
  0xd6   : > { %v6567_v27 = vld [vmem:[%s9693_s21 + $0x340] sm:$0xf]  ;;  %v6312_v30 = vor.u32 %v8263_v25, %v6311_v24  ;;  %v8323_v32 = vld [vmem:[%s9693_s21 + $0x344] sm:$0xf]  ;;  %1698 = vmatpush.bf16.msra.mxu1 %v6600_v18  ;;  %v6316_v35 = vor.u32 %v8259_v29, %v6313_v31  ;;  %1724 = vmatpush.bf16.msra.mxu3 %v6604_v26  ;;  %v6383_v29 = vld [vmem:[%s9693_s21 + $0x1c8] sm:$0xf] }
  0xd7   : > { %v8327_v28 = vld [vmem:[%s9693_s21 + $0x35c] sm:$0xf0]  ;;  %v6569_v33 = vld [vmem:[%s9693_s21 + $0x360] sm:$0xf0]  ;;  %v6639_v31 = vld [vmem:[%s9693_s21 + $0x3c8] sm:$0xf] }
  0xd8   : > { %v6568_v34 = vor.u32 %v8327_v28, %v6567_v27  ;;  %v6279_v36 = vld [vmem:[%s9693_s21 + $0x100] sm:$0xf]  ;;  %v6572_v39 = vor.u32 %v8323_v32, %v6569_v33  ;;  %v8251_v41 = vld [vmem:[%s9693_s21 + $0x104] sm:$0xf]  ;;  %1686 = vmatpush.bf16.msra.mxu0 %v6312_v30  ;;  %1712 = vmatpush.bf16.msra.mxu2 %v6316_v35  ;;  %v8280_v30 = vld [vmem:[%s9693_s21 + $0x1e4] sm:$0xf0] }
  0xd9   : > { %v8255_v37 = vld [vmem:[%s9693_s21 + $0x11c] sm:$0xf0]  ;;  %v6281_v42 = vld [vmem:[%s9693_s21 + $0x120] sm:$0xf0]  ;;  %v8344_v33 = vld [vmem:[%s9693_s21 + $0x3e4] sm:$0xf0] }
  0xda   : > { %v6535_v38 = vld [vmem:[%s9693_s21 + $0x300] sm:$0xf]  ;;  %v8315_v43 = vld [vmem:[%s9693_s21 + $0x304] sm:$0xf]  ;;  %v6280_v45 = vor.u32 %v8255_v37, %v6279_v36  ;;  %1699 = vmatpush.bf16.msra.mxu1 %v6568_v34  ;;  %v6284_v47 = vor.u32 %v8251_v41, %v6281_v42  ;;  %1725 = vmatpush.bf16.msra.mxu3 %v6572_v39  ;;  %v8276_v34 = vld [vmem:[%s9693_s21 + $0x1cc] sm:$0xf]  ;;  %v6384_v41 = vor.u32 %v8280_v30, %v6383_v29 }
  0xdb   : > { %v8319_v40 = vld [vmem:[%s9693_s21 + $0x31c] sm:$0xf0]  ;;  %v6537_v44 = vld [vmem:[%s9693_s21 + $0x320] sm:$0xf0]  ;;  %v6385_v35 = vld [vmem:[%s9693_s21 + $0x1e8] sm:$0xf0]  ;;  %v6640_v42 = vor.u32 %v8344_v33, %v6639_v31 }
  0xdc   : > { %v6536_v46 = vor.u32 %v8319_v40, %v6535_v38  ;;  %v6247_v48 = vld [vmem:[%s9693_s21 + $0xc0] sm:$0xf]  ;;  %v6540_v51 = vor.u32 %v8315_v43, %v6537_v44  ;;  %v8243_v53 = vld [vmem:[%s9693_s21 + $0xc4] sm:$0xf]  ;;  %1687 = vmatpush.bf16.msra.mxu0 %v6280_v45  ;;  %1713 = vmatpush.bf16.msra.mxu2 %v6284_v47  ;;  %v8340_v38 = vld [vmem:[%s9693_s21 + $0x3cc] sm:$0xf]  ;;  %v6388_v43 = vor.u32 %v8276_v34, %v6385_v35 }
  0xdd   : > { %v8247_v49 = vld [vmem:[%s9693_s21 + $0xdc] sm:$0xf0]  ;;  %v6249_v54 = vld [vmem:[%s9693_s21 + $0xe0] sm:$0xf0]  ;;  %v6641_v39 = vld [vmem:[%s9693_s21 + $0x3e8] sm:$0xf0] }
  0xde   : > { %v6503_v50 = vld [vmem:[%s9693_s21 + $0x2c0] sm:$0xf]  ;;  %v8307_v55 = vld [vmem:[%s9693_s21 + $0x2c4] sm:$0xf]  ;;  %v6248_v57 = vor.u32 %v8247_v49, %v6247_v48  ;;  %1700 = vmatpush.bf16.msra.mxu1 %v6536_v46  ;;  %v6252_v59 = vor.u32 %v8243_v53, %v6249_v54  ;;  %1726 = vmatpush.bf16.msra.mxu3 %v6540_v51  ;;  %v6351_v44 = vld [vmem:[%s9693_s21 + $0x188] sm:$0xf]  ;;  %v6644_v47 = vor.u32 %v8340_v38, %v6641_v39 }
  0xdf   : > { %v8311_v52 = vld [vmem:[%s9693_s21 + $0x2dc] sm:$0xf0]  ;;  %v6505_v56 = vld [vmem:[%s9693_s21 + $0x2e0] sm:$0xf0]  ;;  %v8272_v45 = vld [vmem:[%s9693_s21 + $0x1a4] sm:$0xf0] }
  0xe0   : > { %v6504_v58 = vor.u32 %v8311_v52, %v6503_v50  ;;  %v6215_v60 = vld [vmem:[%s9693_s21 + $0x80] sm:$0xf]  ;;  %v6508_v63 = vor.u32 %v8307_v55, %v6505_v56  ;;  %v8235_v1 = vld [vmem:[%s9693_s21 + $0x84] sm:$0xf]  ;;  %1688 = vmatpush.bf16.msra.mxu0 %v6248_v57  ;;  %1714 = vmatpush.bf16.msra.mxu2 %v6252_v59  ;;  %v6607_v46 = vld [vmem:[%s9693_s21 + $0x388] sm:$0xf]  ;;  %v6352_v53 = vor.u32 %v8272_v45, %v6351_v44 }
  0xe1   : > { %v8239_v61 = vld [vmem:[%s9693_s21 + $0x9c] sm:$0xf0]  ;;  %v6217_v2 = vld [vmem:[%s9693_s21 + $0xa0] sm:$0xf0]  ;;  %v8336_v48 = vld [vmem:[%s9693_s21 + $0x3a4] sm:$0xf0] }
  0xe2   : > { %v6471_v62 = vld [vmem:[%s9693_s21 + $0x280] sm:$0xf]  ;;  %v8299_v3 = vld [vmem:[%s9693_s21 + $0x284] sm:$0xf]  ;;  %v6216_v5 = vor.u32 %v8239_v61, %v6215_v60  ;;  %1701 = vmatpush.bf16.msra.mxu1 %v6504_v58  ;;  %v6220_v7 = vor.u32 %v8235_v1, %v6217_v2  ;;  %1727 = vmatpush.bf16.msra.mxu3 %v6508_v63  ;;  %v8268_v49 = vld [vmem:[%s9693_s21 + $0x18c] sm:$0xf]  ;;  %v6608_v55 = vor.u32 %v8336_v48, %v6607_v46 }
  0xe3   : > { %v8303_v0 = vld [vmem:[%s9693_s21 + $0x29c] sm:$0xf0]  ;;  %v6473_v4 = vld [vmem:[%s9693_s21 + $0x2a0] sm:$0xf0]  ;;  %v6353_v50 = vld [vmem:[%s9693_s21 + $0x1a8] sm:$0xf0] }
  0xe4   : > { %v6472_v6 = vor.u32 %v8303_v0, %v6471_v62  ;;  %v6183_v8 = vld [vmem:[%s9693_s21 + $0x40] sm:$0xf]  ;;  %v6476_v11 = vor.u32 %v8299_v3, %v6473_v4  ;;  %v8227_v13 = vld [vmem:[%s9693_s21 + $0x44] sm:$0xf]  ;;  %1689 = vmatpush.bf16.msra.mxu0 %v6216_v5  ;;  %1715 = vmatpush.bf16.msra.mxu2 %v6220_v7  ;;  %v8332_v51 = vld [vmem:[%s9693_s21 + $0x38c] sm:$0xf]  ;;  %v6356_v56 = vor.u32 %v8268_v49, %v6353_v50 }
  0xe5   : > { %v8231_v9 = vld [vmem:[%s9693_s21 + $0x5c] sm:$0xf0]  ;;  %v6185_v14 = vld [vmem:[%s9693_s21 + $0x60] sm:$0xf0]  ;;  %v6609_v52 = vld [vmem:[%s9693_s21 + $0x3a8] sm:$0xf0] }
  0xe6   : > { %v6439_v10 = vld [vmem:[%s9693_s21 + $0x240] sm:$0xf]  ;;  %v8291_v15 = vld [vmem:[%s9693_s21 + $0x244] sm:$0xf]  ;;  %v6184_v17 = vor.u32 %v8231_v9, %v6183_v8  ;;  %1702 = vmatpush.bf16.msra.mxu1 %v6472_v6  ;;  %v6188_v21 = vor.u32 %v8227_v13, %v6185_v14  ;;  %1728 = vmatpush.bf16.msra.mxu3 %v6476_v11  ;;  %v6319_v54 = vld [vmem:[%s9693_s21 + $0x148] sm:$0xf]  ;;  %v6612_v60 = vor.u32 %v8332_v51, %v6609_v52 }
  0xe7   : > { %v8295_v12 = vld [vmem:[%s9693_s21 + $0x25c] sm:$0xf0]  ;;  %v6441_v16 = vld [vmem:[%s9693_s21 + $0x260] sm:$0xf0]  ;;  %v8264_v57 = vld [vmem:[%s9693_s21 + $0x164] sm:$0xf0] }
  0xe8   : > { %v6151_v18 = vld [vmem:[%s9693_s21] sm:$0xf]  ;;  %v6440_v20 = vor.u32 %v8295_v12, %v6439_v10  ;;  %v8219_v24 = vld [vmem:[%s9693_s21 + $0x4] sm:$0xf]  ;;  %v6444_v25 = vor.u32 %v8291_v15, %v6441_v16  ;;  %1690 = vmatpush.bf16.msra.mxu0 %v6184_v17  ;;  %1716 = vmatpush.bf16.msra.mxu2 %v6188_v21  ;;  %v6575_v58 = vld [vmem:[%s9693_s21 + $0x348] sm:$0xf]  ;;  %v6320_v1 = vor.u32 %v8264_v57, %v6319_v54 }
  0xe9   : > { %v8223_v19 = vld [vmem:[%s9693_s21 + $0x1c] sm:$0xf0]  ;;  %v6153_v26 = vld [vmem:[%s9693_s21 + $0x20] sm:$0xf0]  ;;  %v8328_v59 = vld [vmem:[%s9693_s21 + $0x364] sm:$0xf0] }
  0xea   : > { %v6407_v22 = vld [vmem:[%s9693_s21 + $0x200] sm:$0xf]  ;;  %v8283_v27 = vld [vmem:[%s9693_s21 + $0x204] sm:$0xf]  ;;  %v6152_v32 = vor.u32 %v8223_v19, %v6151_v18  ;;  %1703 = vmatpush.bf16.msra.mxu1 %v6440_v20  ;;  %v6156_v37 = vor.u32 %v8219_v24, %v6153_v26  ;;  %1729 = vmatpush.bf16.msra.mxu3 %v6444_v25  ;;  %v8260_v61 = vld [vmem:[%s9693_s21 + $0x14c] sm:$0xf]  ;;  %v6576_v2 = vor.u32 %v8328_v59, %v6575_v58 }
  0xeb   : > { %v8287_v23 = vld [vmem:[%s9693_s21 + $0x21c] sm:$0xf0]  ;;  %v6409_v28 = vld [vmem:[%s9693_s21 + $0x220] sm:$0xf0]  ;;  %v6321_v62 = vld [vmem:[%s9693_s21 + $0x168] sm:$0xf0] }
  0xec   : > { %v6408_v36 = vor.u32 %v8287_v23, %v6407_v22  ;;  %v6412_v40 = vor.u32 %v8283_v27, %v6409_v28  ;;  %1691 = vmatpush.bf16.msra.mxu0 %v6152_v32  ;;  %1717 = vmatpush.bf16.msra.mxu2 %v6156_v37  ;;  %v8324_v63 = vld [vmem:[%s9693_s21 + $0x34c] sm:$0xf]  ;;  %v912_v3 = vld [vmem:[%s9730_s17] sm:$0xff]  ;;  %v913_v4 = vld [vmem:[%s9730_s17 + $0x8] sm:$0xff]  ;;  %v6324_v5 = vor.u32 %v8260_v61, %v6321_v62 }
  0xed   : > { %v6577_v0 = vld [vmem:[%s9693_s21 + $0x368] sm:$0xf0]  ;;  %v6287_v6 = vld [vmem:[%s9693_s21 + $0x108] sm:$0xf]  ;;  %v9834_v9 = vpack.c.bf16 %v912_v3, %v912_v3  ;;  %v9836_v10 = vpack.c.bf16 %v913_v4, %v913_v4  ;;  %v6647_v3 = vld [vmem:[%s9693_s21 + $0x3d0] sm:$0xf] }
  0xee   : > { %1704 = vmatpush.bf16.msra.mxu1 %v6408_v36  ;;  %1730 = vmatpush.bf16.msra.mxu3 %v6412_v40  ;;  %v8256_v7 = vld [vmem:[%s9693_s21 + $0x124] sm:$0xf0]  ;;  %v6580_v11 = vor.u32 %v8324_v63, %v6577_v0  ;;  %v8252_v13 = vld [vmem:[%s9693_s21 + $0x10c] sm:$0xf] }
  0xef   : > { %v6543_v8 = vld [vmem:[%s9693_s21 + $0x308] sm:$0xf]  ;;  %v6289_v14 = vld [vmem:[%s9693_s21 + $0x128] sm:$0xf0]  ;;  %1718 = vmatmul.bf16.vlgmr.msra.gmra.mxu2 %v9834_v9  ;;  %v6288_v17 = vor.u32 %v8256_v7, %v6287_v6  ;;  %1692 = vmatmul.bf16.vlgmr.msra.gmra.mxu0 %v9834_v9  ;;  %v8277_v6 = vld [vmem:[%s9693_s21 + $0x1d4] sm:$0xf] }
  0xf0   : > { %1736 = vmatpush.bf16.msrb.mxu0 %v6384_v41  ;;  %1762 = vmatpush.bf16.msrb.mxu2 %v6388_v43  ;;  %v8320_v12 = vld [vmem:[%s9693_s21 + $0x324] sm:$0xf0]  ;;  %v8316_v15 = vld [vmem:[%s9693_s21 + $0x30c] sm:$0xf]  ;;  %v6292_v19 = vor.u32 %v8252_v13, %v6289_v14  ;;  %v6393_v7 = vld [vmem:[%s9693_s21 + $0x1f0] sm:$0xf0] }
  0xf1   : > { %v6545_v16 = vld [vmem:[%s9693_s21 + $0x328] sm:$0xf0]  ;;  %1731 = vmatmul.bf16.vlgmr.msra.gmra.mxu3 %v9836_v10  ;;  %1705 = vmatmul.bf16.vlgmr.msra.gmra.mxu1 %v9836_v10  ;;  %v6544_v18 = vor.u32 %v8320_v12, %v6543_v8  ;;  %v6255_v20 = vld [vmem:[%s9693_s21 + $0xc8] sm:$0xf]  ;;  %v8341_v12 = vld [vmem:[%s9693_s21 + $0x3d4] sm:$0xf] }
  0xf2   : > { %1749 = vmatpush.bf16.msrb.mxu1 %v6640_v42  ;;  %1775 = vmatpush.bf16.msrb.mxu3 %v6644_v47  ;;  %v8248_v21 = vld [vmem:[%s9693_s21 + $0xe4] sm:$0xf0]  ;;  %v6548_v23 = vor.u32 %v8316_v15, %v6545_v16  ;;  %v8244_v25 = vld [vmem:[%s9693_s21 + $0xcc] sm:$0xf]  ;;  %v6649_v13 = vld [vmem:[%s9693_s21 + $0x3f0] sm:$0xf0] }
  0xf3   : > { %v6511_v22 = vld [vmem:[%s9693_s21 + $0x2c8] sm:$0xf]  ;;  %v6257_v26 = vld [vmem:[%s9693_s21 + $0xe8] sm:$0xf0]  ;;  %v6256_v29 = vor.u32 %v8248_v21, %v6255_v20  ;;  %v6615_v20 = vld [vmem:[%s9693_s21 + $0x390] sm:$0xf]  ;;  %v6652_v21 = vor.u32 %v8341_v12, %v6649_v13 }
  0xf4   : > { %1737 = vmatpush.bf16.msrb.mxu0 %v6352_v53  ;;  %1763 = vmatpush.bf16.msrb.mxu2 %v6356_v56  ;;  %v8312_v24 = vld [vmem:[%s9693_s21 + $0x2e4] sm:$0xf0]  ;;  %v8308_v27 = vld [vmem:[%s9693_s21 + $0x2cc] sm:$0xf]  ;;  %v6260_v31 = vor.u32 %v8244_v25, %v6257_v26  ;;  %v8333_v25 = vld [vmem:[%s9693_s21 + $0x394] sm:$0xf] }
  0xf5   : > { %v6513_v28 = vld [vmem:[%s9693_s21 + $0x2e8] sm:$0xf0]  ;;  %v6512_v30 = vor.u32 %v8312_v24, %v6511_v22  ;;  %v6223_v32 = vld [vmem:[%s9693_s21 + $0x88] sm:$0xf]  ;;  %v8337_v22 = vld [vmem:[%s9693_s21 + $0x3ac] sm:$0xf0] }
  0xf6   : > { %1750 = vmatpush.bf16.msrb.mxu1 %v6608_v55  ;;  %1776 = vmatpush.bf16.msrb.mxu3 %v6612_v60  ;;  %v8240_v33 = vld [vmem:[%s9693_s21 + $0xa4] sm:$0xf0]  ;;  %v6516_v35 = vor.u32 %v8308_v27, %v6513_v28  ;;  %v8236_v37 = vld [vmem:[%s9693_s21 + $0x8c] sm:$0xf]  ;;  %v6361_v24 = vld [vmem:[%s9693_s21 + $0x1b0] sm:$0xf0]  ;;  %v6616_v28 = vor.u32 %v8337_v22, %v6615_v20 }
  0xf7   : > { %v6479_v34 = vld [vmem:[%s9693_s21 + $0x288] sm:$0xf]  ;;  %v6225_v38 = vld [vmem:[%s9693_s21 + $0xa8] sm:$0xf0]  ;;  %v6224_v41 = vor.u32 %v8240_v33, %v6223_v32  ;;  %v6617_v26 = vld [vmem:[%s9693_s21 + $0x3b0] sm:$0xf0] }
  0xf8   : > { %1738 = vmatpush.bf16.msrb.mxu0 %v6320_v1  ;;  %1764 = vmatpush.bf16.msrb.mxu2 %v6324_v5  ;;  %v8304_v36 = vld [vmem:[%s9693_s21 + $0x2a4] sm:$0xf0]  ;;  %v8300_v39 = vld [vmem:[%s9693_s21 + $0x28c] sm:$0xf]  ;;  %v6228_v43 = vor.u32 %v8236_v37, %v6225_v38  ;;  %v6391_v1 = vld [vmem:[%s9693_s21 + $0x1d0] sm:$0xf]  ;;  %v6620_v33 = vor.u32 %v8333_v25, %v6617_v26 }
  0xf9   : > { %v6481_v40 = vld [vmem:[%s9693_s21 + $0x2a8] sm:$0xf0]  ;;  %v6480_v42 = vor.u32 %v8304_v36, %v6479_v34  ;;  %v6191_v44 = vld [vmem:[%s9693_s21 + $0x48] sm:$0xf]  ;;  %v8345_v5 = vld [vmem:[%s9693_s21 + $0x3ec] sm:$0xf0] }
  0xfa   : > { %1751 = vmatpush.bf16.msrb.mxu1 %v6576_v2  ;;  %1777 = vmatpush.bf16.msrb.mxu3 %v6580_v11  ;;  %v8232_v45 = vld [vmem:[%s9693_s21 + $0x64] sm:$0xf0]  ;;  %v6484_v47 = vor.u32 %v8300_v39, %v6481_v40  ;;  %v8228_v49 = vld [vmem:[%s9693_s21 + $0x4c] sm:$0xf]  ;;  %v8281_v2 = vld [vmem:[%s9693_s21 + $0x1ec] sm:$0xf0]  ;;  %v6648_v16 = vor.u32 %v8345_v5, %v6647_v3 }
  0xfb   : > { %v6447_v46 = vld [vmem:[%s9693_s21 + $0x248] sm:$0xf]  ;;  %v6193_v50 = vld [vmem:[%s9693_s21 + $0x68] sm:$0xf0]  ;;  %v6192_v53 = vor.u32 %v8232_v45, %v6191_v44  ;;  %v6392_v15 = vor.u32 %v8281_v2, %v6391_v1  ;;  %v6583_v32 = vld [vmem:[%s9693_s21 + $0x350] sm:$0xf] }
  0xfc   : > { %1739 = vmatpush.bf16.msrb.mxu0 %v6288_v17  ;;  %1765 = vmatpush.bf16.msrb.mxu2 %v6292_v19  ;;  %v8296_v48 = vld [vmem:[%s9693_s21 + $0x264] sm:$0xf0]  ;;  %v8292_v51 = vld [vmem:[%s9693_s21 + $0x24c] sm:$0xf]  ;;  %v6196_v57 = vor.u32 %v8228_v49, %v6193_v50  ;;  %v6396_v17 = vor.u32 %v8277_v6, %v6393_v7  ;;  %v8273_v19 = vld [vmem:[%s9693_s21 + $0x1ac] sm:$0xf0] }
  0xfd   : > { %v6449_v52 = vld [vmem:[%s9693_s21 + $0x268] sm:$0xf0]  ;;  %v6159_v54 = vld [vmem:[%s9693_s21 + $0x8] sm:$0xf]  ;;  %v6448_v56 = vor.u32 %v8296_v48, %v6447_v46  ;;  %v8329_v34 = vld [vmem:[%s9693_s21 + $0x36c] sm:$0xf0] }
  0xfe   : > { %1752 = vmatpush.bf16.msrb.mxu1 %v6544_v18  ;;  %1778 = vmatpush.bf16.msrb.mxu3 %v6548_v23  ;;  %v8224_v55 = vld [vmem:[%s9693_s21 + $0x24] sm:$0xf0]  ;;  %v8220_v60 = vld [vmem:[%s9693_s21 + $0xc] sm:$0xf]  ;;  %v6452_v61 = vor.u32 %v8292_v51, %v6449_v52  ;;  %v6359_v18 = vld [vmem:[%s9693_s21 + $0x190] sm:$0xf]  ;;  %v6584_v40 = vor.u32 %v8329_v34, %v6583_v32 }
  0xff   : > { %v6415_v58 = vld [vmem:[%s9693_s21 + $0x208] sm:$0xf]  ;;  %v6161_v62 = vld [vmem:[%s9693_s21 + $0x28] sm:$0xf0]  ;;  %v6160_v4 = vor.u32 %v8224_v55, %v6159_v54  ;;  %v8269_v23 = vld [vmem:[%s9693_s21 + $0x194] sm:$0xf]  ;;  %v6360_v27 = vor.u32 %v8273_v19, %v6359_v18 }
 0x100   : > { %1740 = vmatpush.bf16.msrb.mxu0 %v6256_v29  ;;  %1766 = vmatpush.bf16.msrb.mxu2 %v6260_v31  ;;  %v8288_v59 = vld [vmem:[%s9693_s21 + $0x224] sm:$0xf0]  ;;  %v8284_v63 = vld [vmem:[%s9693_s21 + $0x20c] sm:$0xf]  ;;  %v6164_v11 = vor.u32 %v8220_v60, %v6161_v62  ;;  %v6364_v29 = vor.u32 %v8269_v23, %v6361_v24  ;;  %v8265_v31 = vld [vmem:[%s9693_s21 + $0x16c] sm:$0xf0] }
 0x101   : > { %v6417_v0 = vld [vmem:[%s9693_s21 + $0x228] sm:$0xf0]  ;;  %v6416_v8 = vor.u32 %v8288_v59, %v6415_v58  ;;  %v6329_v36 = vld [vmem:[%s9693_s21 + $0x170] sm:$0xf0]  ;;  %v6551_v44 = vld [vmem:[%s9693_s21 + $0x310] sm:$0xf] }
 0x102   : > { %1753 = vmatpush.bf16.msrb.mxu1 %v6512_v30  ;;  %1779 = vmatpush.bf16.msrb.mxu3 %v6516_v35  ;;  %v6420_v14 = vor.u32 %v8284_v63, %v6417_v0  ;;  %v6327_v30 = vld [vmem:[%s9693_s21 + $0x150] sm:$0xf]  ;;  %v8261_v35 = vld [vmem:[%s9693_s21 + $0x154] sm:$0xf] }
 0x103   : > { %v8325_v37 = vld [vmem:[%s9693_s21 + $0x354] sm:$0xf]  ;;  %v6328_v39 = vor.u32 %v8265_v31, %v6327_v30  ;;  %v8321_v46 = vld [vmem:[%s9693_s21 + $0x32c] sm:$0xf0] }
 0x104   : > { %1741 = vmatpush.bf16.msrb.mxu0 %v6224_v41  ;;  %1767 = vmatpush.bf16.msrb.mxu2 %v6228_v43  ;;  %v6585_v38 = vld [vmem:[%s9693_s21 + $0x370] sm:$0xf0]  ;;  %v6332_v41 = vor.u32 %v8261_v35, %v6329_v36  ;;  %v8257_v43 = vld [vmem:[%s9693_s21 + $0x12c] sm:$0xf0]  ;;  %v6552_v52 = vor.u32 %v8321_v46, %v6551_v44  ;;  %v8342_v46 = vld [vmem:[%s9693_s21 + $0x3dc] sm:$0xf] }
 0x105   : > { %v6588_v45 = vor.u32 %v8325_v37, %v6585_v38  ;;  %v6297_v48 = vld [vmem:[%s9693_s21 + $0x130] sm:$0xf0]  ;;  %v6263_v54 = vld [vmem:[%s9693_s21 + $0xd0] sm:$0xf]  ;;  %v6399_v37 = vld [vmem:[%s9693_s21 + $0x1d8] sm:$0xf] }
 0x106   : > { %1754 = vmatpush.bf16.msrb.mxu1 %v6480_v42  ;;  %1780 = vmatpush.bf16.msrb.mxu3 %v6484_v47  ;;  %v6295_v42 = vld [vmem:[%s9693_s21 + $0x110] sm:$0xf]  ;;  %v8253_v47 = vld [vmem:[%s9693_s21 + $0x114] sm:$0xf]  ;;  %v8282_v38 = vld [vmem:[%s9693_s21 + $0x1f4] sm:$0xf0] }
 0x107   : > { %v8317_v49 = vld [vmem:[%s9693_s21 + $0x314] sm:$0xf]  ;;  %v6296_v51 = vor.u32 %v8257_v43, %v6295_v42  ;;  %v8249_v55 = vld [vmem:[%s9693_s21 + $0xec] sm:$0xf0]  ;;  %v8278_v42 = vld [vmem:[%s9693_s21 + $0x1dc] sm:$0xf] }
 0x108   : > { %1742 = vmatpush.bf16.msrb.mxu0 %v6192_v53  ;;  %1768 = vmatpush.bf16.msrb.mxu2 %v6196_v57  ;;  %v6553_v50 = vld [vmem:[%s9693_s21 + $0x330] sm:$0xf0]  ;;  %v6300_v53 = vor.u32 %v8253_v47, %v6297_v48  ;;  %v8313_v58 = vld [vmem:[%s9693_s21 + $0x2ec] sm:$0xf0]  ;;  %v6264_v63 = vor.u32 %v8249_v55, %v6263_v54  ;;  %v6401_v43 = vld [vmem:[%s9693_s21 + $0x1f8] sm:$0xf0] }
 0x109   : > { %v6556_v57 = vor.u32 %v8317_v49, %v6553_v50  ;;  %v8245_v59 = vld [vmem:[%s9693_s21 + $0xd4] sm:$0xf]  ;;  %v6231_v2 = vld [vmem:[%s9693_s21 + $0x90] sm:$0xf]  ;;  %v6657_v47 = vld [vmem:[%s9693_s21 + $0x3f8] sm:$0xf0]  ;;  %v6400_v49 = vor.u32 %v8282_v38, %v6399_v37 }
 0x10a   : > { %1755 = vmatpush.bf16.msrb.mxu1 %v6448_v56  ;;  %1781 = vmatpush.bf16.msrb.mxu3 %v6452_v61  ;;  %v6519_v56 = vld [vmem:[%s9693_s21 + $0x2d0] sm:$0xf]  ;;  %v6265_v60 = vld [vmem:[%s9693_s21 + $0xf0] sm:$0xf0]  ;;  %v6623_v54 = vld [vmem:[%s9693_s21 + $0x398] sm:$0xf]  ;;  %v6660_v55 = vor.u32 %v8342_v46, %v6657_v47 }
 0x10b   : > { %v8309_v61 = vld [vmem:[%s9693_s21 + $0x2d4] sm:$0xf]  ;;  %v6520_v0 = vor.u32 %v8313_v58, %v6519_v56  ;;  %v6268_v1 = vor.u32 %v8245_v59, %v6265_v60  ;;  %v8241_v3 = vld [vmem:[%s9693_s21 + $0xac] sm:$0xf0]  ;;  %v8338_v56 = vld [vmem:[%s9693_s21 + $0x3b4] sm:$0xf0] }
 0x10c   : > { %1743 = vmatpush.bf16.msrb.mxu0 %v6160_v4  ;;  %1769 = vmatpush.bf16.msrb.mxu2 %v6164_v11  ;;  %v6521_v62 = vld [vmem:[%s9693_s21 + $0x2f0] sm:$0xf0]  ;;  %v6487_v4 = vld [vmem:[%s9693_s21 + $0x290] sm:$0xf]  ;;  %v6232_v13 = vor.u32 %v8241_v3, %v6231_v2  ;;  %v6369_v58 = vld [vmem:[%s9693_s21 + $0x1b8] sm:$0xf0] }
 0x10d   : > { %v6524_v5 = vor.u32 %v8309_v61, %v6521_v62  ;;  %v8305_v6 = vld [vmem:[%s9693_s21 + $0x2ac] sm:$0xf0]  ;;  %v8237_v7 = vld [vmem:[%s9693_s21 + $0x94] sm:$0xf]  ;;  %v8334_v59 = vld [vmem:[%s9693_s21 + $0x39c] sm:$0xf]  ;;  %v6624_v62 = vor.u32 %v8338_v56, %v6623_v54 }
 0x10e   : > { %1756 = vmatpush.bf16.msrb.mxu1 %v6416_v8  ;;  %1782 = vmatpush.bf16.msrb.mxu3 %v6420_v14  ;;  %v6233_v8 = vld [vmem:[%s9693_s21 + $0xb0] sm:$0xf0]  ;;  %v6488_v14 = vor.u32 %v8305_v6, %v6487_v4  ;;  %v6455_v18 = vld [vmem:[%s9693_s21 + $0x250] sm:$0xf]  ;;  %v6625_v60 = vld [vmem:[%s9693_s21 + $0x3b8] sm:$0xf0] }
 0x10f   : > { %1770 = vmatmul.bf16.vlgmr.msrb.gmra.mxu2 %v9834_v9  ;;  %1744 = vmatmul.bf16.vlgmr.msrb.gmra.mxu0 %v9834_v9  ;;  %v8301_v11 = vld [vmem:[%s9693_s21 + $0x294] sm:$0xf]  ;;  %v8297_v20 = vld [vmem:[%s9693_s21 + $0x26c] sm:$0xf0]  ;;  %v6591_v2 = vld [vmem:[%s9693_s21 + $0x358] sm:$0xf]  ;;  %v6628_v3 = vor.u32 %v8334_v59, %v6625_v60 }
 0x110   : > { %1788 = vmatpush.bf16.msra.mxu0 %v6392_v15  ;;  %1814 = vmatpush.bf16.msra.mxu2 %v6396_v17  ;;  %v6489_v12 = vld [vmem:[%s9693_s21 + $0x2b0] sm:$0xf0]  ;;  %v6236_v15 = vor.u32 %v8237_v7, %v6233_v8  ;;  %v8233_v17 = vld [vmem:[%s9693_s21 + $0x6c] sm:$0xf0]  ;;  %v8330_v4 = vld [vmem:[%s9693_s21 + $0x374] sm:$0xf0] }
 0x111   : > { %1783 = vmatmul.bf16.vlgmr.msrb.gmra.mxu3 %v9836_v10  ;;  %1757 = vmatmul.bf16.vlgmr.msrb.gmra.mxu1 %v9836_v10  ;;  %v6492_v19 = vor.u32 %v8301_v11, %v6489_v12  ;;  %v6201_v22 = vld [vmem:[%s9693_s21 + $0x70] sm:$0xf0]  ;;  %v6167_v26 = vld [vmem:[%s9693_s21 + $0x10] sm:$0xf]  ;;  %v6337_v6 = vld [vmem:[%s9693_s21 + $0x178] sm:$0xf0]  ;;  %v6592_v12 = vor.u32 %v8330_v4, %v6591_v2 }
 0x112   : > { %1801 = vmatpush.bf16.msra.mxu1 %v6648_v16  ;;  %1827 = vmatpush.bf16.msra.mxu3 %v6652_v21  ;;  %v6199_v16 = vld [vmem:[%s9693_s21 + $0x50] sm:$0xf]  ;;  %v8229_v21 = vld [vmem:[%s9693_s21 + $0x54] sm:$0xf]  ;;  %v8326_v7 = vld [vmem:[%s9693_s21 + $0x35c] sm:$0xf] }
 0x113   : > { %v8293_v23 = vld [vmem:[%s9693_s21 + $0x254] sm:$0xf]  ;;  %v6200_v25 = vor.u32 %v8233_v17, %v6199_v16  ;;  %v6423_v30 = vld [vmem:[%s9693_s21 + $0x210] sm:$0xf]  ;;  %v6593_v8 = vld [vmem:[%s9693_s21 + $0x378] sm:$0xf0] }
 0x114   : > { %1789 = vmatpush.bf16.msra.mxu0 %v6360_v27  ;;  %1815 = vmatpush.bf16.msra.mxu2 %v6364_v29  ;;  %v6457_v24 = vld [vmem:[%s9693_s21 + $0x270] sm:$0xf0]  ;;  %v8225_v27 = vld [vmem:[%s9693_s21 + $0x2c] sm:$0xf0]  ;;  %v6204_v29 = vor.u32 %v8229_v21, %v6201_v22  ;;  %v6559_v16 = vld [vmem:[%s9693_s21 + $0x318] sm:$0xf]  ;;  %v6596_v17 = vor.u32 %v8326_v7, %v6593_v8 }
 0x115   : > { %v8289_v31 = vld [vmem:[%s9693_s21 + $0x22c] sm:$0xf0]  ;;  %v8221_v32 = vld [vmem:[%s9693_s21 + $0x14] sm:$0xf]  ;;  %v8318_v21 = vld [vmem:[%s9693_s21 + $0x31c] sm:$0xf] }
 0x116   : > { %1802 = vmatpush.bf16.msra.mxu1 %v6616_v28  ;;  %1828 = vmatpush.bf16.msra.mxu3 %v6620_v33  ;;  %v6456_v28 = vor.u32 %v8297_v20, %v6455_v18  ;;  %v6460_v33 = vor.u32 %v8293_v23, %v6457_v24  ;;  %v6169_v34 = vld [vmem:[%s9693_s21 + $0x30] sm:$0xf0]  ;;  %v6424_v44 = vor.u32 %v8289_v31, %v6423_v30  ;;  %v8322_v18 = vld [vmem:[%s9693_s21 + $0x334] sm:$0xf0]  ;;  %v6305_v20 = vld [vmem:[%s9693_s21 + $0x138] sm:$0xf0] }
 0x117   : > { %v8285_v35 = vld [vmem:[%s9693_s21 + $0x214] sm:$0xf]  ;;  %v6561_v22 = vld [vmem:[%s9693_s21 + $0x338] sm:$0xf0]  ;;  %v6560_v24 = vor.u32 %v8322_v18, %v6559_v16  ;;  %v8314_v30 = vld [vmem:[%s9693_s21 + $0x2f4] sm:$0xf0] }
 0x118   : > { %1790 = vmatpush.bf16.msra.mxu0 %v6328_v39  ;;  %1816 = vmatpush.bf16.msra.mxu2 %v6332_v41  ;;  %v6425_v36 = vld [vmem:[%s9693_s21 + $0x230] sm:$0xf0]  ;;  %v6655_v39 = vld [vmem:[%s9693_s21 + $0x3d8] sm:$0xf]  ;;  %v8246_v31 = vld [vmem:[%s9693_s21 + $0xdc] sm:$0xf] }
 0x119   : > { %v8346_v41 = vld [vmem:[%s9693_s21 + $0x3f4] sm:$0xf0]  ;;  %v6428_v48 = vor.u32 %v8285_v35, %v6425_v36  ;;  %v6497_v46 = vld [vmem:[%s9693_s21 + $0x2b8] sm:$0xf0] }
 0x11a   : > { %1803 = vmatpush.bf16.msra.mxu1 %v6584_v40  ;;  %1829 = vmatpush.bf16.msra.mxu3 %v6588_v45  ;;  %v6168_v40 = vor.u32 %v8225_v27, %v6167_v26  ;;  %v6172_v45 = vor.u32 %v8221_v32, %v6169_v34  ;;  %v6656_v50 = vor.u32 %v8346_v41, %v6655_v39  ;;  %v6271_v26 = vld [vmem:[%s9693_s21 + $0xd8] sm:$0xf]  ;;  %v6273_v32 = vld [vmem:[%s9693_s21 + $0xf8] sm:$0xf0] }
 0x11b   : > { %v8250_v27 = vld [vmem:[%s9693_s21 + $0xf4] sm:$0xf0]  ;;  %v6529_v34 = vld [vmem:[%s9693_s21 + $0x2f8] sm:$0xf0]  ;;  %v6276_v37 = vor.u32 %v8246_v31, %v6273_v32  ;;  %v907_v31 = vld [vmem:[#allocation2 + $0x10] sm:$0xff] }
 0x11c   : > { %1791 = vmatpush.bf16.msra.mxu0 %v6296_v51  ;;  %1817 = vmatpush.bf16.msra.mxu2 %v6300_v53  ;;  %v6404_v51 = vor.u32 %v8278_v42, %v6401_v43  ;;  %v8274_v53 = vld [vmem:[%s9693_s21 + $0x1b4] sm:$0xf0]  ;;  %v6272_v35 = vor.u32 %v8250_v27, %v6271_v26  ;;  %v8238_v43 = vld [vmem:[%s9693_s21 + $0x9c] sm:$0xf] }
 0x11d   : > { %v6239_v38 = vld [vmem:[%s9693_s21 + $0x98] sm:$0xf]  ;;  %v6209_v56 = vld [vmem:[%s9693_s21 + $0x78] sm:$0xf0] }
 0x11e   : > { %1804 = vmatpush.bf16.msra.mxu1 %v6552_v52  ;;  %1830 = vmatpush.bf16.msra.mxu3 %v6556_v57  ;;  %v6367_v52 = vld [vmem:[%s9693_s21 + $0x198] sm:$0xf]  ;;  %v8270_v57 = vld [vmem:[%s9693_s21 + $0x19c] sm:$0xf] }
 0x11f   : > { %v6368_v61 = vor.u32 %v8274_v53, %v6367_v52  ;;  %v8242_v39 = vld [vmem:[%s9693_s21 + $0xb4] sm:$0xf0]  ;;  %v6177_v4 = vld [vmem:[%s9693_s21 + $0x38] sm:$0xf0] }
 0x120   : > { %1792 = vmatpush.bf16.msra.mxu0 %v6264_v63  ;;  %1818 = vmatpush.bf16.msra.mxu2 %v6268_v1  ;;  %v6372_v63 = vor.u32 %v8270_v57, %v6369_v58  ;;  %v8266_v1 = vld [vmem:[%s9693_s21 + $0x174] sm:$0xf0]  ;;  %v6240_v47 = vor.u32 %v8242_v39, %v6239_v38  ;;  %v8294_v57 = vld [vmem:[%s9693_s21 + $0x25c] sm:$0xf] }
 0x121   : > { %v8306_v42 = vld [vmem:[%s9693_s21 + $0x2b4] sm:$0xf0]  ;;  %v6465_v58 = vld [vmem:[%s9693_s21 + $0x278] sm:$0xf0] }
 0x122   : > { %1805 = vmatpush.bf16.msra.mxu1 %v6520_v0  ;;  %1831 = vmatpush.bf16.msra.mxu3 %v6524_v5  ;;  %v6335_v0 = vld [vmem:[%s9693_s21 + $0x158] sm:$0xf]  ;;  %v8262_v5 = vld [vmem:[%s9693_s21 + $0x15c] sm:$0xf] }
 0x123   : > { %v6336_v11 = vor.u32 %v8266_v1, %v6335_v0  ;;  %v6463_v52 = vld [vmem:[%s9693_s21 + $0x258] sm:$0xf]  ;;  %v6468_v1 = vor.u32 %v8294_v57, %v6465_v58 }
 0x124   : > { %1793 = vmatpush.bf16.msra.mxu0 %v6232_v13  ;;  %1819 = vmatpush.bf16.msra.mxu2 %v6236_v15  ;;  %v6340_v13 = vor.u32 %v8262_v5, %v6337_v6  ;;  %v8258_v15 = vld [vmem:[%s9693_s21 + $0x134] sm:$0xf0]  ;;  %v8286_v5 = vld [vmem:[%s9693_s21 + $0x21c] sm:$0xf] }
 0x125   : > { %v8298_v54 = vld [vmem:[%s9693_s21 + $0x274] sm:$0xf0]  ;;  %v6433_v6 = vld [vmem:[%s9693_s21 + $0x238] sm:$0xf0] }
 0x126   : > { %1806 = vmatpush.bf16.msra.mxu1 %v6488_v14  ;;  %1832 = vmatpush.bf16.msra.mxu3 %v6492_v19  ;;  %v6303_v14 = vld [vmem:[%s9693_s21 + $0x118] sm:$0xf]  ;;  %v8254_v19 = vld [vmem:[%s9693_s21 + $0x11c] sm:$0xf]  ;;  %v6464_v60 = vor.u32 %v8298_v54, %v6463_v52  ;;  %v910_v54 = vld [vmem:[#allocation2 + $0x28] sm:$0xff] }
 0x127   : > { %v6304_v23 = vor.u32 %v8258_v15, %v6303_v14  ;;  %v6431_v0 = vld [vmem:[%s9693_s21 + $0x218] sm:$0xf]  ;;  %v904_v15 = vld [vmem:[#allocation2 + $0x30] sm:$0xff] }
 0x128   : > { %1794 = vmatpush.bf16.msra.mxu0 %v6200_v25  ;;  %1820 = vmatpush.bf16.msra.mxu2 %v6204_v29  ;;  %v6308_v25 = vor.u32 %v8254_v19, %v6305_v20  ;;  %v6564_v29 = vor.u32 %v8318_v21, %v6561_v22  ;;  %v8290_v2 = vld [vmem:[%s9693_s21 + $0x234] sm:$0xf0] }
 0x129   : > { %v6432_v8 = vor.u32 %v8290_v2, %v6431_v0  ;;  %v905_v19 = vld [vmem:[#allocation2] sm:$0xff] }
 0x12a   : > { %1807 = vmatpush.bf16.msra.mxu1 %v6456_v28  ;;  %1833 = vmatpush.bf16.msra.mxu3 %v6460_v33  ;;  %v6527_v28 = vld [vmem:[%s9693_s21 + $0x2d8] sm:$0xf]  ;;  %v8310_v33 = vld [vmem:[%s9693_s21 + $0x2dc] sm:$0xf] }
 0x12b   : > { %v6528_v36 = vor.u32 %v8314_v30, %v6527_v28  ;;  %v6532_v41 = vor.u32 %v8310_v33, %v6529_v34 }
 0x12c   : > { %1795 = vmatpush.bf16.msra.mxu0 %v6168_v40  ;;  %1821 = vmatpush.bf16.msra.mxu2 %v6172_v45  ;;  %v6495_v40 = vld [vmem:[%s9693_s21 + $0x298] sm:$0xf]  ;;  %v8302_v45 = vld [vmem:[%s9693_s21 + $0x29c] sm:$0xf] }
 0x12d   : > { %v6500_v53 = vor.u32 %v8302_v45, %v6497_v46  ;;  %v909_v45 = vld [vmem:[#allocation2 + $0x20] sm:$0xff] }
 0x12e   : > { %1808 = vmatpush.bf16.msra.mxu1 %v6424_v44  ;;  %1834 = vmatpush.bf16.msra.mxu3 %v6428_v48  ;;  %v6241_v44 = vld [vmem:[%s9693_s21 + $0xb8] sm:$0xf0]  ;;  %v6496_v48 = vor.u32 %v8306_v42, %v6495_v40  ;;  %v908_v40 = vld [vmem:[#allocation2 + $0x8] sm:$0xff] }
 0x12f   : > { %1822 = vmatmul.bf16.vlgmr.msra.gmra.mxu2 %v9834_v9  ;;  %1796 = vmatmul.bf16.vlgmr.msra.gmra.mxu0 %v9834_v9 }
 0x130   : > { %1840 = vmatpush.bf16.msrb.mxu0 %v6400_v49  ;;  %1866 = vmatpush.bf16.msrb.mxu2 %v6404_v51  ;;  %v6244_v49 = vor.u32 %v8238_v43, %v6241_v44  ;;  %v8234_v51 = vld [vmem:[%s9693_s21 + $0x74] sm:$0xf0] }
 0x131   : > { %1835 = vmatmul.bf16.vlgmr.msra.gmra.mxu3 %v9836_v10  ;;  %1809 = vmatmul.bf16.vlgmr.msra.gmra.mxu1 %v9836_v10 }
 0x132   : > { %1853 = vmatpush.bf16.msrb.mxu1 %v6656_v50  ;;  %1879 = vmatpush.bf16.msrb.mxu3 %v6660_v55  ;;  %v6207_v50 = vld [vmem:[%s9693_s21 + $0x58] sm:$0xf]  ;;  %v8230_v55 = vld [vmem:[%s9693_s21 + $0x5c] sm:$0xf] }
 0x133   : > { %v6208_v59 = vor.u32 %v8234_v51, %v6207_v50 }
 0x134   : > { %1841 = vmatpush.bf16.msrb.mxu0 %v6368_v61  ;;  %1867 = vmatpush.bf16.msrb.mxu2 %v6372_v63  ;;  %v6212_v61 = vor.u32 %v8230_v55, %v6209_v56  ;;  %v8226_v63 = vld [vmem:[%s9693_s21 + $0x34] sm:$0xf0] }
 0x136   : > { %1854 = vmatpush.bf16.msrb.mxu1 %v6624_v62  ;;  %1880 = vmatpush.bf16.msrb.mxu3 %v6628_v3  ;;  %v6175_v62 = vld [vmem:[%s9693_s21 + $0x18] sm:$0xf]  ;;  %v8222_v3 = vld [vmem:[%s9693_s21 + $0x1c] sm:$0xf] }
 0x137   : > { %v6176_v7 = vor.u32 %v8226_v63, %v6175_v62 }
 0x138   : > { %1842 = vmatpush.bf16.msrb.mxu0 %v6336_v11  ;;  %1868 = vmatpush.bf16.msrb.mxu2 %v6340_v13  ;;  %v6180_v11 = vor.u32 %v8222_v3, %v6177_v4 }
 0x13a   : > { %1855 = vmatpush.bf16.msrb.mxu1 %v6592_v12  ;;  %1881 = vmatpush.bf16.msrb.mxu3 %v6596_v17  ;;  %v6436_v12 = vor.u32 %v8286_v5, %v6433_v6 }
 0x13c   : > { %1843 = vmatpush.bf16.msrb.mxu0 %v6304_v23  ;;  %1869 = vmatpush.bf16.msrb.mxu2 %v6308_v25 }
 0x13e   : > { %1856 = vmatpush.bf16.msrb.mxu1 %v6560_v24  ;;  %1882 = vmatpush.bf16.msrb.mxu3 %v6564_v29 }
 0x140   : > { %1844 = vmatpush.bf16.msrb.mxu0 %v6272_v35  ;;  %1870 = vmatpush.bf16.msrb.mxu2 %v6276_v37 }
 0x142   : > { %1857 = vmatpush.bf16.msrb.mxu1 %v6528_v36  ;;  %1883 = vmatpush.bf16.msrb.mxu3 %v6532_v41 }
 0x144   : > { %1845 = vmatpush.bf16.msrb.mxu0 %v6240_v47  ;;  %1871 = vmatpush.bf16.msrb.mxu2 %v6244_v49 }
 0x146   : > { %1858 = vmatpush.bf16.msrb.mxu1 %v6496_v48  ;;  %1884 = vmatpush.bf16.msrb.mxu3 %v6500_v53 }
 0x148   : > { %1846 = vmatpush.bf16.msrb.mxu0 %v6208_v59  ;;  %1872 = vmatpush.bf16.msrb.mxu2 %v6212_v61  ;;  %v911_v59 = vld [vmem:[#allocation2 + $0x38] sm:$0xff] }
 0x14a   : > { %1859 = vmatpush.bf16.msrb.mxu1 %v6464_v60  ;;  %1885 = vmatpush.bf16.msrb.mxu3 %v6468_v1 }
 0x14c   : > { %1847 = vmatpush.bf16.msrb.mxu0 %v6176_v7  ;;  %1873 = vmatpush.bf16.msrb.mxu2 %v6180_v11 }
 0x14e   : > { %1860 = vmatpush.bf16.msrb.mxu1 %v6432_v8  ;;  %1886 = vmatpush.bf16.msrb.mxu3 %v6436_v12 }
 0x14f   : > { %1848 = vmatmul.bf16.vlgmr.msrb.gmra.mxu0 %v9834_v9  ;;  %1874 = vmatmul.bf16.vlgmr.msrb.gmra.mxu2 %v9834_v9  ;;  %v906_v9 = vld [vmem:[#allocation2 + $0x18] sm:$0xff] }
 0x151   : > { %1861 = vmatmul.bf16.vlgmr.msrb.gmra.mxu1 %v9836_v10  ;;  %1887 = vmatmul.bf16.vlgmr.msrb.gmra.mxu3 %v9836_v10 }
 0x16c   : > { %v1693_v14 = vpop.f32.mrf.mxu0 }
 0x16e   : > { %v1706_v13 = vpop.f32.mrf.mxu1 }
 0x16f   : > { %v1707_v16 = vadd.f32 %v1706_v13, %v1693_v14 }
 0x171   : > { %v1892_v17 = vadd.f32 %v1707_v16, %v904_v15 }
 0x172   : > { %v1719_v18 = vpop.f32.mrf.mxu2 }
 0x173   : > { %1900 = vst [vmem:[#allocation2 + $0x30] sm:$0xff] %v1892_v17 }
 0x174   : > { %v1732_v20 = vpop.f32.mrf.mxu3  ;;  %v1695_v24 = vpop.f32.mrf.mxu0 }
 0x175   : > { %v1733_v21 = vadd.f32 %v1732_v20, %v1719_v18 }
 0x176   : > { %v1708_v23 = vpop.f32.mrf.mxu1 }
 0x177   : > { %v1893_v22 = vadd.f32 %v1733_v21, %v905_v19 }
 0x179   : > { %1901 = vst [vmem:[#allocation2] sm:$0xff] %v1893_v22 }
 0x17a   : > { %v1721_v25 = vpop.f32.mrf.mxu2 }
 0x17c   : > { %v1734_v26 = vpop.f32.mrf.mxu3 }
 0x18c   : > { %v1745_v27 = vpop.f32.mrf.mxu0 }
 0x18e   : > { %v1758_v28 = vpop.f32.mrf.mxu1 }
 0x18f   : > { %v1759_v10 = vadd.f32 %v1758_v28, %v1745_v27 }
 0x191   : > { %v1894_v29 = vadd.f32 %v1759_v10, %v906_v9 }
 0x192   : > { %v1771_v30 = vpop.f32.mrf.mxu2 }
 0x193   : > { %1902 = vst [vmem:[#allocation2 + $0x18] sm:$0xff] %v1894_v29 }
 0x194   : > { %v1784_v32 = vpop.f32.mrf.mxu3  ;;  %v1747_v34 = vpop.f32.mrf.mxu0 }
 0x195   : > { %v1785_v33 = vadd.f32 %v1784_v32, %v1771_v30 }
 0x196   : > { %v1760_v36 = vpop.f32.mrf.mxu1 }
 0x197   : > { %v1895_v35 = vadd.f32 %v1785_v33, %v907_v31 }
 0x199   : > { %1903 = vst [vmem:[#allocation2 + $0x10] sm:$0xff] %v1895_v35 }
 0x19a   : > { %v1773_v37 = vpop.f32.mrf.mxu2 }
 0x19c   : > { %v1786_v38 = vpop.f32.mrf.mxu3 }
 0x1ac   : > { %v1797_v39 = vpop.f32.mrf.mxu0 }
 0x1ae   : > { %v1810_v41 = vpop.f32.mrf.mxu1 }
 0x1af   : > { %v1811_v42 = vadd.f32 %v1810_v41, %v1797_v39 }
 0x1b1   : > { %v1896_v43 = vadd.f32 %v1811_v42, %v908_v40 }
 0x1b2   : > { %v1823_v44 = vpop.f32.mrf.mxu2 }
 0x1b3   : > { %1904 = vst [vmem:[#allocation2 + $0x8] sm:$0xff] %v1896_v43 }
 0x1b4   : > { %v1836_v46 = vpop.f32.mrf.mxu3  ;;  %v1799_v48 = vpop.f32.mrf.mxu0 }
 0x1b5   : > { %v1837_v47 = vadd.f32 %v1836_v46, %v1823_v44 }
 0x1b6   : > { %v1812_v50 = vpop.f32.mrf.mxu1 }
 0x1b7   : > { %v1897_v49 = vadd.f32 %v1837_v47, %v909_v45 }
 0x1b9   : > { %1905 = vst [vmem:[#allocation2 + $0x20] sm:$0xff] %v1897_v49 }
 0x1ba   : > { %v1825_v51 = vpop.f32.mrf.mxu2 }
 0x1bc   : > { %v1838_v52 = vpop.f32.mrf.mxu3 }
 0x1cc   : > { %v1849_v53 = vpop.f32.mrf.mxu0 }
 0x1ce   : > { %v1862_v55 = vpop.f32.mrf.mxu1 }
 0x1cf   : > { %v1863_v56 = vadd.f32 %v1862_v55, %v1849_v53 }
 0x1d1   : > { %v1898_v57 = vadd.f32 %v1863_v56, %v910_v54 }
 0x1d2   : > { %v1875_v58 = vpop.f32.mrf.mxu2 }
 0x1d3   : > { %1906 = vst [vmem:[#allocation2 + $0x28] sm:$0xff] %v1898_v57 }
 0x1d4   : > { %v1888_v60 = vpop.f32.mrf.mxu3  ;;  %v1851_v61 = vpop.f32.mrf.mxu0 }
 0x1d5   : > { %v1889_v62 = vadd.f32 %v1888_v60, %v1875_v58 }
 0x1d6   : > { %v1864_v63 = vpop.f32.mrf.mxu1 }
 0x1d7   : > { %v1899_v0 = vadd.f32 %v1889_v62, %v911_v59 }
 0x1d9   : > { %1907 = vst [vmem:[#allocation2 + $0x38] sm:$0xff] %v1899_v0 }
 0x1da   : > { %v1877_v1 = vpop.f32.mrf.mxu2 }
 0x1dc   : > { %v1890_v2 = vpop.f32.mrf.mxu3 }
 0x1dd PF: > { %p6661_p4 = scmp.ne.s32.totalorder %s9484_s2, 2 }
 0x1de   : > { %s10929_s14 = sld [smem:[#allocation32_spill]] (!%p6661_p4)  ;;  %s9348_s30 = smov (!%p6661_p4), 16  }
 0x1df   : > { %1911 = sbr.rel (%p6661_p4) target bundleno = 2547 (0x9f3), region = 144  ;;  %s10930_s18 = sld [smem:[#allocation36_spill]] (!%p6661_p4) }
 0x1e0   : > { %s10931_s5 = sld [smem:[#allocation37_spill]] (!%p6661_p4)  ;;  %s9349_s26 = smov (!%p6661_p4), 32  }
 0x1e1   : > { %s10932_s21 = sld [smem:[#allocation42_spill]] (!%p6661_p4) }
 0x1e2   : > { %s10933_s28 = sld [smem:[#allocation43_spill]] (!%p6661_p4) }
 0x1e3   : > { %s10935_s4 = sld [smem:[#allocation47_spill]] (!%p6661_p4) }
 0x1e4   : > { %v1923_v3 = vld [vmem:[#allocation8 + $0x10] sm:$0xff]  ;;  %v1912_v4 = vld [vmem:[%s10929_s14] sm:$0xff]  ;;  %vm1929_vm0 = vcmask 64512   ;;  %v1921_v5 = vld [vmem:[#allocation8] sm:$0xff]  ;;  %v9346_v62 = vmov 1024.0   ;;  %vm3516_vm9 = vcmask 130048  }
 0x1e5   : > { %1988 = vmatpush.msra.mxu2 %v1923_v3  ;;  %1948 = vmatpush.msra.mxu0 %v1921_v5  ;;  %v1922_v6 = vld [vmem:[#allocation8 + $0x8] sm:$0xff]  ;;  %v1924_v7 = vld [vmem:[#allocation8 + $0x18] sm:$0xff]  ;;  %v1927_v8 = vld [vmem:[#allocation8 + $0x30] sm:$0xff]  ;;  %8899 = vrcp.f32 %v9346_v62  ;;  %vm4793_vm13 = vcmask 523264   ;;  %vm4829_vm14 = vcmask 261120  }
 0x1e6   : > { %6664 = vmatmul.msk.f32.vlgmr.msra.gmra.mxu2 %vm1929_vm0, %v1912_v4  ;;  %1968 = vmatpush.msra.mxu1 %v1922_v6  ;;  %v1925_v11 = vld [vmem:[#allocation8 + $0x20] sm:$0xff]  ;;  %v1928_v12 = vld [vmem:[#allocation8 + $0x38] sm:$0xff]  ;;  %v1926_v13 = vld [vmem:[#allocation8 + $0x28] sm:$0xff] }
 0x1e7   : > { %2008 = vmatpush.msra.mxu3 %v1924_v7  ;;  %6662 = vmatmul.msk.f32.vlgmr.msra.gmra.mxu0 %vm1929_vm0, %v1912_v4  ;;  %v2101_v14 = vld [vmem:[#allocation17] ss:$8 sm:$0xf] }
 0x1e8   : > { %6663 = vmatmul.msk.f32.vlgmr.msra.gmra.mxu1 %vm1929_vm0, %v1912_v4  ;;  %6665 = vmatmul.msk.f32.vlgmr.msra.gmra.mxu3 %vm1929_vm0, %v1912_v4  ;;  %v2102_v15 = vld [vmem:[#allocation17] ss:$8 sm:$0xf0]  ;;  %s10934_s12 = smov %s10933_s28 }
 0x1e9   : > { %2068 = vmatpush.msrb.mxu2 %v1927_v8  ;;  %2028 = vmatpush.msrb.mxu0 %v1925_v11  ;;  %v2103_v16 = vor.u32 %v2102_v15, %v2101_v14  ;;  %v1913_v17 = vld [vmem:[#allocation2 + $0x30] sm:$0xff]  ;;  %v1914_v18 = vld [vmem:[#allocation2] sm:$0xff]  ;;  %v1915_v25 = vld [vmem:[#allocation2 + $0x18] sm:$0xff] }
 0x1ea   : > { %2088 = vmatpush.msrb.mxu3 %v1928_v12  ;;  %2048 = vmatpush.msrb.mxu1 %v1926_v13  ;;  %v1916_v10 = vld [vmem:[#allocation2 + $0x10] sm:$0xff]  ;;  %v1917_v31 = vld [vmem:[#allocation2 + $0x8] sm:$0xff]  ;;  %v1918_v34 = vld [vmem:[#allocation2 + $0x20] sm:$0xff] }
 0x1eb   : > { %v2105_v20 = vperm.slane %v2103_v16, 0  ;;  %v2106_v21 = vperm.slane %v2103_v16, 1  ;;  %v2107_v9 = vperm.slane %v2103_v16, 2  ;;  %v2108_v30 = vperm.slane %v2103_v16, 3  ;;  %v1919_v46 = vld [vmem:[#allocation2 + $0x28] sm:$0xff]  ;;  %v1920_v51 = vld [vmem:[#allocation2 + $0x38] sm:$0xff]  ;;  %v8900_v63 = vpop.eup %8899 }
 0x1ec   : > { %v2109_v33 = vperm.slane %v2103_v16, 4  ;;  %v2110_v39 = vperm.slane %v2103_v16, 5  ;;  %v2111_v49 = vperm.slane %v2103_v16, 6  ;;  %v2112_v54 = vperm.slane %v2103_v16, 7  ;;  %v6728_v2 = vld [vmem:[#allocation9 + $0x70] sm:$0xf] }
 0x1ed   : > { %v2147_v0 = vmul.f32 1024.0, %v8900_v63  ;;  %v8362_v3 = vld [vmem:[#allocation9 + $0x74] sm:$0xf0]  ;;  %v6856_v8 = vld [vmem:[#allocation9 + $0x170] sm:$0xf]  ;;  %vm2151_vm1 = vweird.f32 %v8900_v63 }
 0x1ee   : > { %6668 = vmatmul.msk.f32.vlgmr.msrb.gmra.mxu2 %vm1929_vm0, %v1912_v4  ;;  %v6729_v6 = vor.u32 %v8362_v3, %v6728_v2  ;;  %v8378_v7 = vld [vmem:[#allocation9 + $0xf4] sm:$0xf0]  ;;  %v6920_v14 = vld [vmem:[#allocation9 + $0x1f0] sm:$0xf]  ;;  %v6720_v16 = vld [vmem:[#allocation9 + $0x60] sm:$0xf] }
 0x1ef   : > { %6666 = vmatmul.msk.f32.vlgmr.msrb.gmra.mxu0 %vm1929_vm0, %v1912_v4  ;;  %v2148_v1 = vsub.f32 1.0, %v2147_v0  ;;  %v8394_v11 = vld [vmem:[#allocation9 + $0x174] sm:$0xf0]  ;;  %v6760_v0 = vld [vmem:[#allocation9 + $0xb0] sm:$0xf] }
 0x1f0   : > { %6669 = vmatmul.msk.f32.vlgmr.msrb.gmra.mxu3 %vm1929_vm0, %v1912_v4  ;;  %6667 = vmatmul.msk.f32.vlgmr.msrb.gmra.mxu1 %vm1929_vm0, %v1912_v4  ;;  %v6792_v4 = vld [vmem:[#allocation9 + $0xf0] sm:$0xf]  ;;  %v6857_v13 = vor.u32 %v8394_v11, %v6856_v8  ;;  %v8410_v15 = vld [vmem:[#allocation9 + $0x1f4] sm:$0xf0] }
 0x1f1   : > { %v2149_v5 = vmul.f32 %v8900_v63, %v2148_v1  ;;  %v6793_v12 = vor.u32 %v8378_v7, %v6792_v4  ;;  %3042 = vmatpush.bf16.msra.mxu0 %v6729_v6  ;;  %v8354_v62 = vld [vmem:[#allocation9 + $0x34] sm:$0xf0]  ;;  %v6824_v6 = vld [vmem:[#allocation9 + $0x130] sm:$0xf] }
 0x1f2   : > { %3068 = vmatpush.bf16.msra.mxu2 %v6857_v13  ;;  %v8370_v1 = vld [vmem:[#allocation9 + $0xb4] sm:$0xf0]  ;;  %v6888_v11 = vld [vmem:[#allocation9 + $0x1b0] sm:$0xf] }
 0x1f3   : > { %3055 = vmatpush.bf16.msra.mxu1 %v6793_v12  ;;  %v8386_v7 = vld [vmem:[#allocation9 + $0x134] sm:$0xf0] }
 0x1f4   : > { %v8402_v12 = vld [vmem:[#allocation9 + $0x1b4] sm:$0xf0] }
 0x264   : > { %v1950_v19 = vpop.f32.mrf.mxu0 }
 0x265   : > { %v2093_v22 = vadd.f32 %v1950_v19, %v1913_v17  ;;  %v1970_v23 = vpop.f32.mrf.mxu1  ;;  %v6921_v17 = vor.u32 %v8410_v15, %v6920_v14  ;;  %v6784_v19 = vld [vmem:[#allocation9 + $0xe0] sm:$0xf]  ;;  %v8352_v15 = vld [vmem:[#allocation9 + $0x24] sm:$0xf0] }
 0x266   : > { %v2094_v24 = vadd.f32 %v1970_v23, %v1914_v18  ;;  %v8360_v18 = vld [vmem:[#allocation9 + $0x64] sm:$0xf0]  ;;  %v6848_v23 = vld [vmem:[#allocation9 + $0x160] sm:$0xf] }
 0x267   : > { %v10031_v26 = vadd.f32 %v2105_v20, %v2093_v22  ;;  %v8376_v20 = vld [vmem:[#allocation9 + $0xe4] sm:$0xf0]  ;;  %3081 = vmatpush.bf16.msra.mxu3 %v6921_v17  ;;  %v6688_v14 = vld [vmem:[#allocation9 + $0x20] sm:$0xf] }
 0x268   : > { %v10033_v27 = vadd.f32 %v2106_v21, %v2094_v24  ;;  %v6721_v21 = vor.u32 %v8360_v18, %v6720_v16  ;;  %v6785_v22 = vor.u32 %v8376_v20, %v6784_v19  ;;  %v8392_v24 = vld [vmem:[#allocation9 + $0x164] sm:$0xf0]  ;;  %v6825_v16 = vor.u32 %v8386_v7, %v6824_v6  ;;  %v6752_v17 = vld [vmem:[#allocation9 + $0xa0] sm:$0xf] }
 0x269   : > { %v1990_v28 = vpop.f32.mrf.mxu2  ;;  %v8368_v18 = vld [vmem:[#allocation9 + $0xa4] sm:$0xf0]  ;;  %v6864_v7 = vld [vmem:[#allocation9 + $0x180] sm:$0xf] }
 0x26a   : > { %v2095_v29 = vadd.f32 %v1990_v28, %v1915_v25  ;;  %v2137_v35 = vadd.f32 %v10033_v27, %v10031_v26  ;;  %v6912_v25 = vld [vmem:[#allocation9 + $0x1e0] sm:$0xf]  ;;  %v6849_v28 = vor.u32 %v8392_v24, %v6848_v23  ;;  %3043 = vmatpush.bf16.msra.mxu0 %v6721_v21  ;;  %3056 = vmatpush.bf16.msra.mxu1 %v6785_v22  ;;  %v8384_v23 = vld [vmem:[#allocation9 + $0x124] sm:$0xf0] }
 0x26b   : > { %v2010_v32 = vpop.f32.mrf.mxu3  ;;  %v6889_v21 = vor.u32 %v8402_v12, %v6888_v11  ;;  %v6816_v22 = vld [vmem:[#allocation9 + $0x120] sm:$0xf]  ;;  %v6689_v24 = vor.u32 %v8352_v15, %v6688_v14  ;;  %v6984_v11 = vld [vmem:[#allocation9 + $0x270] sm:$0xf] }
 0x26c   : > { %v10037_v36 = vadd.f32 %v2107_v9, %v2095_v29  ;;  %v2096_v37 = vadd.f32 %v2010_v32, %v1916_v10  ;;  %v2030_v38 = vpop.f32.mrf.mxu0  ;;  %v2150_v9 = vadd.f32 %v8900_v63, %v2149_v5  ;;  %v8408_v10 = vld [vmem:[#allocation9 + $0x1e4] sm:$0xf0]  ;;  %v6712_v29 = vld [vmem:[#allocation9 + $0x50] sm:$0xf]  ;;  %3069 = vmatpush.bf16.msra.mxu2 %v6849_v28 }
 0x26d   : > { %v2097_v40 = vadd.f32 %v2030_v38, %v1917_v31  ;;  %v2050_v41 = vpop.f32.mrf.mxu1  ;;  %v6913_v31 = vor.u32 %v8408_v10, %v6912_v25  ;;  %v6776_v32 = vld [vmem:[#allocation9 + $0xd0] sm:$0xf]  ;;  %v6880_v25 = vld [vmem:[#allocation9 + $0x1a0] sm:$0xf] }
 0x26e   : > { %v2138_v42 = vadd.f32 %v2137_v35, %v10037_v36  ;;  %v10040_v43 = vadd.f32 %v2108_v30, %v2096_v37  ;;  %v2098_v44 = vadd.f32 %v2050_v41, %v1918_v34  ;;  %v8358_v30 = vld [vmem:[#allocation9 + $0x54] sm:$0xf0]  ;;  %v6840_v34 = vld [vmem:[#allocation9 + $0x150] sm:$0xf] }
 0x26f   : > { %v10042_v45 = vadd.f32 %v2109_v33, %v2097_v40  ;;  %v8374_v33 = vld [vmem:[#allocation9 + $0xd4] sm:$0xf0]  ;;  %v6713_v35 = vor.u32 %v8358_v30, %v6712_v29  ;;  %v6904_v38 = vld [vmem:[#allocation9 + $0x1d0] sm:$0xf]  ;;  %3082 = vmatpush.bf16.msra.mxu3 %v6913_v31  ;;  %v6753_v29 = vor.u32 %v8368_v18, %v6752_v17 }
 0x270   : > { %v2139_v47 = vadd.f32 %v2138_v42, %v10040_v43  ;;  %v10045_v48 = vadd.f32 %v2110_v39, %v2098_v44  ;;  %v8390_v37 = vld [vmem:[#allocation9 + $0x154] sm:$0xf0]  ;;  %v6777_v40 = vor.u32 %v8374_v33, %v6776_v32  ;;  %v6704_v42 = vld [vmem:[#allocation9 + $0x40] sm:$0xf]  ;;  %v8356_v44 = vld [vmem:[#allocation9 + $0x44] sm:$0xf0]  ;;  %v6817_v32 = vor.u32 %v8384_v23, %v6816_v22 }
 0x271   : > { %v2070_v50 = vpop.f32.mrf.mxu2  ;;  %v8406_v39 = vld [vmem:[#allocation9 + $0x1d4] sm:$0xf0]  ;;  %v6841_v41 = vor.u32 %v8390_v37, %v6840_v34  ;;  %3044 = vmatpush.bf16.msra.mxu0 %v6713_v35  ;;  %v6680_v30 = vld [vmem:[#allocation9 + $0x10] sm:$0xf]  ;;  %v8424_v22 = vld [vmem:[#allocation9 + $0x264] sm:$0xf0] }
 0x272   : > { %v2140_v52 = vadd.f32 %v2139_v47, %v10042_v45  ;;  %v2099_v53 = vadd.f32 %v2070_v50, %v1919_v46  ;;  %v10056_v46 = vsel %vm2151_vm1, %v8900_v63, %v2150_v9  ;;  %v6905_v47 = vor.u32 %v8406_v39, %v6904_v38  ;;  %v8372_v50 = vld [vmem:[#allocation9 + $0xc4] sm:$0xf0]  ;;  %3057 = vmatpush.bf16.msra.mxu1 %v6777_v40  ;;  %v8350_v31 = vld [vmem:[#allocation9 + $0x14] sm:$0xf0]  ;;  %v6744_v33 = vld [vmem:[#allocation9 + $0x90] sm:$0xf] }
 0x273   : > { %v2090_v55 = vpop.f32.mrf.mxu3  ;;  %3070 = vmatpush.bf16.msra.mxu2 %v6841_v41  ;;  %v8400_v9 = vld [vmem:[#allocation9 + $0x1a4] sm:$0xf0]  ;;  %v8366_v34 = vld [vmem:[#allocation9 + $0x94] sm:$0xf0]  ;;  %v6808_v39 = vld [vmem:[#allocation9 + $0x110] sm:$0xf]  ;;  %v6681_v41 = vor.u32 %v8350_v31, %v6680_v30 }
 0x274   : > { %v10048_v56 = vadd.f32 %v2111_v49, %v2099_v53  ;;  %v2100_v57 = vadd.f32 %v2090_v55, %v1920_v51  ;;  %v2141_v58 = vadd.f32 %v2140_v52, %v10045_v48  ;;  %v6768_v49 = vld [vmem:[#allocation9 + $0xc0] sm:$0xf]  ;;  %v8388_v52 = vld [vmem:[#allocation9 + $0x144] sm:$0xf0]  ;;  %3083 = vmatpush.bf16.msra.mxu3 %v6905_v47  ;;  %v6881_v38 = vor.u32 %v8400_v9, %v6880_v25  ;;  %v8382_v40 = vld [vmem:[#allocation9 + $0x114] sm:$0xf0] }
 0x275   : > { %v6832_v51 = vld [vmem:[#allocation9 + $0x140] sm:$0xf]  ;;  %v8458_v17 = vld [vmem:[#allocation9 + $0x374] sm:$0xf0]  ;;  %v7176_v18 = vld [vmem:[#allocation9 + $0x3f0] sm:$0xf] }
 0x276   : > { %v10051_v59 = vadd.f32 %v2112_v54, %v2100_v57  ;;  %v2142_v60 = vadd.f32 %v2141_v58, %v10048_v56  ;;  %v6705_v54 = vor.u32 %v8356_v44, %v6704_v42  ;;  %v6896_v55 = vld [vmem:[#allocation9 + $0x1c0] sm:$0xf]  ;;  %v8404_v57 = vld [vmem:[#allocation9 + $0x1c4] sm:$0xf0]  ;;  %v6833_v63 = vor.u32 %v8388_v52, %v6832_v51  ;;  %v6872_v42 = vld [vmem:[#allocation9 + $0x190] sm:$0xf] }
 0x277   : > { %v6897_v5 = vor.u32 %v8404_v57, %v6896_v55  ;;  %v8398_v44 = vld [vmem:[#allocation9 + $0x194] sm:$0xf0]  ;;  %v6809_v51 = vor.u32 %v8382_v40, %v6808_v39  ;;  %v7040_v25 = vld [vmem:[#allocation9 + $0x2e0] sm:$0xf]  ;;  %v8440_v9 = vld [vmem:[#allocation9 + $0x2e4] sm:$0xf0] }
 0x278   : > { %v2143_v61 = vadd.f32 %v2142_v60, %v10051_v59  ;;  %v6769_v60 = vor.u32 %v8372_v50, %v6768_v49  ;;  %3045 = vmatpush.bf16.msra.mxu0 %v6705_v54  ;;  %3071 = vmatpush.bf16.msra.mxu2 %v6833_v63  ;;  %v6745_v50 = vor.u32 %v8366_v34, %v6744_v33  ;;  %v8364_v63 = vld [vmem:[#allocation9 + $0x84] sm:$0xf0]  ;;  %v7168_v30 = vld [vmem:[#allocation9 + $0x3e0] sm:$0xf]  ;;  %v6968_v34 = vld [vmem:[#allocation9 + $0x250] sm:$0xf] }
 0x279   : > { %3084 = vmatpush.bf16.msra.mxu3 %v6897_v5  ;;  %v6873_v54 = vor.u32 %v8398_v44, %v6872_v42  ;;  %v8472_v31 = vld [vmem:[#allocation9 + $0x3e4] sm:$0xf0]  ;;  %v8438_v39 = vld [vmem:[#allocation9 + $0x2d4] sm:$0xf0]  ;;  %v7096_v40 = vld [vmem:[#allocation9 + $0x350] sm:$0xf] }
 0x27a   : > { %2144 = vadd.xlane.f32.xlu0 %v2143_v61  ;;  %v6696_v61 = vld [vmem:[#allocation9 + $0x30] sm:$0xf]  ;;  %3058 = vmatpush.bf16.msra.mxu1 %v6769_v60  ;;  %v8348_v60 = vld [vmem:[#allocation9 + $0x4] sm:$0xf0]  ;;  %v7169_v33 = vor.u32 %v8472_v31, %v7168_v30  ;;  %v8430_v30 = vld [vmem:[#allocation9 + $0x294] sm:$0xf0] }
 0x27b   : > { %v6697_v8 = vor.u32 %v8354_v62, %v6696_v61  ;;  %v6736_v61 = vld [vmem:[#allocation9 + $0x80] sm:$0xf]  ;;  %v7064_v31 = vld [vmem:[#allocation9 + $0x310] sm:$0xf] }
 0x27c   : > { %3072 = vmatpush.bf16.msra.mxu2 %v6825_v16  ;;  %v6737_v5 = vor.u32 %v8364_v63, %v6736_v61  ;;  %v7112_v16 = vld [vmem:[#allocation9 + $0x370] sm:$0xf]  ;;  %v7152_v61 = vld [vmem:[#allocation9 + $0x3c0] sm:$0xf] }
 0x27d   : > { %3046 = vmatpush.bf16.msra.mxu0 %v6697_v8  ;;  %3085 = vmatpush.bf16.msra.mxu3 %v6889_v21  ;;  %v8396_v8 = vld [vmem:[#allocation9 + $0x184] sm:$0xf0]  ;;  %v6976_v21 = vld [vmem:[#allocation9 + $0x260] sm:$0xf] }
 0x27e   : > { %v6865_v12 = vor.u32 %v8396_v8, %v6864_v7  ;;  %v8434_v7 = vld [vmem:[#allocation9 + $0x2b4] sm:$0xf0]  ;;  %v7080_v8 = vld [vmem:[#allocation9 + $0x330] sm:$0xf] }
 0x280   : > { %3073 = vmatpush.bf16.msra.mxu2 %v6817_v32 }
 0x281   : > { %3047 = vmatpush.bf16.msra.mxu0 %v6689_v24  ;;  %3086 = vmatpush.bf16.msra.mxu3 %v6881_v38  ;;  %v6977_v24 = vor.u32 %v8424_v22, %v6976_v21  ;;  %v8448_v21 = vld [vmem:[#allocation9 + $0x324] sm:$0xf0] }
 0x284   : > { %3074 = vmatpush.bf16.msra.mxu2 %v6809_v51  ;;  %v6960_v51 = vld [vmem:[#allocation9 + $0x240] sm:$0xf] }
 0x285   : > { %3048 = vmatpush.bf16.msra.mxu0 %v6681_v41  ;;  %3087 = vmatpush.bf16.msra.mxu3 %v6873_v54  ;;  %v8454_v41 = vld [vmem:[#allocation9 + $0x354] sm:$0xf0] }
 0x286   : > { %v7097_v44 = vor.u32 %v8454_v41, %v7096_v40  ;;  %v8412_v40 = vld [vmem:[#allocation9 + $0x204] sm:$0xf0]  ;;  %v6992_v41 = vld [vmem:[#allocation9 + $0x280] sm:$0xf] }
 0x289   : > { %3088 = vmatpush.bf16.msra.mxu3 %v6865_v12 }
 0x2ed   : > { %v2145_v53 = vpop.xlane.xlu0 %2144 }
 0x2ee   : > { %v10059_v58 = vmul.f32 %v10056_v46, %v2145_v53 }
 0x2f0   : > { %v10063_v2 = vsub.f32 %v10031_v26, %v10059_v58  ;;  %v10067_v3 = vsub.f32 %v10033_v27, %v10059_v58  ;;  %v10071_v4 = vsub.f32 %v10037_v36, %v10059_v58  ;;  %v10075_v13 = vsub.f32 %v10040_v43, %v10059_v58 }
 0x2f1   : > { %v6761_v36 = vor.u32 %v8370_v1, %v6760_v0  ;;  %v10083_v19 = vsub.f32 %v10042_v45, %v10059_v58  ;;  %v10089_v28 = vsub.f32 %v10045_v48, %v10059_v58  ;;  %v10095_v35 = vsub.f32 %v10048_v56, %v10059_v58  ;;  %v6800_v0 = vld [vmem:[#allocation9 + $0x100] sm:$0xf]  ;;  %v8380_v1 = vld [vmem:[#allocation9 + $0x104] sm:$0xf0] }
 0x2f2   : > { %v2162_v26 = vmul.f32 %v10063_v2, %v10063_v2  ;;  %v2163_v27 = vmul.f32 %v10067_v3, %v10067_v3  ;;  %v2164_v43 = vmul.f32 %v10071_v4, %v10071_v4  ;;  %v2165_v45 = vmul.f32 %v10075_v13, %v10075_v13 }
 0x2f3   : > { %3059 = vmatpush.bf16.msra.mxu1 %v6761_v36  ;;  %v2166_v48 = vmul.f32 %v10083_v19, %v10083_v19  ;;  %v10101_v47 = vsub.f32 %v10051_v59, %v10059_v58  ;;  %v2167_v56 = vmul.f32 %v10089_v28, %v10089_v28  ;;  %v2168_v52 = vmul.f32 %v10095_v35, %v10095_v35  ;;  %v6672_v58 = vld [vmem:[#allocation9] sm:$0xf]  ;;  %v8442_v36 = vld [vmem:[#allocation9 + $0x2f4] sm:$0xf0] }
 0x2f4   : > { %v2170_v20 = vadd.f32 %v2163_v27, %v2162_v26  ;;  %v6673_v62 = vor.u32 %v8348_v60, %v6672_v58  ;;  %v6801_v6 = vor.u32 %v8380_v1, %v6800_v0  ;;  %v8426_v26 = vld [vmem:[#allocation9 + $0x274] sm:$0xf0]  ;;  %v7048_v27 = vld [vmem:[#allocation9 + $0x2f0] sm:$0xf] }
 0x2f5   : > { %v2169_v55 = vmul.f32 %v10101_v47, %v10101_v47  ;;  %v6985_v14 = vor.u32 %v8426_v26, %v6984_v11  ;;  %v7049_v15 = vor.u32 %v8442_v36, %v7048_v27  ;;  %v6952_v0 = vld [vmem:[#allocation9 + $0x230] sm:$0xf]  ;;  %v8418_v1 = vld [vmem:[#allocation9 + $0x234] sm:$0xf0] }
 0x2f6   : > { %v2171_v10 = vadd.f32 %v2170_v20, %v2164_v43  ;;  %3049 = vmatpush.bf16.msra.mxu0 %v6673_v62  ;;  %3075 = vmatpush.bf16.msra.mxu2 %v6801_v6  ;;  %v7113_v43 = vor.u32 %v8458_v17, %v7112_v16  ;;  %v8474_v20 = vld [vmem:[#allocation9 + $0x3f4] sm:$0xf0]  ;;  %v8468_v62 = vld [vmem:[#allocation9 + $0x3c4] sm:$0xf0]  ;;  %v6953_v6 = vor.u32 %v8418_v1, %v6952_v0  ;;  %v7144_v27 = vld [vmem:[#allocation9 + $0x3b0] sm:$0xf] }
 0x2f7   : > { %3060 = vmatpush.bf16.msra.mxu1 %v6753_v29  ;;  %v7177_v23 = vor.u32 %v8474_v20, %v7176_v18  ;;  %v8456_v29 = vld [vmem:[#allocation9 + $0x364] sm:$0xf0]  ;;  %v7153_v63 = vor.u32 %v8468_v62, %v7152_v61  ;;  %v8450_v11 = vld [vmem:[#allocation9 + $0x334] sm:$0xf0]  ;;  %v7008_v17 = vld [vmem:[#allocation9 + $0x2a0] sm:$0xf] }
 0x2f8   : > { %v2172_v37 = vadd.f32 %v2171_v10, %v2165_v45  ;;  %v7104_v45 = vld [vmem:[#allocation9 + $0x360] sm:$0xf]  ;;  %v7041_v10 = vor.u32 %v8440_v9, %v7040_v25  ;;  %v7081_v26 = vor.u32 %v8450_v11, %v7080_v8  ;;  %v8466_v36 = vld [vmem:[#allocation9 + $0x3b4] sm:$0xf0]  ;;  %v8416_v16 = vld [vmem:[#allocation9 + $0x224] sm:$0xf0] }
 0x2f9   : > { %3133 = vmatpush.bf16.msrb.mxu3 %v7177_v23  ;;  %v7105_v32 = vor.u32 %v8456_v29, %v7104_v45  ;;  %v7072_v20 = vld [vmem:[#allocation9 + $0x320] sm:$0xf]  ;;  %v8464_v25 = vld [vmem:[#allocation9 + $0x3a4] sm:$0xf0]  ;;  %v6936_v9 = vld [vmem:[#allocation9 + $0x210] sm:$0xf] }
 0x2fa   : > { %v2173_v49 = vadd.f32 %v2172_v37, %v2166_v48  ;;  %3094 = vmatpush.bf16.msrb.mxu0 %v6985_v14  ;;  %3120 = vmatpush.bf16.msrb.mxu2 %v7113_v43  ;;  %v8422_v48 = vld [vmem:[#allocation9 + $0x254] sm:$0xf0]  ;;  %v7032_v37 = vld [vmem:[#allocation9 + $0x2d0] sm:$0xf]  ;;  %v7145_v14 = vor.u32 %v8466_v36, %v7144_v27  ;;  %v8432_v43 = vld [vmem:[#allocation9 + $0x2a4] sm:$0xf0]  ;;  %v7073_v23 = vor.u32 %v8448_v21, %v7072_v20 }
 0x2fb   : > { %3061 = vmatpush.bf16.msra.mxu1 %v6745_v50  ;;  %v6969_v38 = vor.u32 %v8422_v48, %v6968_v34  ;;  %v7033_v42 = vor.u32 %v8438_v39, %v7032_v37  ;;  %v7009_v22 = vor.u32 %v8432_v43, %v7008_v17  ;;  %v7000_v29 = vld [vmem:[#allocation9 + $0x290] sm:$0xf]  ;;  %v8462_v37 = vld [vmem:[#allocation9 + $0x394] sm:$0xf0] }
 0x2fc   : > { %v2174_v53 = vadd.f32 %v2173_v49, %v2167_v56  ;;  %v7160_v56 = vld [vmem:[#allocation9 + $0x3d0] sm:$0xf]  ;;  %v8470_v49 = vld [vmem:[#allocation9 + $0x3d4] sm:$0xf0]  ;;  %v7001_v48 = vor.u32 %v8430_v30, %v7000_v29 }
 0x2fd   : > { %3134 = vmatpush.bf16.msrb.mxu3 %v7169_v33  ;;  %v7161_v50 = vor.u32 %v8470_v49, %v7160_v56  ;;  %v7128_v33 = vld [vmem:[#allocation9 + $0x390] sm:$0xf]  ;;  %v7056_v56 = vld [vmem:[#allocation9 + $0x300] sm:$0xf]  ;;  %v8444_v49 = vld [vmem:[#allocation9 + $0x304] sm:$0xf0] }
 0x2fe   : > { %v2175_v59 = vadd.f32 %v2174_v53, %v2168_v52  ;;  %3095 = vmatpush.bf16.msrb.mxu0 %v6977_v24  ;;  %3121 = vmatpush.bf16.msrb.mxu2 %v7105_v32  ;;  %v8420_v52 = vld [vmem:[#allocation9 + $0x244] sm:$0xf0]  ;;  %v7024_v53 = vld [vmem:[#allocation9 + $0x2c0] sm:$0xf]  ;;  %v8446_v32 = vld [vmem:[#allocation9 + $0x314] sm:$0xf0] }
 0x2ff   : > { %3062 = vmatpush.bf16.msra.mxu1 %v6737_v5  ;;  %v6961_v54 = vor.u32 %v8420_v52, %v6960_v51  ;;  %v7016_v5 = vld [vmem:[#allocation9 + $0x2b0] sm:$0xf]  ;;  %v7136_v24 = vld [vmem:[#allocation9 + $0x3a0] sm:$0xf]  ;;  %v7065_v39 = vor.u32 %v8446_v32, %v7064_v31  ;;  %v8460_v51 = vld [vmem:[#allocation9 + $0x384] sm:$0xf0] }
 0x300   : > { %v2176_v57 = vadd.f32 %v2175_v59, %v2169_v55  ;;  %v8436_v55 = vld [vmem:[#allocation9 + $0x2c4] sm:$0xf0]  ;;  %v7088_v59 = vld [vmem:[#allocation9 + $0x340] sm:$0xf]  ;;  %v7017_v12 = vor.u32 %v8434_v7, %v7016_v5  ;;  %v7137_v45 = vor.u32 %v8464_v25, %v7136_v24  ;;  %v8361_v24 = vld [vmem:[#allocation9 + $0x74] sm:$0xf] }
 0x301   : > { %v7025_v58 = vor.u32 %v8436_v55, %v7024_v53  ;;  %3135 = vmatpush.bf16.msrb.mxu3 %v7161_v50  ;;  %v7120_v50 = vld [vmem:[#allocation9 + $0x380] sm:$0xf]  ;;  %v7057_v55 = vor.u32 %v8444_v49, %v7056_v56  ;;  %v6730_v25 = vld [vmem:[#allocation9 + $0x78] sm:$0xf0]  ;;  %v8393_v32 = vld [vmem:[#allocation9 + $0x174] sm:$0xf] }
 0x302   : > { %2177 = vadd.xlane.f32.xlu0 %v2176_v57  ;;  %3096 = vmatpush.bf16.msrb.mxu0 %v6969_v38  ;;  %v8452_v57 = vld [vmem:[#allocation9 + $0x344] sm:$0xf0]  ;;  %v6928_v38 = vld [vmem:[#allocation9 + $0x200] sm:$0xf]  ;;  %v6794_v31 = vld [vmem:[#allocation9 + $0xf8] sm:$0xf0] }
 0x303   : > { %3107 = vmatpush.bf16.msrb.mxu1 %v7049_v15  ;;  %3122 = vmatpush.bf16.msrb.mxu2 %v7097_v44  ;;  %v7089_v60 = vor.u32 %v8452_v57, %v7088_v59  ;;  %v6944_v15 = vld [vmem:[#allocation9 + $0x220] sm:$0xf]  ;;  %v7129_v44 = vor.u32 %v8462_v37, %v7128_v33  ;;  %v6929_v52 = vor.u32 %v8412_v40, %v6928_v38  ;;  %v6858_v33 = vld [vmem:[#allocation9 + $0x178] sm:$0xf0]  ;;  %v8409_v38 = vld [vmem:[#allocation9 + $0x1f4] sm:$0xf] }
 0x304   : > { %v6945_v18 = vor.u32 %v8416_v16, %v6944_v15  ;;  %v7121_v57 = vor.u32 %v8460_v51, %v7120_v50  ;;  %v2130_v62 = vld [vmem:[#allocation17 + $0x1] ss:$8 sm:$0xf]  ;;  %v2134_v1 = vld [vmem:[#allocation17 + $0x2] ss:$8 sm:$0xf]  ;;  %v6861_v40 = vor.u32 %v8393_v32, %v6858_v33 }
 0x305   : > { %3136 = vmatpush.bf16.msrb.mxu3 %v7153_v63  ;;  %v2131_v63 = vld [vmem:[#allocation17 + $0x1] ss:$8 sm:$0xf0]  ;;  %v2135_v5 = vld [vmem:[#allocation17 + $0x2] ss:$8 sm:$0xf0] }
 0x306   : > { %3097 = vmatpush.bf16.msrb.mxu0 %v6961_v54  ;;  %v10110_v7 = vor.u32 %v2131_v63, %v2130_v62  ;;  %v10112_v8 = vor.u32 %v2135_v5, %v2134_v1  ;;  %v8359_v49 = vld [vmem:[#allocation9 + $0x64] sm:$0xf]  ;;  %v6722_v51 = vld [vmem:[#allocation9 + $0x68] sm:$0xf0] }
 0x307   : > { %3108 = vmatpush.bf16.msrb.mxu1 %v7041_v10  ;;  %3123 = vmatpush.bf16.msrb.mxu2 %v7089_v60  ;;  %v8414_v10 = vld [vmem:[#allocation9 + $0x214] sm:$0xf0]  ;;  %v8391_v62 = vld [vmem:[#allocation9 + $0x164] sm:$0xf]  ;;  %v6850_v63 = vld [vmem:[#allocation9 + $0x168] sm:$0xf0] }
 0x308   : > { %v6937_v34 = vor.u32 %v8414_v10, %v6936_v9  ;;  %v2225_v27 = vperm.slane %v10112_v8, 0  ;;  %v2201_v36 = vperm.slane %v10110_v7, 1  ;;  %v2203_v15 = vperm.slane %v10110_v7, 3  ;;  %v8377_v9 = vld [vmem:[#allocation9 + $0xf4] sm:$0xf] }
 0x309   : > { %3137 = vmatpush.bf16.msrb.mxu3 %v7145_v14  ;;  %v2202_v14 = vperm.slane %v10110_v7, 2  ;;  %v2226_v17 = vperm.slane %v10112_v8, 1  ;;  %v2228_v43 = vperm.slane %v10112_v8, 3  ;;  %v6914_v1 = vld [vmem:[#allocation9 + $0x1e8] sm:$0xf0] }
 0x30a   : > { %3098 = vmatpush.bf16.msrb.mxu0 %v6953_v6 }
 0x30b   : > { %3109 = vmatpush.bf16.msrb.mxu1 %v7033_v42  ;;  %3124 = vmatpush.bf16.msrb.mxu2 %v7081_v26  ;;  %v8428_v42 = vld [vmem:[#allocation9 + $0x284] sm:$0xf0]  ;;  %v2200_v26 = vperm.slane %v10110_v7, 0 }
 0x30c   : > { %v6993_v53 = vor.u32 %v8428_v42, %v6992_v41 }
 0x30d   : > { %3138 = vmatpush.bf16.msrb.mxu3 %v7137_v45 }
 0x30e   : > { %3099 = vmatpush.bf16.msrb.mxu0 %v6945_v18  ;;  %v2227_v18 = vperm.slane %v10112_v8, 2 }
 0x30f   : > { %3110 = vmatpush.bf16.msrb.mxu1 %v7025_v58  ;;  %3125 = vmatpush.bf16.msrb.mxu2 %v7073_v23 }
 0x311   : > { %3139 = vmatpush.bf16.msrb.mxu3 %v7129_v44 }
 0x312   : > { %3100 = vmatpush.bf16.msrb.mxu0 %v6937_v34 }
 0x313   : > { %3111 = vmatpush.bf16.msrb.mxu1 %v7017_v12  ;;  %3126 = vmatpush.bf16.msrb.mxu2 %v7065_v39  ;;  %v6733_v39 = vor.u32 %v8361_v24, %v6730_v25  ;;  %v8405_v24 = vld [vmem:[#allocation9 + $0x1d4] sm:$0xf]  ;;  %v6906_v25 = vld [vmem:[#allocation9 + $0x1d8] sm:$0xf0] }
 0x314   : > { %v6909_v33 = vor.u32 %v8405_v24, %v6906_v25  ;;  %v6810_v24 = vld [vmem:[#allocation9 + $0x118] sm:$0xf0]  ;;  %v8397_v25 = vld [vmem:[#allocation9 + $0x194] sm:$0xf] }
 0x315   : > { %3140 = vmatpush.bf16.msrb.mxu3 %v7121_v57 }
 0x316   : > { %3101 = vmatpush.bf16.msrb.mxu0 %v6929_v52  ;;  %v8375_v52 = vld [vmem:[#allocation9 + $0xe4] sm:$0xf] }
 0x317   : > { %3112 = vmatpush.bf16.msrb.mxu1 %v7009_v22  ;;  %3127 = vmatpush.bf16.msrb.mxu2 %v7057_v55  ;;  %v2205_v55 = vperm.slane %v10110_v7, 5 }
 0x31b   : > { %3113 = vmatpush.bf16.msrb.mxu1 %v7001_v48 }
 0x31f   : > { %3114 = vmatpush.bf16.msrb.mxu1 %v6993_v53 }
 0x375   : > { %v2178_v54 = vpop.xlane.xlu0 %2177 }
 0x376   : > { %v2179_v59 = vmul.f32 %v2178_v54, %v10056_v46 }
 0x378   : > { %v2180_v58 = vadd.f32 1e-05, %v2179_v59 }
 0x37a   : > { %8901 = vrsqrt.f32 %v2180_v58  ;;  %vm2187_vm3 = vweird.f32 %v2180_v58 }
 0x380   : > { %v8902_v60 = vpop.eup %8901 }
 0x381   : > { %v2182_v61 = vmul.f32 %v8902_v60, %v2180_v58  ;;  %vm2188_vm2 = vweird.f32 %v8902_v60 }
 0x382   : > { %vm2189_vm4 = vmor %vm2187_vm3, %vm2188_vm2  ;;  %vm4863_vm2 = vcmask 277504  }
 0x383   : > { %v2183_v0 = vmul.f32 %v8902_v60, %v2182_v61  ;;  %v6786_v61 = vld [vmem:[#allocation9 + $0xe8] sm:$0xf0] }
 0x385   : > { %v2184_v6 = vmul.f32 0.5, %v2183_v0  ;;  %v8407_v0 = vld [vmem:[#allocation9 + $0x1e4] sm:$0xf] }
 0x387   : > { %v2185_v11 = vsub.f32 1.5, %v2184_v6  ;;  %v2207_v6 = vperm.slane %v10110_v7, 7 }
 0x389   : > { %v2186_v12 = vmul.f32 %v8902_v60, %v2185_v11  ;;  %v2229_v11 = vperm.slane %v10112_v8, 4 }
 0x38b   : > { %v2190_v16 = vsel %vm2189_vm4, %v8902_v60, %v2186_v12  ;;  %v6725_v12 = vor.u32 %v8359_v49, %v6722_v51  ;;  %v6762_v49 = vld [vmem:[#allocation9 + $0xb8] sm:$0xf0] }
 0x38c   : > { %v2191_v20 = vmul.f32 %v2190_v16, %v10063_v2  ;;  %v2192_v21 = vmul.f32 %v2190_v16, %v10067_v3  ;;  %v2193_v22 = vmul.f32 %v2190_v16, %v10071_v4  ;;  %v2194_v23 = vmul.f32 %v2190_v16, %v10075_v13  ;;  %v6922_v3 = vld [vmem:[#allocation9 + $0x1f8] sm:$0xf0] }
 0x38d   : > { %v6797_v4 = vor.u32 %v8377_v9, %v6794_v31  ;;  %v2204_v13 = vperm.slane %v10110_v7, 4  ;;  %v6925_v50 = vor.u32 %v8409_v38, %v6922_v3  ;;  %v2195_v53 = vmul.f32 %v2190_v16, %v10083_v19  ;;  %v8403_v3 = vld [vmem:[#allocation9 + $0x1c4] sm:$0xf] }
 0x38e   : > { %v2216_v45 = vmul.f32 %v2200_v26, %v2191_v20  ;;  %v2217_v10 = vmul.f32 %v2201_v36, %v2192_v21  ;;  %v2218_v29 = vmul.f32 %v2202_v14, %v2193_v22  ;;  %v2219_v30 = vmul.f32 %v2203_v15, %v2194_v23  ;;  %v8373_v14 = vld [vmem:[#allocation9 + $0xd4] sm:$0xf]  ;;  %v6778_v15 = vld [vmem:[#allocation9 + $0xd8] sm:$0xf0] }
 0x38f   : > { %v2196_v54 = vmul.f32 %v2190_v16, %v10089_v28  ;;  %v2197_v5 = vmul.f32 %v2190_v16, %v10095_v35  ;;  %v2206_v19 = vperm.slane %v10110_v7, 6  ;;  %v2198_v28 = vmul.f32 %v2190_v16, %v10101_v47  ;;  %v8357_v35 = vld [vmem:[#allocation9 + $0x54] sm:$0xf]  ;;  %v6714_v7 = vld [vmem:[#allocation9 + $0x58] sm:$0xf0] }
 0x390   : > { %v2241_v34 = vadd.f32 %v2225_v27, %v2216_v45  ;;  %v2242_v48 = vadd.f32 %v2226_v17, %v2217_v10  ;;  %v2243_v37 = vadd.f32 %v2227_v18, %v2218_v29  ;;  %v2244_v2 = vadd.f32 %v2228_v43, %v2219_v30  ;;  %v8389_v18 = vld [vmem:[#allocation9 + $0x154] sm:$0xf]  ;;  %v6842_v43 = vld [vmem:[#allocation9 + $0x158] sm:$0xf0]  ;;  %v8355_v29 = vld [vmem:[#allocation9 + $0x44] sm:$0xf] }
 0x391   : > { %v6789_v26 = vor.u32 %v8375_v52, %v6786_v61  ;;  %v6853_v27 = vor.u32 %v8391_v62, %v6850_v63  ;;  %v2230_v36 = vperm.slane %v10112_v8, 5  ;;  %v6917_v47 = vor.u32 %v8407_v0, %v6914_v1  ;;  %v6706_v30 = vld [vmem:[#allocation9 + $0x48] sm:$0xf0]  ;;  %v8401_v61 = vld [vmem:[#allocation9 + $0x1b4] sm:$0xf] }
 0x392   : > { %v2249_v41 = vmax.f32 %v2241_v34, 0.0  ;;  %v2250_v42 = vmax.f32 %v2242_v48, 0.0  ;;  %v2251_v44 = vmax.f32 %v2243_v37, 0.0  ;;  %v2252_v56 = vmax.f32 %v2244_v2, 0.0  ;;  %v8371_v34 = vld [vmem:[#allocation9 + $0xc4] sm:$0xf] }
 0x393   : > { %v2220_v16 = vmul.f32 %v2204_v13, %v2195_v53  ;;  %v2221_v17 = vmul.f32 %v2205_v55, %v2196_v54  ;;  %v2222_v20 = vmul.f32 %v2206_v19, %v2197_v5  ;;  %v2231_v21 = vperm.slane %v10112_v8, 6  ;;  %v6770_v48 = vld [vmem:[#allocation9 + $0xc8] sm:$0xf0]  ;;  %v8387_v37 = vld [vmem:[#allocation9 + $0x144] sm:$0xf] }
 0x394   : > { %v10130_v59 = vpack.c.bf16 %v2249_v41, %v2249_v41  ;;  %v10132_v57 = vpack.c.bf16 %v2250_v42, %v2250_v42  ;;  %v10134_v58 = vpack.c.bf16 %v2251_v44, %v2251_v44  ;;  %v10136_v60 = vpack.c.bf16 %v2252_v56, %v2252_v56  ;;  %v8369_v56 = vld [vmem:[#allocation9 + $0xb4] sm:$0xf]  ;;  %v6826_v55 = vld [vmem:[#allocation9 + $0x138] sm:$0xf0] }
 0x395   : > { %v2223_v22 = vmul.f32 %v2207_v6, %v2198_v28  ;;  %v2232_v23 = vperm.slane %v10112_v8, 7  ;;  %v6717_v9 = vor.u32 %v8357_v35, %v6714_v7  ;;  %v6781_v45 = vor.u32 %v8373_v14, %v6778_v15  ;;  %v6834_v8 = vld [vmem:[#allocation9 + $0x148] sm:$0xf0]  ;;  %v8385_v54 = vld [vmem:[#allocation9 + $0x134] sm:$0xf] }
 0x396   : > { %3050 = vmatmul.bf16.vlgmr.msra.gmra.mxu0 %v10130_v59  ;;  %3063 = vmatmul.bf16.vlgmr.msra.gmra.mxu1 %v10132_v57  ;;  %v6845_v10 = vor.u32 %v8389_v18, %v6842_v43  ;;  %v2245_v31 = vadd.f32 %v2229_v11, %v2220_v16  ;;  %v2246_v32 = vadd.f32 %v2230_v36, %v2221_v17  ;;  %v6890_v62 = vld [vmem:[#allocation9 + $0x1b8] sm:$0xf0]  ;;  %v8351_v28 = vld [vmem:[#allocation9 + $0x24] sm:$0xf]  ;;  %v6690_v6 = vld [vmem:[#allocation9 + $0x28] sm:$0xf0] }
 0x397   : > { %3076 = vmatmul.bf16.vlgmr.msra.gmra.mxu2 %v10134_v58  ;;  %3089 = vmatmul.bf16.vlgmr.msra.gmra.mxu3 %v10136_v60  ;;  %v2247_v2 = vadd.f32 %v2231_v21, %v2222_v20  ;;  %v2248_v38 = vadd.f32 %v2232_v23, %v2223_v22  ;;  %v6709_v13 = vor.u32 %v8355_v29, %v6706_v30  ;;  %v6754_v35 = vld [vmem:[#allocation9 + $0xa8] sm:$0xf0]  ;;  %v8383_v36 = vld [vmem:[#allocation9 + $0x124] sm:$0xf]  ;;  %v8349_v17 = vld [vmem:[#allocation9 + $0x14] sm:$0xf] }
 0x398   : > { %3146 = vmatpush.bf16.msra.mxu0 %v6733_v39  ;;  %3159 = vmatpush.bf16.msra.mxu1 %v6797_v4  ;;  %v6898_v39 = vld [vmem:[#allocation9 + $0x1c8] sm:$0xf0]  ;;  %v8353_v4 = vld [vmem:[#allocation9 + $0x34] sm:$0xf]  ;;  %v6773_v41 = vor.u32 %v8371_v34, %v6770_v48  ;;  %v2253_v42 = vmax.f32 %v2245_v31, 0.0  ;;  %v2254_v44 = vmax.f32 %v2246_v32, 0.0  ;;  %v6765_v0 = vor.u32 %v8369_v56, %v6762_v49 }
 0x399   : > { %3172 = vmatpush.bf16.msra.mxu2 %v6861_v40  ;;  %3185 = vmatpush.bf16.msra.mxu3 %v6925_v50  ;;  %v6698_v40 = vld [vmem:[#allocation9 + $0x38] sm:$0xf0]  ;;  %v6837_v50 = vor.u32 %v8387_v37, %v6834_v8  ;;  %v6901_v51 = vor.u32 %v8403_v3, %v6898_v39  ;;  %v2255_v52 = vmax.f32 %v2247_v2, 0.0  ;;  %v2256_v53 = vmax.f32 %v2248_v38, 0.0  ;;  %v8399_v7 = vld [vmem:[#allocation9 + $0x1a4] sm:$0xf] }
 0x39a   : > { %v6701_v63 = vor.u32 %v8353_v4, %v6698_v40  ;;  %v10150_v1 = vpack.c.bf16 %v2253_v42, %v2253_v42  ;;  %v10152_v5 = vpack.c.bf16 %v2254_v44, %v2254_v44  ;;  %v6829_v19 = vor.u32 %v8385_v54, %v6826_v55  ;;  %v6882_v14 = vld [vmem:[#allocation9 + $0x1a8] sm:$0xf0]  ;;  %v6682_v18 = vld [vmem:[#allocation9 + $0x18] sm:$0xf0]  ;;  %v8365_v21 = vld [vmem:[#allocation9 + $0x94] sm:$0xf] }
 0x39b   : > { %v10154_v11 = vpack.c.bf16 %v2255_v52, %v2255_v52  ;;  %v6693_v15 = vor.u32 %v8351_v28, %v6690_v6  ;;  %v6885_v20 = vor.u32 %v8399_v7, %v6882_v14  ;;  %v6746_v22 = vld [vmem:[#allocation9 + $0x98] sm:$0xf0]  ;;  %v8381_v23 = vld [vmem:[#allocation9 + $0x114] sm:$0xf]  ;;  %v6674_v30 = vld [vmem:[#allocation9 + $0x8] sm:$0xf0] }
 0x39c   : > { %3147 = vmatpush.bf16.msra.mxu0 %v6725_v12  ;;  %3160 = vmatpush.bf16.msra.mxu1 %v6789_v26  ;;  %v10156_v12 = vpack.c.bf16 %v2256_v53, %v2256_v53  ;;  %v6893_v26 = vor.u32 %v8401_v61, %v6890_v62  ;;  %v6749_v29 = vor.u32 %v8365_v21, %v6746_v22  ;;  %v8363_v31 = vld [vmem:[#allocation9 + $0x84] sm:$0xf]  ;;  %v6738_v32 = vld [vmem:[#allocation9 + $0x88] sm:$0xf0]  ;;  %v8425_v8 = vld [vmem:[#allocation9 + $0x274] sm:$0xf] }
 0x39d   : > { %3173 = vmatpush.bf16.msra.mxu2 %v6853_v27  ;;  %3186 = vmatpush.bf16.msra.mxu3 %v6917_v47  ;;  %v8367_v27 = vld [vmem:[#allocation9 + $0xa4] sm:$0xf]  ;;  %v6818_v47 = vld [vmem:[#allocation9 + $0x128] sm:$0xf0]  ;;  %v6986_v3 = vld [vmem:[#allocation9 + $0x278] sm:$0xf0] }
 0x39e   : > { %v6757_v16 = vor.u32 %v8367_v27, %v6754_v35  ;;  %v6821_v43 = vor.u32 %v8383_v36, %v6818_v47  ;;  %v8379_v48 = vld [vmem:[#allocation9 + $0x104] sm:$0xf]  ;;  %v6802_v37 = vld [vmem:[#allocation9 + $0x108] sm:$0xf0]  ;;  %v8441_v39 = vld [vmem:[#allocation9 + $0x2f4] sm:$0xf] }
 0x39f   : > { %v8395_v2 = vld [vmem:[#allocation9 + $0x184] sm:$0xf]  ;;  %v6866_v38 = vld [vmem:[#allocation9 + $0x188] sm:$0xf0]  ;;  %v7050_v4 = vld [vmem:[#allocation9 + $0x2f8] sm:$0xf0]  ;;  %v6805_v49 = vor.u32 %v8379_v48, %v6802_v37 }
 0x3a0   : > { %3148 = vmatpush.bf16.msra.mxu0 %v6717_v9  ;;  %3161 = vmatpush.bf16.msra.mxu1 %v6781_v45  ;;  %v6874_v9 = vld [vmem:[#allocation9 + $0x198] sm:$0xf0]  ;;  %v8347_v45 = vld [vmem:[#allocation9 + $0x4] sm:$0xf]  ;;  %v8457_v40 = vld [vmem:[#allocation9 + $0x374] sm:$0xf]  ;;  %v7053_v52 = vor.u32 %v8441_v39, %v7050_v4 }
 0x3a1   : > { %3174 = vmatpush.bf16.msra.mxu2 %v6845_v10  ;;  %3187 = vmatpush.bf16.msra.mxu3 %v6909_v33  ;;  %v6685_v10 = vor.u32 %v8349_v17, %v6682_v18  ;;  %v6813_v33 = vor.u32 %v8381_v23, %v6810_v24  ;;  %v6877_v34 = vor.u32 %v8397_v25, %v6874_v9  ;;  %v7114_v42 = vld [vmem:[#allocation9 + $0x378] sm:$0xf0]  ;;  %v8473_v44 = vld [vmem:[#allocation9 + $0x3f4] sm:$0xf]  ;;  %v8423_v53 = vld [vmem:[#allocation9 + $0x264] sm:$0xf] }
 0x3a2   : > { %v7178_v56 = vld [vmem:[#allocation9 + $0x3f8] sm:$0xf0]  ;;  %v6978_v54 = vld [vmem:[#allocation9 + $0x268] sm:$0xf0]  ;;  %v7117_v55 = vor.u32 %v8457_v40, %v7114_v42  ;;  %v8439_v62 = vld [vmem:[#allocation9 + $0x2e4] sm:$0xf] }
 0x3a3   : > { %v7181_v61 = vor.u32 %v8473_v44, %v7178_v56  ;;  %v8471_v28 = vld [vmem:[#allocation9 + $0x3e4] sm:$0xf]  ;;  %v7170_v6 = vld [vmem:[#allocation9 + $0x3e8] sm:$0xf0]  ;;  %v8421_v35 = vld [vmem:[#allocation9 + $0x254] sm:$0xf] }
 0x3a4   : > { %3149 = vmatpush.bf16.msra.mxu0 %v6709_v13  ;;  %3162 = vmatpush.bf16.msra.mxu1 %v6773_v41  ;;  %v6677_v13 = vor.u32 %v8347_v45, %v6674_v30  ;;  %v6741_v41 = vor.u32 %v8363_v31, %v6738_v32  ;;  %v6970_v36 = vld [vmem:[#allocation9 + $0x258] sm:$0xf0]  ;;  %v7173_v7 = vor.u32 %v8471_v28, %v7170_v6  ;;  %v8437_v14 = vld [vmem:[#allocation9 + $0x2d4] sm:$0xf]  ;;  %v8419_v22 = vld [vmem:[#allocation9 + $0x244] sm:$0xf] }
 0x3a5   : > { %3175 = vmatpush.bf16.msra.mxu2 %v6837_v50  ;;  %3188 = vmatpush.bf16.msra.mxu3 %v6901_v51  ;;  %v6869_v50 = vor.u32 %v8395_v2, %v6866_v38  ;;  %v6989_v51 = vor.u32 %v8425_v8, %v6986_v3  ;;  %v7098_v17 = vld [vmem:[#allocation9 + $0x358] sm:$0xf0]  ;;  %v8469_v18 = vld [vmem:[#allocation9 + $0x3d4] sm:$0xf]  ;;  %v6962_v23 = vld [vmem:[#allocation9 + $0x248] sm:$0xf0] }
 0x3a6   : > { %3102 = vmatmul.bf16.vlgmr.msrb.gmra.mxu0 %v10150_v1  ;;  %3115 = vmatmul.bf16.vlgmr.msrb.gmra.mxu1 %v10152_v5  ;;  %v7026_v9 = vld [vmem:[#allocation9 + $0x2c8] sm:$0xf0]  ;;  %v8417_v30 = vld [vmem:[#allocation9 + $0x234] sm:$0xf]  ;;  %v6954_v31 = vld [vmem:[#allocation9 + $0x238] sm:$0xf0] }
 0x3a7   : > { %3128 = vmatmul.bf16.vlgmr.msrb.gmra.mxu2 %v10154_v11  ;;  %3141 = vmatmul.bf16.vlgmr.msrb.gmra.mxu3 %v10156_v12  ;;  %v7090_v45 = vld [vmem:[#allocation9 + $0x348] sm:$0xf0]  ;;  %v7018_v48 = vld [vmem:[#allocation9 + $0x2b8] sm:$0xf0]  ;;  %v8449_v37 = vld [vmem:[#allocation9 + $0x334] sm:$0xf]  ;;  %v6957_v3 = vor.u32 %v8417_v30, %v6954_v31 }
 0x3a8   : > { %3150 = vmatpush.bf16.msra.mxu0 %v6701_v63  ;;  %3163 = vmatpush.bf16.msra.mxu1 %v6765_v0  ;;  %v7042_v63 = vld [vmem:[#allocation9 + $0x2e8] sm:$0xf0]  ;;  %v8455_v0 = vld [vmem:[#allocation9 + $0x364] sm:$0xf]  ;;  %v7082_v2 = vld [vmem:[#allocation9 + $0x338] sm:$0xf0] }
 0x3a9   : > { %3176 = vmatpush.bf16.msra.mxu2 %v6829_v19  ;;  %3189 = vmatpush.bf16.msra.mxu3 %v6893_v26  ;;  %v7106_v19 = vld [vmem:[#allocation9 + $0x368] sm:$0xf0]  ;;  %v6981_v26 = vor.u32 %v8423_v53, %v6978_v54  ;;  %v7045_v27 = vor.u32 %v8439_v62, %v7042_v63  ;;  %v8465_v38 = vld [vmem:[#allocation9 + $0x3b4] sm:$0xf]  ;;  %v7146_v8 = vld [vmem:[#allocation9 + $0x3b8] sm:$0xf0] }
 0x3aa   : > { %v7109_v47 = vor.u32 %v8455_v0, %v7106_v19  ;;  %v8415_v4 = vld [vmem:[#allocation9 + $0x224] sm:$0xf]  ;;  %v6946_v40 = vld [vmem:[#allocation9 + $0x228] sm:$0xf0]  ;;  %v8413_v54 = vld [vmem:[#allocation9 + $0x214] sm:$0xf] }
 0x3ab   : > { %v8431_v42 = vld [vmem:[#allocation9 + $0x2a4] sm:$0xf]  ;;  %v7010_v44 = vld [vmem:[#allocation9 + $0x2a8] sm:$0xf0]  ;;  %v8429_v63 = vld [vmem:[#allocation9 + $0x294] sm:$0xf] }
 0x3ac   : > { %3151 = vmatpush.bf16.msra.mxu0 %v6693_v15  ;;  %3164 = vmatpush.bf16.msra.mxu1 %v6757_v16  ;;  %v7034_v15 = vld [vmem:[#allocation9 + $0x2d8] sm:$0xf0]  ;;  %v8453_v16 = vld [vmem:[#allocation9 + $0x354] sm:$0xf]  ;;  %v8447_v56 = vld [vmem:[#allocation9 + $0x324] sm:$0xf]  ;;  %v7013_v53 = vor.u32 %v8431_v42, %v7010_v44 }
 0x3ad   : > { %3177 = vmatpush.bf16.msra.mxu2 %v6821_v43  ;;  %3190 = vmatpush.bf16.msra.mxu3 %v6885_v20  ;;  %v7162_v43 = vld [vmem:[#allocation9 + $0x3d8] sm:$0xf0]  ;;  %v6973_v20 = vor.u32 %v8421_v35, %v6970_v36  ;;  %v7037_v21 = vor.u32 %v8437_v14, %v7034_v15  ;;  %v7101_v24 = vor.u32 %v8453_v16, %v7098_v17  ;;  %v8445_v19 = vld [vmem:[#allocation9 + $0x314] sm:$0xf]  ;;  %v8411_v36 = vld [vmem:[#allocation9 + $0x204] sm:$0xf] }
 0x3ae   : > { %v7165_v25 = vor.u32 %v8469_v18, %v7162_v43  ;;  %v7002_v0 = vld [vmem:[#allocation9 + $0x298] sm:$0xf0]  ;;  %v8461_v6 = vld [vmem:[#allocation9 + $0x394] sm:$0xf]  ;;  %v8427_v15 = vld [vmem:[#allocation9 + $0x284] sm:$0xf] }
 0x3af   : > { %v7066_v28 = vld [vmem:[#allocation9 + $0x318] sm:$0xf0]  ;;  %v7005_v35 = vor.u32 %v8429_v63, %v7002_v0  ;;  %v6994_v16 = vld [vmem:[#allocation9 + $0x288] sm:$0xf0]  ;;  %v8443_v17 = vld [vmem:[#allocation9 + $0x304] sm:$0xf] }
 0x3b0   : > { %3152 = vmatpush.bf16.msra.mxu0 %v6685_v10  ;;  %3165 = vmatpush.bf16.msra.mxu1 %v6749_v29  ;;  %v8467_v10 = vld [vmem:[#allocation9 + $0x3c4] sm:$0xf]  ;;  %v7154_v29 = vld [vmem:[#allocation9 + $0x3c8] sm:$0xf0] }
 0x3b1   : > { %3178 = vmatpush.bf16.msra.mxu2 %v6813_v33  ;;  %3191 = vmatpush.bf16.msra.mxu3 %v6877_v34  ;;  %v7157_v33 = vor.u32 %v8467_v10, %v7154_v29  ;;  %v8433_v34 = vld [vmem:[#allocation9 + $0x2b4] sm:$0xf]  ;;  %v7058_v18 = vld [vmem:[#allocation9 + $0x308] sm:$0xf0]  ;;  %v8459_v43 = vld [vmem:[#allocation9 + $0x384] sm:$0xf] }
 0x3b2   : > { %v7021_v39 = vor.u32 %v8433_v34, %v7018_v48 }
 0x3b4   : > { %3153 = vmatpush.bf16.msra.mxu0 %v6677_v13  ;;  %3166 = vmatpush.bf16.msra.mxu1 %v6741_v41  ;;  %v7085_v13 = vor.u32 %v8449_v37, %v7082_v2  ;;  %v7149_v41 = vor.u32 %v8465_v38, %v7146_v8  ;;  %v2394_v37 = vld [vmem:[#allocation17 + $0x3] ss:$8 sm:$0xf] }
 0x3b5   : > { %3179 = vmatpush.bf16.msra.mxu2 %v6805_v49  ;;  %3192 = vmatpush.bf16.msra.mxu3 %v6869_v50  ;;  %v7074_v49 = vld [vmem:[#allocation9 + $0x328] sm:$0xf0]  ;;  %v8463_v50 = vld [vmem:[#allocation9 + $0x3a4] sm:$0xf] }
 0x3b7   : > { %3154 = vmatmul.bf16.vlgmr.msra.gmra.mxu0 %v10130_v59  ;;  %3167 = vmatmul.bf16.vlgmr.msra.gmra.mxu1 %v10132_v57  ;;  %v8435_v59 = vld [vmem:[#allocation9 + $0x2c4] sm:$0xf] }
 0x3b8   : > { %3198 = vmatpush.bf16.msrb.mxu0 %v6989_v51  ;;  %3211 = vmatpush.bf16.msrb.mxu1 %v7053_v52  ;;  %v8451_v57 = vld [vmem:[#allocation9 + $0x344] sm:$0xf]  ;;  %v7138_v51 = vld [vmem:[#allocation9 + $0x3a8] sm:$0xf0]  ;;  %v6949_v52 = vor.u32 %v8415_v4, %v6946_v40 }
 0x3b9   : > { %3224 = vmatpush.bf16.msrb.mxu2 %v7117_v55  ;;  %3237 = vmatpush.bf16.msrb.mxu3 %v7181_v61  ;;  %v7093_v32 = vor.u32 %v8451_v57, %v7090_v45  ;;  %v6938_v55 = vld [vmem:[#allocation9 + $0x218] sm:$0xf0]  ;;  %v7077_v61 = vor.u32 %v8447_v56, %v7074_v49  ;;  %v7141_v62 = vor.u32 %v8463_v50, %v7138_v51 }
 0x3ba   : > { %3180 = vmatmul.bf16.vlgmr.msra.gmra.mxu2 %v10134_v58  ;;  %3193 = vmatmul.bf16.vlgmr.msra.gmra.mxu3 %v10136_v60  ;;  %v6965_v58 = vor.u32 %v8419_v22, %v6962_v23  ;;  %v7029_v60 = vor.u32 %v8435_v59, %v7026_v9  ;;  %v6997_v22 = vor.u32 %v8427_v15, %v6994_v16  ;;  %v9347_v16 = vmov 256.0  }
 0x3bb   : > { %v7061_v23 = vor.u32 %v8443_v17, %v7058_v18  ;;  %8903 = vrcp.f32 %v9347_v16  ;;  %v3321_v17 = vld [vmem:[%s10930_s18 + $0x78] sm:$0xff] }
 0x3bc   : > { %3199 = vmatpush.bf16.msrb.mxu0 %v6981_v26  ;;  %3212 = vmatpush.bf16.msrb.mxu1 %v7045_v27  ;;  %v7130_v26 = vld [vmem:[#allocation9 + $0x398] sm:$0xf0]  ;;  %v6941_v27 = vor.u32 %v8413_v54, %v6938_v55  ;;  %v3337_v18 = vld [vmem:[%s10930_s18 + $0xf8] sm:$0xff] }
 0x3bd   : > { %3225 = vmatpush.bf16.msrb.mxu2 %v7109_v47  ;;  %3238 = vmatpush.bf16.msrb.mxu3 %v7173_v7  ;;  %v6930_v47 = vld [vmem:[#allocation9 + $0x208] sm:$0xf0]  ;;  %v7069_v7 = vor.u32 %v8445_v19, %v7066_v28  ;;  %v7133_v14 = vor.u32 %v8461_v6, %v7130_v26  ;;  %v3325_v16 = vld [vmem:[%s10930_s18 + $0x98] sm:$0xff] }
 0x3c0   : > { %3200 = vmatpush.bf16.msrb.mxu0 %v6973_v20  ;;  %3213 = vmatpush.bf16.msrb.mxu1 %v7037_v21  ;;  %v7122_v20 = vld [vmem:[#allocation9 + $0x388] sm:$0xf0]  ;;  %v6933_v21 = vor.u32 %v8411_v36, %v6930_v47 }
 0x3c1   : > { %3226 = vmatpush.bf16.msrb.mxu2 %v7101_v24  ;;  %3239 = vmatpush.bf16.msrb.mxu3 %v7165_v25  ;;  %v7125_v24 = vor.u32 %v8459_v43, %v7122_v20  ;;  %v3400_v43 = vld [vmem:[%s10931_s5 + $0x78] sm:$0xff] }
 0x3c2   : > { %v3416_v20 = vld [vmem:[%s10931_s5 + $0xf8] sm:$0xff] }
 0x3c4   : > { %3201 = vmatpush.bf16.msrb.mxu0 %v6965_v58  ;;  %3214 = vmatpush.bf16.msrb.mxu1 %v7029_v60 }
 0x3c5   : > { %3227 = vmatpush.bf16.msrb.mxu2 %v7093_v32  ;;  %3240 = vmatpush.bf16.msrb.mxu3 %v7157_v33 }
 0x3c8   : > { %3202 = vmatpush.bf16.msrb.mxu0 %v6957_v3  ;;  %3215 = vmatpush.bf16.msrb.mxu1 %v7021_v39 }
 0x3c9   : > { %3228 = vmatpush.bf16.msrb.mxu2 %v7085_v13  ;;  %3241 = vmatpush.bf16.msrb.mxu3 %v7149_v41 }
 0x3cc   : > { %3203 = vmatpush.bf16.msrb.mxu0 %v6949_v52  ;;  %3216 = vmatpush.bf16.msrb.mxu1 %v7013_v53 }
 0x3cd   : > { %3229 = vmatpush.bf16.msrb.mxu2 %v7077_v61  ;;  %3242 = vmatpush.bf16.msrb.mxu3 %v7141_v62 }
 0x3d0   : > { %3204 = vmatpush.bf16.msrb.mxu0 %v6941_v27  ;;  %3217 = vmatpush.bf16.msrb.mxu1 %v7005_v35 }
 0x3d1   : > { %3230 = vmatpush.bf16.msrb.mxu2 %v7069_v7  ;;  %3243 = vmatpush.bf16.msrb.mxu3 %v7133_v14 }
 0x3d4   : > { %3205 = vmatpush.bf16.msrb.mxu0 %v6933_v21  ;;  %3218 = vmatpush.bf16.msrb.mxu1 %v6997_v22  ;;  %v8904_v21 = vpop.eup %8903 }
 0x3d5   : > { %3231 = vmatpush.bf16.msrb.mxu2 %v7061_v23  ;;  %3244 = vmatpush.bf16.msrb.mxu3 %v7125_v24  ;;  %v3262_v22 = vmul.f32 256.0, %v8904_v21  ;;  %vm3266_vm5 = vweird.f32 %v8904_v21 }
 0x3d7   : > { %3206 = vmatmul.bf16.vlgmr.msrb.gmra.mxu0 %v10150_v1  ;;  %3219 = vmatmul.bf16.vlgmr.msrb.gmra.mxu1 %v10152_v5  ;;  %v3263_v23 = vsub.f32 1.0, %v3262_v22  ;;  %v3403_v22 = vld [vmem:[%s10931_s5 + $0x90] sm:$0xff] }
 0x3d8   : > { %3232 = vmatmul.bf16.vlgmr.msrb.gmra.mxu2 %v10154_v11  ;;  %3245 = vmatmul.bf16.vlgmr.msrb.gmra.mxu3 %v10156_v12  ;;  %v2395_v12 = vld [vmem:[#allocation17 + $0x3] ss:$8 sm:$0xf0] }
 0x3d9   : > { %v2396_v39 = vor.u32 %v2395_v12, %v2394_v37  ;;  %3345 = vmatpush.msra.mxu0 %v3321_v17  ;;  %3365 = vmatpush.msra.mxu1 %v3337_v18  ;;  %v3264_v24 = vmul.f32 %v8904_v21, %v3263_v23  ;;  %v3334_v37 = vld [vmem:[%s10930_s18 + $0xe0] sm:$0xff]  ;;  %v3388_v17 = vld [vmem:[%s10931_s5 + $0x18] sm:$0xff]  ;;  %v3307_v23 = vld [vmem:[%s10930_s18 + $0x8] sm:$0xff] }
 0x3da   : > { %3424 = vmatpush.msra.mxu2 %v3400_v43  ;;  %3444 = vmatpush.msra.mxu3 %v3416_v20  ;;  %v3397_v12 = vld [vmem:[%s10931_s5 + $0x60] sm:$0xff]  ;;  %v3404_v18 = vld [vmem:[%s10931_s5 + $0x98] sm:$0xff]  ;;  %v3308_v43 = vld [vmem:[%s10930_s18 + $0x10] sm:$0xff] }
 0x3db   : > { %v2398_v4 = vperm.slane %v2396_v39, 0  ;;  %v2399_v40 = vperm.slane %v2396_v39, 1  ;;  %v3412_v39 = vld [vmem:[%s10931_s5 + $0xd8] sm:$0xff]  ;;  %v3324_v20 = vld [vmem:[%s10930_s18 + $0x90] sm:$0xff] }
 0x413   : > { %v3051_v25 = vpop.f32.mrf.mxu0  ;;  %v3064_v59 = vpop.f32.mrf.mxu1 }
 0x414   : > { %v3052_v42 = vadd.f32 %v3051_v25, %v2398_v4  ;;  %v3265_v25 = vadd.f32 %v8904_v21, %v3264_v24  ;;  %v3316_v4 = vld [vmem:[%s10930_s18 + $0x50] sm:$0xff]  ;;  %v3323_v24 = vld [vmem:[%s10930_s18 + $0x88] sm:$0xff] }
 0x416   : > { %v3065_v56 = vadd.f32 %v3064_v59, %v3052_v42  ;;  %v10182_v59 = vsel %vm3266_vm5, %v8904_v21, %v3265_v25  ;;  %v3315_v42 = vld [vmem:[%s10930_s18 + $0x48] sm:$0xff]  ;;  %v3387_v21 = vld [vmem:[%s10931_s5 + $0x10] sm:$0xff] }
 0x417   : > { %v3386_v25 = vld [vmem:[%s10931_s5 + $0x8] sm:$0xff] }
 0x41a   : > { %v3077_v9 = vpop.f32.mrf.mxu2  ;;  %v3090_v57 = vpop.f32.mrf.mxu3 }
 0x41b   : > { %v3053_v45 = vpop.f32.mrf.mxu0  ;;  %v3066_v10 = vpop.f32.mrf.mxu1  ;;  %v3078_v49 = vadd.f32 %v3077_v9, %v3065_v56  ;;  %v3394_v56 = vld [vmem:[%s10931_s5 + $0x48] sm:$0xff] }
 0x41d   : > { %v3091_v52 = vadd.f32 %v3090_v57, %v3078_v49  ;;  %v3410_v49 = vld [vmem:[%s10931_s5 + $0xc8] sm:$0xff] }
 0x422   : > { %v3079_v29 = vpop.f32.mrf.mxu2  ;;  %v3092_v58 = vpop.f32.mrf.mxu3 }
 0x423   : > { %v3103_v60 = vpop.f32.mrf.mxu0  ;;  %v3116_v30 = vpop.f32.mrf.mxu1 }
 0x424   : > { %v3104_v53 = vadd.f32 %v3103_v60, %v3091_v52  ;;  %v3393_v52 = vld [vmem:[%s10931_s5 + $0x40] sm:$0xff] }
 0x426   : > { %v3117_v63 = vadd.f32 %v3116_v30, %v3104_v53  ;;  %v3320_v30 = vld [vmem:[%s10930_s18 + $0x70] sm:$0xff]  ;;  %v3409_v53 = vld [vmem:[%s10931_s5 + $0xc0] sm:$0xff] }
 0x427   : > { %3346 = vmatpush.msra.mxu0 %v3320_v30 }
 0x42a   : > { %v3129_v31 = vpop.f32.mrf.mxu2  ;;  %v3142_v32 = vpop.f32.mrf.mxu3 }
 0x42b   : > { %v3105_v33 = vpop.f32.mrf.mxu0  ;;  %v3118_v1 = vpop.f32.mrf.mxu1  ;;  %v3130_v0 = vadd.f32 %v3129_v31, %v3117_v63  ;;  %v3336_v31 = vld [vmem:[%s10930_s18 + $0xf0] sm:$0xff] }
 0x42c   : > { %3366 = vmatpush.msra.mxu1 %v3336_v31  ;;  %v3415_v33 = vld [vmem:[%s10931_s5 + $0xf0] sm:$0xff]  ;;  %v3319_v1 = vld [vmem:[%s10930_s18 + $0x68] sm:$0xff] }
 0x42d   : > { %v3143_v36 = vadd.f32 %v3142_v32, %v3130_v0  ;;  %v3399_v32 = vld [vmem:[%s10931_s5 + $0x70] sm:$0xff]  ;;  %3445 = vmatpush.msra.mxu3 %v3415_v33  ;;  %3347 = vmatpush.msra.mxu0 %v3319_v1 }
 0x42e   : > { %3425 = vmatpush.msra.mxu2 %v3399_v32  ;;  %v3312_v63 = vld [vmem:[%s10930_s18 + $0x30] sm:$0xff] }
 0x42f   : > { %v3328_v0 = vld [vmem:[%s10930_s18 + $0xb0] sm:$0xff] }
 0x432   : > { %v3131_v34 = vpop.f32.mrf.mxu2  ;;  %v3144_v5 = vpop.f32.mrf.mxu3 }
 0x433   : > { %v3335_v34 = vld [vmem:[%s10930_s18 + $0xe8] sm:$0xff] }
 0x434   : > { %v3155_v48 = vpop.f32.mrf.mxu0  ;;  %v3168_v11 = vpop.f32.mrf.mxu1  ;;  %v3398_v5 = vld [vmem:[%s10931_s5 + $0x68] sm:$0xff]  ;;  %3367 = vmatpush.msra.mxu1 %v3335_v34 }
 0x435   : > { %v3156_v44 = vadd.f32 %v3155_v48, %v2399_v40  ;;  %v3414_v48 = vld [vmem:[%s10931_s5 + $0xe8] sm:$0xff]  ;;  %3426 = vmatpush.msra.mxu2 %v3398_v5  ;;  %v3332_v40 = vld [vmem:[%s10930_s18 + $0xd0] sm:$0xff] }
 0x436   : > { %3446 = vmatpush.msra.mxu3 %v3414_v48  ;;  %3368 = vmatpush.msra.mxu1 %v3334_v37  ;;  %v3251_v5 = vld [vmem:[#allocation17 + $0x4] ss:$8 sm:$0xf] }
 0x437   : > { %v3169_v50 = vadd.f32 %v3168_v11, %v3156_v44  ;;  %v3318_v11 = vld [vmem:[%s10930_s18 + $0x60] sm:$0xff]  ;;  %3427 = vmatpush.msra.mxu2 %v3397_v12  ;;  %v3331_v44 = vld [vmem:[%s10930_s18 + $0xc8] sm:$0xff] }
 0x438   : > { %3348 = vmatpush.msra.mxu0 %v3318_v11  ;;  %v3252_v48 = vld [vmem:[#allocation17 + $0x4] ss:$8 sm:$0xf0]  ;;  %v3255_v11 = vld [vmem:[#allocation17 + $0x5] ss:$8 sm:$0xf] }
 0x439   : > { %v3256_v12 = vld [vmem:[#allocation17 + $0x5] ss:$8 sm:$0xf0] }
 0x43c   : > { %v3157_v8 = vpop.f32.mrf.mxu0  ;;  %v3170_v3 = vpop.f32.mrf.mxu1 }
 0x43d   : > { %v3181_v2 = vpop.f32.mrf.mxu2  ;;  %v3194_v38 = vpop.f32.mrf.mxu3  ;;  %v3333_v8 = vld [vmem:[%s10930_s18 + $0xd8] sm:$0xff] }
 0x43e   : > { %v3182_v51 = vadd.f32 %v3181_v2, %v3169_v50  ;;  %v3413_v2 = vld [vmem:[%s10931_s5 + $0xe0] sm:$0xff]  ;;  %v3396_v3 = vld [vmem:[%s10931_s5 + $0x58] sm:$0xff]  ;;  %3369 = vmatpush.msra.mxu1 %v3333_v8  ;;  %v3257_v8 = vor.u32 %v3256_v12, %v3255_v11 }
 0x43f   : > { %3447 = vmatpush.msra.mxu3 %v3413_v2  ;;  %3428 = vmatpush.msra.mxu2 %v3396_v3  ;;  %v3314_v50 = vld [vmem:[%s10930_s18 + $0x40] sm:$0xff]  ;;  %v3253_v2 = vor.u32 %v3252_v48, %v3251_v5 }
 0x440   : > { %v3195_v54 = vadd.f32 %v3194_v38, %v3182_v51  ;;  %v3317_v38 = vld [vmem:[%s10930_s18 + $0x58] sm:$0xff]  ;;  %3370 = vmatpush.msra.mxu1 %v3332_v40  ;;  %v3330_v51 = vld [vmem:[%s10930_s18 + $0xc0] sm:$0xff] }
 0x441   : > { %3349 = vmatpush.msra.mxu0 %v3317_v38  ;;  %3448 = vmatpush.msra.mxu3 %v3412_v39  ;;  %v3291_v39 = vperm.slane %v3253_v2, 0 }
 0x442   : > { %3371 = vmatpush.msra.mxu1 %v3331_v44  ;;  %v3299_v44 = vperm.slane %v3257_v8, 1 }
 0x443   : > { %3350 = vmatpush.msra.mxu0 %v3316_v4  ;;  %v3292_v4 = vperm.slane %v3253_v2, 1  ;;  %v7412_v2 = vld [vmem:[#allocation14 + $0x1c0] sm:$0xf] }
 0x444   : > { %3372 = vmatpush.msra.mxu1 %v3330_v51 }
 0x445   : > { %v3183_v13 = vpop.f32.mrf.mxu2  ;;  %v3196_v41 = vpop.f32.mrf.mxu3  ;;  %3351 = vmatpush.msra.mxu0 %v3315_v42  ;;  %v3298_v42 = vperm.slane %v3257_v8, 0  ;;  %v7668_v8 = vld [vmem:[#allocation14 + $0x3c0] sm:$0xf] }
 0x446   : > { %v3395_v13 = vld [vmem:[%s10931_s5 + $0x50] sm:$0xff] }
 0x447   : > { %v3411_v41 = vld [vmem:[%s10931_s5 + $0xd0] sm:$0xff]  ;;  %3429 = vmatpush.msra.mxu2 %v3395_v13  ;;  %3352 = vmatpush.msra.mxu0 %v3314_v50 }
 0x448   : > { %3449 = vmatpush.msra.mxu3 %v3411_v41 }
 0x449   : > { %3430 = vmatpush.msra.mxu2 %v3394_v56 }
 0x44a   : > { %3450 = vmatpush.msra.mxu3 %v3410_v49 }
 0x44b   : > { %3431 = vmatpush.msra.mxu2 %v3393_v52 }
 0x44c   : > { %3451 = vmatpush.msra.mxu3 %v3409_v53 }
 0x454   : > { %v3207_v55 = vpop.f32.mrf.mxu0  ;;  %v3220_v61 = vpop.f32.mrf.mxu1 }
 0x455   : > { %v3208_v62 = vadd.f32 %v3207_v55, %v3195_v54  ;;  %v3313_v54 = vld [vmem:[%s10930_s18 + $0x38] sm:$0xff] }
 0x456   : > { %v3329_v55 = vld [vmem:[%s10930_s18 + $0xb8] sm:$0xff]  ;;  %3353 = vmatpush.msra.mxu0 %v3313_v54 }
 0x457   : > { %v3221_v19 = vadd.f32 %v3220_v61, %v3208_v62  ;;  %v3392_v61 = vld [vmem:[%s10931_s5 + $0x38] sm:$0xff]  ;;  %3373 = vmatpush.msra.mxu1 %v3329_v55  ;;  %v3473_v55 = vld [vmem:[#allocation11 + $0x18] sm:$0xff] }
 0x458   : > { %v3408_v62 = vld [vmem:[%s10931_s5 + $0xb8] sm:$0xff]  ;;  %3432 = vmatpush.msra.mxu2 %v3392_v61  ;;  %3354 = vmatpush.msra.mxu0 %v3312_v63  ;;  %v3470_v61 = vld [vmem:[#allocation11] sm:$0xff] }
 0x459   : > { %3452 = vmatpush.msra.mxu3 %v3408_v62  ;;  %3374 = vmatpush.msra.mxu1 %v3328_v0  ;;  %v3472_v54 = vld [vmem:[#allocation11 + $0x10] sm:$0xff]  ;;  %v3475_v62 = vld [vmem:[#allocation12 + $0x8] sm:$0xff] }
 0x45a   : > { %v3418_v63 = vld [vmem:[#allocation17 + $0x7] ss:$8 sm:$0xf] }
 0x45b   : > { %v3233_v28 = vpop.f32.mrf.mxu2  ;;  %v3246_v6 = vpop.f32.mrf.mxu3  ;;  %v3419_v0 = vld [vmem:[#allocation17 + $0x7] ss:$8 sm:$0xf0] }
 0x45c   : > { %v3234_v26 = vadd.f32 %v3233_v28, %v3221_v19  ;;  %v3209_v27 = vpop.f32.mrf.mxu0  ;;  %v3222_v35 = vpop.f32.mrf.mxu1  ;;  %v3391_v19 = vld [vmem:[%s10931_s5 + $0x30] sm:$0xff] }
 0x45d   : > { %v3407_v28 = vld [vmem:[%s10931_s5 + $0xb0] sm:$0xff]  ;;  %3433 = vmatpush.msra.mxu2 %v3391_v19  ;;  %v3390_v27 = vld [vmem:[%s10931_s5 + $0x28] sm:$0xff]  ;;  %v8913_v19 = vld [vmem:[%s10929_s14] sm:$0xff] }
 0x45e   : > { %v3247_v47 = vadd.f32 %v3246_v6, %v3234_v26  ;;  %3453 = vmatpush.msra.mxu3 %v3407_v28  ;;  %v3311_v6 = vld [vmem:[%s10930_s18 + $0x28] sm:$0xff]  ;;  %v3420_v28 = vor.u32 %v3419_v0, %v3418_v63  ;;  %v8587_v63 = vld [vmem:[#allocation14 + $0x384] sm:$0xf] }
 0x45f   : > { %v3327_v26 = vld [vmem:[%s10930_s18 + $0xa8] sm:$0xff]  ;;  %3355 = vmatpush.msra.mxu0 %v3311_v6  ;;  %3434 = vmatpush.msra.mxu2 %v3390_v27 }
 0x460   : > { %v3258_v7 = vadd.f32 %v3247_v47, %v3143_v36  ;;  %3375 = vmatpush.msra.mxu1 %v3327_v26  ;;  %v3406_v35 = vld [vmem:[%s10931_s5 + $0xa8] sm:$0xff]  ;;  %v3422_v6 = vperm.slane %v3420_v28, 0  ;;  %v7638_v28 = vld [vmem:[#allocation14 + $0x3a0] sm:$0xf0] }
 0x461   : > { %3454 = vmatpush.msra.mxu3 %v3406_v35  ;;  %v3339_v27 = vld [vmem:[#allocation17 + $0x6] ss:$8 sm:$0xf] }
 0x462   : > { %3259 = vadd.xlane.f32.xlu1 %v3258_v7  ;;  %v3389_v7 = vld [vmem:[%s10931_s5 + $0x20] sm:$0xff] }
 0x463   : > { %v3235_v14 = vpop.f32.mrf.mxu2  ;;  %v3248_v15 = vpop.f32.mrf.mxu3  ;;  %3435 = vmatpush.msra.mxu2 %v3389_v7  ;;  %v3340_v35 = vld [vmem:[#allocation17 + $0x6] ss:$8 sm:$0xf0] }
 0x464   : > { %v3405_v14 = vld [vmem:[%s10931_s5 + $0xa0] sm:$0xff]  ;;  %v3309_v15 = vld [vmem:[%s10930_s18 + $0x18] sm:$0xff] }
 0x465   : > { %3455 = vmatpush.msra.mxu3 %v3405_v14  ;;  %3436 = vmatpush.msra.mxu2 %v3388_v17  ;;  %v3341_v14 = vor.u32 %v3340_v35, %v3339_v27  ;;  %v7641_v35 = vor.u32 %v8587_v63, %v7638_v28  ;;  %v8551_v63 = vld [vmem:[#allocation14 + $0x25c] sm:$0xf0]  ;;  %v8547_v28 = vld [vmem:[#allocation14 + $0x244] sm:$0xf] }
 0x467   : > { %3456 = vmatpush.msra.mxu3 %v3404_v18  ;;  %3437 = vmatpush.msra.mxu2 %v3387_v21  ;;  %v3343_v17 = vperm.slane %v3341_v14, 0  ;;  %v8515_v14 = vld [vmem:[#allocation14 + $0x144] sm:$0xf] }
 0x469   : > { %3457 = vmatpush.msra.mxu3 %v3403_v22  ;;  %3438 = vmatpush.msra.mxu2 %v3386_v25 }
 0x4d5   : > { %v3260_v9 = vpop.xlane.xlu1 %3259 }
 0x4d6   : > { %v3268_v57 = vmul.f32 %v10182_v59, %v3260_v9  ;;  %v3402_v9 = vld [vmem:[%s10931_s5 + $0x88] sm:$0xff] }
 0x4d7   : > { %3458 = vmatpush.msra.mxu3 %v3402_v9  ;;  %v3561_v9 = vld [vmem:[#allocation17 + $0x40] ss:$8 sm:$0xf] }
 0x4d8   : > { %v10185_v45 = vsub.f32 %v3143_v36, %v3268_v57  ;;  %v10187_v10 = vsub.f32 %v3247_v47, %v3268_v57  ;;  %v3310_v36 = vld [vmem:[%s10930_s18 + $0x20] sm:$0xff] }
 0x4d9   : > { %v3326_v47 = vld [vmem:[%s10930_s18 + $0xa0] sm:$0xff]  ;;  %3356 = vmatpush.msra.mxu0 %v3310_v36 }
 0x4da   : > { %v3271_v29 = vmul.f32 %v10185_v45, %v10185_v45  ;;  %v3272_v58 = vmul.f32 %v10187_v10, %v10187_v10  ;;  %3376 = vmatpush.msra.mxu1 %v3326_v47  ;;  %v3306_v57 = vld [vmem:[%s10930_s18] sm:$0xff] }
 0x4db   : > { %3357 = vmatpush.msra.mxu0 %v3309_v15 }
 0x4dc   : > { %v3273_v60 = vadd.f32 %v3272_v58, %v3271_v29  ;;  %3377 = vmatpush.msra.mxu1 %v3325_v16  ;;  %v3322_v29 = vld [vmem:[%s10930_s18 + $0x80] sm:$0xff] }
 0x4dd   : > { %3358 = vmatpush.msra.mxu0 %v3308_v43  ;;  %v3385_v58 = vld [vmem:[%s10931_s5] sm:$0xff] }
 0x4de   : > { %3274 = vadd.xlane.f32.xlu1 %v3273_v60  ;;  %3378 = vmatpush.msra.mxu1 %v3324_v20  ;;  %v3401_v60 = vld [vmem:[%s10931_s5 + $0x80] sm:$0xff] }
 0x4df   : > { %3359 = vmatpush.msra.mxu0 %v3307_v23  ;;  %3439 = vmatpush.msra.mxu2 %v3385_v58  ;;  %v3464_v20 = vld [vmem:[#allocation4] sm:$0xff] }
 0x4e0   : > { %3379 = vmatpush.msra.mxu1 %v3323_v24  ;;  %3459 = vmatpush.msra.mxu3 %v3401_v60 }
 0x4e1   : > { %3360 = vmatpush.msra.mxu0 %v3306_v57  ;;  %3534 = vmatpush.msrb.mxu2 %v3472_v54  ;;  %v3562_v57 = vld [vmem:[#allocation17 + $0x40] ss:$8 sm:$0xf0] }
 0x4e2   : > { %3380 = vmatpush.msra.mxu1 %v3322_v29  ;;  %3554 = vmatpush.msrb.mxu3 %v3473_v55  ;;  %v3563_v29 = vor.u32 %v3562_v57, %v3561_v9  ;;  %v8591_v54 = vld [vmem:[#allocation14 + $0x39c] sm:$0xf0] }
 0x4e3   : > { %3535 = vmatpush.msrb.mxu2 %v3470_v61  ;;  %v7572_v9 = vld [vmem:[#allocation14 + $0x300] sm:$0xf] }
 0x4e4   : > { %3511 = vmatpush.msrb.mxu1 %v3475_v62  ;;  %v7382_v62 = vld [vmem:[#allocation14 + $0x1a0] sm:$0xf0]  ;;  %v8575_v57 = vld [vmem:[#allocation14 + $0x31c] sm:$0xf0] }
 0x551   : > { %v3275_v30 = vpop.xlane.xlu1 %3274 }
 0x552   : > { %v3276_v31 = vmul.f32 %v3275_v30, %v10182_v59  ;;  %v3565_v30 = vperm.slane %v3563_v29, 0 }
 0x554   : > { %v3277_v32 = vadd.f32 1e-05, %v3276_v31  ;;  %v3566_v31 = vperm.slane %v3563_v29, 1  ;;  %v8507_v29 = vld [vmem:[#allocation14 + $0x104] sm:$0xf] }
 0x556   : > { %8905 = vrsqrt.f32 %v3277_v32  ;;  %vm3284_vm7 = vweird.f32 %v3277_v32 }
 0x55c   : > { %v8906_v33 = vpop.eup %8905 }
 0x55d   : > { %v3279_v1 = vmul.f32 %v8906_v33, %v3277_v32  ;;  %vm3285_vm6 = vweird.f32 %v8906_v33 }
 0x55e   : > { %vm3286_vm8 = vmor %vm3284_vm7, %vm3285_vm6 }
 0x55f   : > { %v3280_v34 = vmul.f32 %v8906_v33, %v3279_v1 }
 0x561   : > { %v3281_v37 = vmul.f32 0.5, %v3280_v34 }
 0x563   : > { %v3282_v38 = vsub.f32 1.5, %v3281_v37 }
 0x565   : > { %v3283_v3 = vmul.f32 %v8906_v33, %v3282_v38  ;;  %v8535_v38 = vld [vmem:[#allocation14 + $0x1dc] sm:$0xf0] }
 0x567   : > { %v3287_v40 = vsel %vm3286_vm8, %v8906_v33, %v3283_v3  ;;  %v7413_v3 = vor.u32 %v8535_v38, %v7412_v2  ;;  %v8563_v2 = vld [vmem:[#allocation14 + $0x2c4] sm:$0xf] }
 0x568   : > { %v3288_v13 = vmul.f32 %v3287_v40, %v10185_v45  ;;  %v3289_v41 = vmul.f32 %v3287_v40, %v10187_v10  ;;  %v3471_v45 = vld [vmem:[#allocation11 + $0x8] sm:$0xff]  ;;  %v3474_v10 = vld [vmem:[#allocation12] sm:$0xff]  ;;  %v7414_v40 = vld [vmem:[#allocation14 + $0x1e0] sm:$0xf0] }
 0x569   : > { %3555 = vmatpush.msrb.mxu3 %v3471_v45  ;;  %3491 = vmatpush.msrb.mxu0 %v3474_v10  ;;  %v8523_v10 = vld [vmem:[#allocation14 + $0x184] sm:$0xf] }
 0x56a   : > { %v3295_v56 = vmul.f32 %v3291_v39, %v3288_v13  ;;  %v3296_v49 = vmul.f32 %v3292_v4, %v3289_v41  ;;  %v8599_v39 = vld [vmem:[#allocation14 + $0x3dc] sm:$0xf0]  ;;  %v8531_v4 = vld [vmem:[#allocation14 + $0x1c4] sm:$0xf] }
 0x56b   : > { %v7542_v38 = vld [vmem:[#allocation14 + $0x2e0] sm:$0xf0] }
 0x56c   : > { %v3302_v50 = vadd.f32 %v3298_v42, %v3295_v56  ;;  %v3303_v51 = vadd.f32 %v3299_v44, %v3296_v49  ;;  %v7669_v42 = vor.u32 %v8599_v39, %v7668_v8  ;;  %v7417_v44 = vor.u32 %v8531_v4, %v7414_v40  ;;  %v8595_v56 = vld [vmem:[#allocation14 + $0x3c4] sm:$0xf]  ;;  %v7252_v39 = vld [vmem:[#allocation14 + $0x80] sm:$0xf] }
 0x56d   : > { %v7670_v49 = vld [vmem:[#allocation14 + $0x3e0] sm:$0xf0]  ;;  %v8495_v4 = vld [vmem:[#allocation14 + $0x9c] sm:$0xf0] }
 0x56e   : > { %v3304_v52 = vmax.f32 %v3302_v50, 0.0  ;;  %v3305_v53 = vmax.f32 %v3303_v51, 0.0  ;;  %v7380_v50 = vld [vmem:[#allocation14 + $0x180] sm:$0xf]  ;;  %v7673_v51 = vor.u32 %v8595_v56, %v7670_v49  ;;  %v8491_v49 = vld [vmem:[#allocation14 + $0x84] sm:$0xf] }
 0x56f   : > { %v8559_v56 = vld [vmem:[#allocation14 + $0x29c] sm:$0xf0] }
 0x570   : > { %3361 = vmatmul.f32.vlgmr.msra.gmra.mxu0 %v3304_v52  ;;  %3381 = vmatmul.f32.vlgmr.msra.gmra.mxu1 %v3305_v53 }
 0x571   : > { %3440 = vmatmul.f32.vlgmr.msra.gmra.mxu2 %v3304_v52  ;;  %3460 = vmatmul.f32.vlgmr.msra.gmra.mxu3 %v3305_v53  ;;  %v8527_v52 = vld [vmem:[#allocation14 + $0x19c] sm:$0xf0] }
 0x572   : > { %4411 = vmatpush.bf16.msra.mxu0 %v7413_v3  ;;  %v7636_v53 = vld [vmem:[#allocation14 + $0x380] sm:$0xf]  ;;  %4424 = vmatpush.bf16.msra.mxu1 %v7669_v42  ;;  %v7381_v45 = vor.u32 %v8527_v52, %v7380_v50  ;;  %v7545_v42 = vor.u32 %v8563_v2, %v7542_v38  ;;  %v7254_v50 = vld [vmem:[#allocation14 + $0xa0] sm:$0xf0]  ;;  %v8592_v2 = vld [vmem:[#allocation14 + $0x3a4] sm:$0xf0] }
 0x573   : > { %4437 = vmatpush.bf16.msra.mxu2 %v7417_v44  ;;  %4450 = vmatpush.bf16.msra.mxu3 %v7673_v51  ;;  %v7637_v0 = vor.u32 %v8591_v54, %v7636_v53  ;;  %v7508_v44 = vld [vmem:[#allocation14 + $0x280] sm:$0xf]  ;;  %v8555_v51 = vld [vmem:[#allocation14 + $0x284] sm:$0xf]  ;;  %v7253_v53 = vor.u32 %v8495_v4, %v7252_v39  ;;  %v8524_v38 = vld [vmem:[#allocation14 + $0x18c] sm:$0xf] }
 0x574   : > { %v7510_v52 = vld [vmem:[#allocation14 + $0x2a0] sm:$0xf0]  ;;  %v7509_v54 = vor.u32 %v8559_v56, %v7508_v44  ;;  %v8588_v39 = vld [vmem:[#allocation14 + $0x38c] sm:$0xf]  ;;  %v7356_v44 = vld [vmem:[#allocation14 + $0x148] sm:$0xf] }
 0x575   : > { %v7646_v4 = vld [vmem:[#allocation14 + $0x3a8] sm:$0xf0]  ;;  %v8520_v56 = vld [vmem:[#allocation14 + $0x164] sm:$0xf0] }
 0x576   : > { %4412 = vmatpush.bf16.msra.mxu0 %v7381_v45  ;;  %4425 = vmatpush.bf16.msra.mxu1 %v7637_v0  ;;  %v7257_v45 = vor.u32 %v8491_v49, %v7254_v50  ;;  %v8483_v0 = vld [vmem:[#allocation14 + $0x44] sm:$0xf]  ;;  %v7612_v49 = vld [vmem:[#allocation14 + $0x348] sm:$0xf]  ;;  %v7357_v50 = vor.u32 %v8520_v56, %v7356_v44  ;;  %v7486_v44 = vld [vmem:[#allocation14 + $0x268] sm:$0xf0] }
 0x577   : > { %4451 = vmatpush.bf16.msra.mxu3 %v7641_v35 }
 0x578   : > { %7182 = vmatmul.msk.f32.vlgmr.msrb.gmra.mxu0 %vm1929_vm0, %v8913_v19  ;;  %7183 = vmatmul.msk.f32.vlgmr.msrb.gmra.mxu1 %vm1929_vm0, %v8913_v19  ;;  %v7385_v19 = vor.u32 %v8523_v10, %v7382_v62  ;;  %v7513_v10 = vor.u32 %v8555_v51, %v7510_v52  ;;  %v7476_v62 = vld [vmem:[#allocation14 + $0x240] sm:$0xf]  ;;  %v8584_v51 = vld [vmem:[#allocation14 + $0x364] sm:$0xf0]  ;;  %v8516_v52 = vld [vmem:[#allocation14 + $0x14c] sm:$0xf] }
 0x57a   : > { %4438 = vmatpush.bf16.msra.mxu2 %v7385_v19  ;;  %v7222_v19 = vld [vmem:[#allocation14 + $0x60] sm:$0xf0] }
 0x57b   : > { %v7225_v35 = vor.u32 %v8483_v0, %v7222_v19  ;;  %v7580_v0 = vld [vmem:[#allocation14 + $0x308] sm:$0xf] }
 0x5ed   : > { %v3362_v18 = vpop.f32.mrf.mxu0  ;;  %v3382_v22 = vpop.f32.mrf.mxu1 }
 0x5ee   : > { %v3363_v43 = vadd.f32 %v3362_v18, %v3343_v17  ;;  %v8579_v17 = vld [vmem:[#allocation14 + $0x344] sm:$0xf] }
 0x5ef   : > { %v7606_v18 = vld [vmem:[#allocation14 + $0x360] sm:$0xf0] }
 0x5f0   : > { %v10384_v23 = vadd.f32 %v3382_v22, %v3363_v43 }
 0x5f4   : > { %v3441_v26 = vpop.f32.mrf.mxu2  ;;  %v3461_v47 = vpop.f32.mrf.mxu3 }
 0x5f5   : > { %v3442_v36 = vadd.f32 %v3441_v26, %v3422_v6  ;;  %v3493_v58 = vpop.f32.mrf.mxu0  ;;  %v3513_v60 = vpop.f32.mrf.mxu1  ;;  %v7348_v6 = vld [vmem:[#allocation14 + $0x140] sm:$0xf] }
 0x5f6   : > { %v8519_v26 = vld [vmem:[#allocation14 + $0x15c] sm:$0xf0] }
 0x5f7   : > { %v10381_v7 = vadd.f32 %v3461_v47, %v3442_v36  ;;  %v7604_v36 = vld [vmem:[#allocation14 + $0x340] sm:$0xf] }
 0x5f8   : > { %v8583_v47 = vld [vmem:[#allocation14 + $0x35c] sm:$0xf0] }
 0x5f9   : > { %v3465_v15 = vmul.f32 0.5, %v10381_v7  ;;  %v7605_v43 = vor.u32 %v8583_v47, %v7604_v36  ;;  %v7188_v47 = vld [vmem:[#allocation14] sm:$0xf] }
 0x5fb   : > { %v3466_v16 = vmul.f32 1.442695, %v3465_v15  ;;  %v7349_v15 = vor.u32 %v8519_v26, %v7348_v6  ;;  %4426 = vmatpush.bf16.msra.mxu1 %v7605_v43  ;;  %v7478_v6 = vld [vmem:[#allocation14 + $0x260] sm:$0xf0] }
 0x5fc   : > { %v7481_v36 = vor.u32 %v8547_v28, %v7478_v6  ;;  %v7190_v43 = vld [vmem:[#allocation14 + $0x20] sm:$0xf0]  ;;  %v8576_v28 = vld [vmem:[#allocation14 + $0x324] sm:$0xf0]  ;;  %v8508_v6 = vld [vmem:[#allocation14 + $0x10c] sm:$0xf] }
 0x5fd   : > { %8907 = vpow2.f32 %v3466_v16  ;;  %v7350_v16 = vld [vmem:[#allocation14 + $0x160] sm:$0xf0]  ;;  %4413 = vmatpush.bf16.msra.mxu0 %v7349_v15  ;;  %v7444_v15 = vld [vmem:[#allocation14 + $0x200] sm:$0xf] }
 0x5fe   : > { %v7353_v22 = vor.u32 %v8515_v14, %v7350_v16  ;;  %v8479_v14 = vld [vmem:[#allocation14 + $0x1c] sm:$0xf0] }
 0x5ff   : > { %v7189_v16 = vor.u32 %v8479_v14, %v7188_v47  ;;  %v7582_v47 = vld [vmem:[#allocation14 + $0x328] sm:$0xf0] }
 0x600   : > { %4439 = vmatpush.bf16.msra.mxu2 %v7353_v22  ;;  %v8539_v22 = vld [vmem:[#allocation14 + $0x204] sm:$0xf] }
 0x603   : > { %v8908_v21 = vpop.eup %8907 }
 0x604   : > { %v3468_v24 = vmul.f32 %v8908_v21, %v3464_v20  ;;  %v7316_v20 = vld [vmem:[#allocation14 + $0x100] sm:$0xf] }
 0x605   : > { %v8511_v21 = vld [vmem:[#allocation14 + $0x11c] sm:$0xf0] }
 0x606   : > { %v10387_v25 = vadd.f32 %v3468_v24, %v10384_v23  ;;  %v7609_v24 = vor.u32 %v8579_v17, %v7606_v18  ;;  %v8543_v17 = vld [vmem:[#allocation14 + $0x21c] sm:$0xf0]  ;;  %v8475_v18 = vld [vmem:[#allocation14 + $0x4] sm:$0xf] }
 0x608   : > { %7184 = vmatmul.msk.f32.vlgmr.msrb.gmra.mxu2 %vm3516_vm9, %v10387_v25  ;;  %7185 = vmatmul.msk.f32.vlgmr.msrb.gmra.mxu3 %vm3516_vm9, %v10387_v25 }
 0x609   : > { %4452 = vmatpush.bf16.msra.mxu3 %v7609_v24  ;;  %v7446_v24 = vld [vmem:[#allocation14 + $0x220] sm:$0xf0] }
 0x68b   : > { %v3537_v32 = vpop.f32.mrf.mxu2  ;;  %v3557_v33 = vpop.f32.mrf.mxu3 }
 0x68c   : > { %v3538_v1 = vadd.f32 %v3537_v32, %v3493_v58  ;;  %v3558_v34 = vadd.f32 %v3557_v33, %v3513_v60  ;;  %v7318_v58 = vld [vmem:[#allocation14 + $0x120] sm:$0xf0]  ;;  %v7573_v32 = vor.u32 %v8575_v57, %v7572_v9  ;;  %v7284_v33 = vld [vmem:[#allocation14 + $0xc0] sm:$0xf]  ;;  %v7420_v9 = vld [vmem:[#allocation14 + $0x1c8] sm:$0xf]  ;;  %v7449_v57 = vor.u32 %v8539_v22, %v7446_v24 }
 0x68d   : > { %v8571_v60 = vld [vmem:[#allocation14 + $0x304] sm:$0xf] }
 0x68e   : > { %v3569_v5 = vadd.f32 %v3565_v30, %v3538_v1  ;;  %v3570_v48 = vadd.f32 %v3566_v31, %v3558_v34  ;;  %v7574_v30 = vld [vmem:[#allocation14 + $0x320] sm:$0xf0]  ;;  %v7317_v31 = vor.u32 %v8511_v21, %v7316_v20  ;;  %v8503_v1 = vld [vmem:[#allocation14 + $0xdc] sm:$0xf0]  ;;  %v7321_v34 = vor.u32 %v8507_v29, %v7318_v58  ;;  %4427 = vmatpush.bf16.msra.mxu1 %v7573_v32  ;;  %v8536_v29 = vld [vmem:[#allocation14 + $0x1e4] sm:$0xf0] }
 0x68f   : > { %v7285_v8 = vor.u32 %v8503_v1, %v7284_v33  ;;  %v7445_v20 = vor.u32 %v8543_v17, %v7444_v15  ;;  %v7193_v21 = vor.u32 %v8475_v18, %v7190_v43  ;;  %v7676_v58 = vld [vmem:[#allocation14 + $0x3c8] sm:$0xf]  ;;  %v7422_v32 = vld [vmem:[#allocation14 + $0x1e8] sm:$0xf0] }
 0x690   : > { %v3579_v11 = vadd.f32 %v3570_v48, %v3569_v5  ;;  %4414 = vmatpush.bf16.msra.mxu0 %v7317_v31  ;;  %4440 = vmatpush.bf16.msra.mxu2 %v7321_v34  ;;  %v8532_v31 = vld [vmem:[#allocation14 + $0x1cc] sm:$0xf]  ;;  %v7292_v15 = vld [vmem:[#allocation14 + $0xc8] sm:$0xf] }
 0x691   : > { %v8596_v33 = vld [vmem:[#allocation14 + $0x3cc] sm:$0xf]  ;;  %v7425_v1 = vor.u32 %v8532_v31, %v7422_v32  ;;  %v7548_v17 = vld [vmem:[#allocation14 + $0x2c8] sm:$0xf] }
 0x692   : > { %3580 = vadd.xlane.f32.xlu2 %v3579_v11  ;;  %v8567_v11 = vld [vmem:[#allocation14 + $0x2dc] sm:$0xf0]  ;;  %v7678_v34 = vld [vmem:[#allocation14 + $0x3e8] sm:$0xf0]  ;;  %v8568_v43 = vld [vmem:[#allocation14 + $0x2e4] sm:$0xf0] }
 0x693   : > { %v7549_v22 = vor.u32 %v8568_v43, %v7548_v17  ;;  %v8560_v31 = vld [vmem:[#allocation14 + $0x2a4] sm:$0xf0]  ;;  %v8492_v32 = vld [vmem:[#allocation14 + $0x8c] sm:$0xf] }
 0x694   : > { %4415 = vmatpush.bf16.msra.mxu0 %v7285_v8 }
 0x698   : > { %4416 = vmatpush.bf16.msra.mxu0 %v7253_v53  ;;  %v7358_v53 = vld [vmem:[#allocation14 + $0x168] sm:$0xf0] }
 0x705   : > { %v3581_v37 = vpop.xlane.xlu2 %3580 }
 0x706   : > { %v3582_v12 = vmul.f32 %v3581_v37, %v10182_v59  ;;  %v8499_v37 = vld [vmem:[#allocation14 + $0xc4] sm:$0xf] }
 0x708   : > { %v10394_v13 = vsub.f32 %v3569_v5, %v3582_v12  ;;  %v10396_v41 = vsub.f32 %v3570_v48, %v3582_v12  ;;  %v7577_v5 = vor.u32 %v8571_v60, %v7574_v30  ;;  %v7540_v48 = vld [vmem:[#allocation14 + $0x2c0] sm:$0xf]  ;;  %v7286_v12 = vld [vmem:[#allocation14 + $0xe0] sm:$0xf0]  ;;  %v8600_v60 = vld [vmem:[#allocation14 + $0x3e4] sm:$0xf0] }
 0x709   : > { %v7541_v3 = vor.u32 %v8567_v11, %v7540_v48  ;;  %v7289_v40 = vor.u32 %v8499_v37, %v7286_v12  ;;  %v7677_v30 = vor.u32 %v8600_v60, %v7676_v58  ;;  %v8528_v48 = vld [vmem:[#allocation14 + $0x1a4] sm:$0xf0]  ;;  %v7681_v11 = vor.u32 %v8596_v33, %v7678_v34  ;;  %v7262_v33 = vld [vmem:[#allocation14 + $0xa8] sm:$0xf0] }
 0x70a   : > { %v3585_v55 = vmul.f32 %v10394_v13, %v10394_v13  ;;  %v3586_v61 = vmul.f32 %v10396_v41, %v10396_v41  ;;  %4453 = vmatpush.bf16.msra.mxu3 %v7577_v5  ;;  %v7388_v5 = vld [vmem:[#allocation14 + $0x188] sm:$0xf]  ;;  %v7265_v34 = vor.u32 %v8492_v32, %v7262_v33  ;;  %v7684_v32 = vld [vmem:[#allocation14 + $0x3d0] sm:$0xf] }
 0x70b   : > { %4428 = vmatpush.bf16.msra.mxu1 %v7541_v3  ;;  %4441 = vmatpush.bf16.msra.mxu2 %v7289_v40  ;;  %v7389_v37 = vor.u32 %v8528_v48, %v7388_v5  ;;  %v7644_v12 = vld [vmem:[#allocation14 + $0x388] sm:$0xf]  ;;  %v7390_v3 = vld [vmem:[#allocation14 + $0x1a8] sm:$0xf0]  ;;  %v8601_v33 = vld [vmem:[#allocation14 + $0x3ec] sm:$0xf0] }
 0x70c   : > { %v3587_v27 = vadd.f32 %v3586_v61, %v3585_v55  ;;  %v7220_v55 = vld [vmem:[#allocation14 + $0x40] sm:$0xf]  ;;  %v7645_v8 = vor.u32 %v8592_v2, %v7644_v12  ;;  %v7393_v40 = vor.u32 %v8524_v38, %v7390_v3  ;;  %v7260_v58 = vld [vmem:[#allocation14 + $0x88] sm:$0xf]  ;;  %v8556_v5 = vld [vmem:[#allocation14 + $0x28c] sm:$0xf] }
 0x70d   : > { %v8487_v61 = vld [vmem:[#allocation14 + $0x5c] sm:$0xf0]  ;;  %v8496_v60 = vld [vmem:[#allocation14 + $0xa4] sm:$0xf0]  ;;  %v7518_v48 = vld [vmem:[#allocation14 + $0x2a8] sm:$0xf0] }
 0x70e   : > { %3588 = vadd.xlane.f32.xlu2 %v3587_v27  ;;  %4454 = vmatpush.bf16.msra.mxu3 %v7545_v42  ;;  %v7221_v26 = vor.u32 %v8487_v61, %v7220_v55  ;;  %v7477_v27 = vor.u32 %v8551_v63, %v7476_v62  ;;  %v7649_v42 = vor.u32 %v8588_v39, %v7646_v4  ;;  %v8580_v61 = vld [vmem:[#allocation14 + $0x34c] sm:$0xf]  ;;  %v7324_v62 = vld [vmem:[#allocation14 + $0x108] sm:$0xf] }
 0x70f   : > { %4429 = vmatpush.bf16.msra.mxu1 %v7509_v54  ;;  %4442 = vmatpush.bf16.msra.mxu2 %v7257_v45  ;;  %v7613_v54 = vor.u32 %v8584_v51, %v7612_v49  ;;  %v7361_v55 = vor.u32 %v8516_v52, %v7358_v53  ;;  %v7614_v45 = vld [vmem:[#allocation14 + $0x368] sm:$0xf0]  ;;  %v8512_v63 = vld [vmem:[#allocation14 + $0x124] sm:$0xf0] }
 0x710   : > { %4417 = vmatpush.bf16.msra.mxu0 %v7221_v26  ;;  %v7325_v19 = vor.u32 %v8512_v63, %v7324_v62  ;;  %v7326_v26 = vld [vmem:[#allocation14 + $0x128] sm:$0xf0]  ;;  %v8488_v12 = vld [vmem:[#allocation14 + $0x64] sm:$0xf0] }
 0x711   : > { %v7484_v2 = vld [vmem:[#allocation14 + $0x248] sm:$0xf]  ;;  %v8484_v3 = vld [vmem:[#allocation14 + $0x4c] sm:$0xf] }
 0x712   : > { %4455 = vmatpush.bf16.msra.mxu3 %v7513_v10  ;;  %v7617_v10 = vor.u32 %v8580_v61, %v7614_v45  ;;  %v7230_v39 = vld [vmem:[#allocation14 + $0x68] sm:$0xf0]  ;;  %v7196_v49 = vld [vmem:[#allocation14 + $0x8] sm:$0xf] }
 0x713   : > { %4430 = vmatpush.bf16.msra.mxu1 %v7477_v27  ;;  %4443 = vmatpush.bf16.msra.mxu2 %v7225_v35  ;;  %v7581_v27 = vor.u32 %v8576_v28, %v7580_v0  ;;  %v7329_v35 = vor.u32 %v8508_v6, %v7326_v26  ;;  %v7452_v51 = vld [vmem:[#allocation14 + $0x208] sm:$0xf]  ;;  %v7454_v62 = vld [vmem:[#allocation14 + $0x228] sm:$0xf0] }
 0x714   : > { %4418 = vmatpush.bf16.msra.mxu0 %v7189_v16  ;;  %v8504_v16 = vld [vmem:[#allocation14 + $0xe4] sm:$0xf0] }
 0x715   : > { %v7293_v18 = vor.u32 %v8504_v16, %v7292_v15  ;;  %v8544_v53 = vld [vmem:[#allocation14 + $0x224] sm:$0xf0] }
 0x716   : > { %4456 = vmatpush.bf16.msra.mxu3 %v7481_v36  ;;  %v8572_v36 = vld [vmem:[#allocation14 + $0x30c] sm:$0xf]  ;;  %v7453_v61 = vor.u32 %v8544_v53, %v7452_v51  ;;  %v8521_v53 = vld [vmem:[#allocation14 + $0x16c] sm:$0xf0] }
 0x717   : > { %4431 = vmatpush.bf16.msra.mxu1 %v7445_v20  ;;  %4444 = vmatpush.bf16.msra.mxu2 %v7193_v21  ;;  %v7585_v14 = vor.u32 %v8572_v36, %v7582_v47  ;;  %v8500_v20 = vld [vmem:[#allocation14 + $0xcc] sm:$0xf]  ;;  %v3576_v47 = vld [vmem:[#allocation17 + $0x42] ss:$8 sm:$0xf] }
 0x718   : > { %v7294_v21 = vld [vmem:[#allocation14 + $0xe8] sm:$0xf0] }
 0x719   : > { %v7297_v24 = vor.u32 %v8500_v20, %v7294_v21 }
 0x71a   : > { %4457 = vmatpush.bf16.msra.mxu3 %v7449_v57  ;;  %v7550_v57 = vld [vmem:[#allocation14 + $0x2e8] sm:$0xf0] }
 0x71b   : > { %4476 = vmatpush.bf16.msrb.mxu1 %v7677_v30  ;;  %4489 = vmatpush.bf16.msrb.mxu2 %v7425_v1  ;;  %v7261_v30 = vor.u32 %v8496_v60, %v7260_v58 }
 0x71e   : > { %4502 = vmatpush.bf16.msrb.mxu3 %v7681_v11  ;;  %v7521_v11 = vor.u32 %v8556_v5, %v7518_v48 }
 0x71f   : > { %4477 = vmatpush.bf16.msrb.mxu1 %v7645_v8  ;;  %4490 = vmatpush.bf16.msrb.mxu2 %v7393_v40  ;;  %v8552_v8 = vld [vmem:[#allocation14 + $0x264] sm:$0xf0]  ;;  %v7233_v40 = vor.u32 %v8484_v3, %v7230_v39 }
 0x720   : > { %v7485_v4 = vor.u32 %v8552_v8, %v7484_v2  ;;  %v8529_v8 = vld [vmem:[#allocation14 + $0x1ac] sm:$0xf0] }
 0x722   : > { %4503 = vmatpush.bf16.msrb.mxu3 %v7649_v42  ;;  %v8548_v42 = vld [vmem:[#allocation14 + $0x24c] sm:$0xf] }
 0x723   : > { %4478 = vmatpush.bf16.msrb.mxu1 %v7613_v54  ;;  %4491 = vmatpush.bf16.msrb.mxu2 %v7361_v55  ;;  %v7489_v56 = vor.u32 %v8548_v42, %v7486_v44  ;;  %v8476_v54 = vld [vmem:[#allocation14 + $0xc] sm:$0xf]  ;;  %v8525_v42 = vld [vmem:[#allocation14 + $0x194] sm:$0xf] }
 0x724   : > { %v7198_v55 = vld [vmem:[#allocation14 + $0x28] sm:$0xf0]  ;;  %v7398_v44 = vld [vmem:[#allocation14 + $0x1b0] sm:$0xf0] }
 0x725   : > { %v7201_v45 = vor.u32 %v8476_v54, %v7198_v55  ;;  %v7401_v54 = vor.u32 %v8525_v42, %v7398_v44  ;;  %v8553_v42 = vld [vmem:[#allocation14 + $0x26c] sm:$0xf0]  ;;  %v8485_v44 = vld [vmem:[#allocation14 + $0x54] sm:$0xf] }
 0x726   : > { %4854 = vrot.lane.b32.xlu2 %v10381_v7, %s9348_s30  ;;  %v7421_v7 = vor.u32 %v8536_v29, %v7420_v9  ;;  %4504 = vmatpush.bf16.msrb.mxu3 %v7617_v10  ;;  %v8564_v9 = vld [vmem:[#allocation14 + $0x2cc] sm:$0xf] }
 0x727   : > { %4479 = vmatpush.bf16.msrb.mxu1 %v7581_v27  ;;  %4492 = vmatpush.bf16.msrb.mxu2 %v7329_v35  ;;  %v7553_v29 = vor.u32 %v8564_v9, %v7550_v57  ;;  %v8540_v10 = vld [vmem:[#allocation14 + $0x20c] sm:$0xf]  ;;  %v3572_v27 = vld [vmem:[#allocation17 + $0x41] ss:$8 sm:$0xf] }
 0x728   : > { %4463 = vmatpush.bf16.msrb.mxu0 %v7421_v7  ;;  %v7516_v7 = vld [vmem:[#allocation14 + $0x288] sm:$0xf]  ;;  %v7457_v0 = vor.u32 %v8540_v10, %v7454_v62  ;;  %v8517_v10 = vld [vmem:[#allocation14 + $0x154] sm:$0xf] }
 0x729   : > { %v7517_v1 = vor.u32 %v8560_v31, %v7516_v7  ;;  %v3573_v35 = vld [vmem:[#allocation17 + $0x41] ss:$8 sm:$0xf0]  ;;  %v7366_v62 = vld [vmem:[#allocation14 + $0x170] sm:$0xf0] }
 0x72a   : > { %4505 = vmatpush.bf16.msrb.mxu3 %v7585_v14  ;;  %v3577_v14 = vld [vmem:[#allocation17 + $0x42] ss:$8 sm:$0xf0]  ;;  %v3574_v16 = vor.u32 %v3573_v35, %v3572_v27  ;;  %v7369_v27 = vor.u32 %v8517_v10, %v7366_v62  ;;  %v8477_v62 = vld [vmem:[#allocation14 + $0x14] sm:$0xf] }
 0x72b   : > { %4480 = vmatpush.bf16.msrb.mxu1 %v7549_v22  ;;  %4493 = vmatpush.bf16.msrb.mxu2 %v7297_v24  ;;  %v8537_v31 = vld [vmem:[#allocation14 + $0x1ec] sm:$0xf0] }
 0x72c   : > { %4464 = vmatpush.bf16.msrb.mxu0 %v7389_v37  ;;  %v7228_v37 = vld [vmem:[#allocation14 + $0x48] sm:$0xf]  ;;  %v3606_v20 = vperm.slane %v3574_v16, 1 }
 0x72d   : > { %v7229_v38 = vor.u32 %v8488_v12, %v7228_v37  ;;  %v7686_v37 = vld [vmem:[#allocation14 + $0x3f0] sm:$0xf0] }
 0x72e   : > { %4506 = vmatpush.bf16.msrb.mxu3 %v7553_v29 }
 0x72f   : > { %4481 = vmatpush.bf16.msrb.mxu1 %v7517_v1  ;;  %4494 = vmatpush.bf16.msrb.mxu2 %v7265_v34  ;;  %v8533_v1 = vld [vmem:[#allocation14 + $0x1d4] sm:$0xf] }
 0x730   : > { %4465 = vmatpush.bf16.msrb.mxu0 %v7357_v50  ;;  %v8480_v50 = vld [vmem:[#allocation14 + $0x24] sm:$0xf0]  ;;  %v7430_v34 = vld [vmem:[#allocation14 + $0x1f0] sm:$0xf0] }
 0x731   : > { %v7197_v52 = vor.u32 %v8480_v50, %v7196_v49  ;;  %v7433_v3 = vor.u32 %v8533_v1, %v7430_v34  ;;  %v7654_v49 = vld [vmem:[#allocation14 + $0x3b0] sm:$0xf0]  ;;  %v7524_v34 = vld [vmem:[#allocation14 + $0x290] sm:$0xf] }
 0x732   : > { %4507 = vmatpush.bf16.msrb.mxu3 %v7521_v11  ;;  %v8597_v11 = vld [vmem:[#allocation14 + $0x3d4] sm:$0xf] }
 0x733   : > { %4482 = vmatpush.bf16.msrb.mxu1 %v7485_v4  ;;  %4495 = vmatpush.bf16.msrb.mxu2 %v7233_v40  ;;  %v7689_v39 = vor.u32 %v8597_v11, %v7686_v37  ;;  %v7652_v4 = vld [vmem:[#allocation14 + $0x390] sm:$0xf]  ;;  %v7270_v11 = vld [vmem:[#allocation14 + $0xb0] sm:$0xf0] }
 0x734   : > { %4466 = vmatpush.bf16.msrb.mxu0 %v7325_v19  ;;  %v8593_v40 = vld [vmem:[#allocation14 + $0x3ac] sm:$0xf0]  ;;  %v8557_v37 = vld [vmem:[#allocation14 + $0x294] sm:$0xf] }
 0x735   : > { %v7653_v51 = vor.u32 %v8593_v40, %v7652_v4  ;;  %v7492_v40 = vld [vmem:[#allocation14 + $0x250] sm:$0xf] }
 0x736   : > { %4508 = vmatpush.bf16.msrb.mxu3 %v7489_v56  ;;  %v8589_v56 = vld [vmem:[#allocation14 + $0x394] sm:$0xf] }
 0x737   : > { %4483 = vmatpush.bf16.msrb.mxu1 %v7453_v61  ;;  %4496 = vmatpush.bf16.msrb.mxu2 %v7201_v45  ;;  %v7657_v55 = vor.u32 %v8589_v56, %v7654_v49  ;;  %v7620_v61 = vld [vmem:[#allocation14 + $0x350] sm:$0xf]  ;;  %v7238_v56 = vld [vmem:[#allocation14 + $0x70] sm:$0xf0] }
 0x738   : > { %4467 = vmatpush.bf16.msrb.mxu0 %v7293_v18  ;;  %v3578_v18 = vor.u32 %v3577_v14, %v3576_v47  ;;  %v8585_v45 = vld [vmem:[#allocation14 + $0x36c] sm:$0xf0]  ;;  %v8509_v14 = vld [vmem:[#allocation14 + $0x114] sm:$0xf] }
 0x739   : > { %v8577_v47 = vld [vmem:[#allocation14 + $0x32c] sm:$0xf0]  ;;  %v8549_v49 = vld [vmem:[#allocation14 + $0x254] sm:$0xf] }
 0x73a   : > { %4509 = vmatpush.bf16.msrb.mxu3 %v7457_v0  ;;  %v3612_v22 = vperm.slane %v3578_v18, 0  ;;  %v3613_v24 = vperm.slane %v3578_v18, 1  ;;  %v7622_v0 = vld [vmem:[#allocation14 + $0x370] sm:$0xf0] }
 0x73c   : > { %4468 = vmatpush.bf16.msrb.mxu0 %v7261_v30  ;;  %v7428_v30 = vld [vmem:[#allocation14 + $0x1d0] sm:$0xf] }
 0x740   : > { %4469 = vmatpush.bf16.msrb.mxu0 %v7229_v38  ;;  %v7396_v38 = vld [vmem:[#allocation14 + $0x190] sm:$0xf] }
 0x741   : > { %v7397_v50 = vor.u32 %v8529_v8, %v7396_v38  ;;  %v7236_v8 = vld [vmem:[#allocation14 + $0x50] sm:$0xf] }
 0x744   : > { %4470 = vmatpush.bf16.msrb.mxu0 %v7197_v52  ;;  %v7364_v52 = vld [vmem:[#allocation14 + $0x150] sm:$0xf] }
 0x781   : > { %v3589_v63 = vpop.xlane.xlu2 %3588 }
 0x782   : > { %v3590_v19 = vmul.f32 %v3589_v63, %v10182_v59  ;;  %v3605_v59 = vperm.slane %v3574_v16, 0  ;;  %v8581_v63 = vld [vmem:[#allocation14 + $0x354] sm:$0xf] }
 0x783   : > { %v7625_v35 = vor.u32 %v8581_v63, %v7622_v0  ;;  %v8573_v16 = vld [vmem:[#allocation14 + $0x314] sm:$0xf] }
 0x784   : > { %v3591_v28 = vadd.f32 1e-05, %v3590_v19  ;;  %v7365_v19 = vor.u32 %v8521_v53, %v7364_v52  ;;  %v7493_v53 = vor.u32 %v8553_v42, %v7492_v40  ;;  %v7206_v63 = vld [vmem:[#allocation14 + $0x30] sm:$0xf0]  ;;  %v7596_v42 = vld [vmem:[#allocation14 + $0x318] sm:$0xf] }
 0x785   : > { %v8541_v0 = vld [vmem:[#allocation14 + $0x214] sm:$0xf] }
 0x786   : > { %8909 = vrsqrt.f32 %v3591_v28  ;;  %vm3598_vm11 = vweird.f32 %v3591_v28 }
 0x78c   : > { %v8910_v6 = vpop.eup %8909 }
 0x78d   : > { %v3593_v26 = vmul.f32 %v8910_v6, %v3591_v28  ;;  %vm3599_vm10 = vweird.f32 %v8910_v6  ;;  %v7621_v28 = vor.u32 %v8585_v45, %v7620_v61  ;;  %v8545_v61 = vld [vmem:[#allocation14 + $0x22c] sm:$0xf0]  ;;  %v7241_v45 = vor.u32 %v8485_v44, %v7238_v56  ;;  %v8578_v44 = vld [vmem:[#allocation14 + $0x334] sm:$0xf0]  ;;  %v8510_v56 = vld [vmem:[#allocation14 + $0x11c] sm:$0xf] }
 0x78e   : > { %vm3600_vm12 = vmor %vm3598_vm11, %vm3599_vm10 }
 0x78f   : > { %v3594_v36 = vmul.f32 %v8910_v6, %v3593_v26  ;;  %v8513_v26 = vld [vmem:[#allocation14 + $0x12c] sm:$0xf0] }
 0x791   : > { %v3595_v15 = vmul.f32 0.5, %v3594_v36  ;;  %v7588_v36 = vld [vmem:[#allocation14 + $0x310] sm:$0xf] }
 0x793   : > { %v3596_v17 = vsub.f32 1.5, %v3595_v15  ;;  %v7334_v15 = vld [vmem:[#allocation14 + $0x130] sm:$0xf0] }
 0x795   : > { %v3597_v43 = vmul.f32 %v8910_v6, %v3596_v17  ;;  %v7590_v17 = vld [vmem:[#allocation14 + $0x330] sm:$0xf0] }
 0x797   : > { %v3601_v21 = vsel %vm3600_vm12, %v8910_v6, %v3597_v43  ;;  %v7332_v6 = vld [vmem:[#allocation14 + $0x110] sm:$0xf]  ;;  %v7589_v43 = vor.u32 %v8577_v47, %v7588_v36 }
 0x798   : > { %v3602_v9 = vmul.f32 %v3601_v21, %v10394_v13  ;;  %v3603_v57 = vmul.f32 %v3601_v21, %v10396_v41  ;;  %v7429_v13 = vor.u32 %v8537_v31, %v7428_v30  ;;  %v7685_v41 = vor.u32 %v8601_v33, %v7684_v32  ;;  %v7268_v31 = vld [vmem:[#allocation14 + $0x90] sm:$0xf] }
 0x799   : > { %v7333_v18 = vor.u32 %v8513_v26, %v7332_v6  ;;  %v7337_v21 = vor.u32 %v8509_v14, %v7334_v15  ;;  %v8497_v32 = vld [vmem:[#allocation14 + $0xac] sm:$0xf0]  ;;  %v8538_v6 = vld [vmem:[#allocation14 + $0x1f4] sm:$0xf0]  ;;  %v7438_v14 = vld [vmem:[#allocation14 + $0x1f8] sm:$0xf0] }
 0x79a   : > { %v3609_v29 = vmul.f32 %v3605_v59, %v3602_v9  ;;  %v3610_v58 = vmul.f32 %v3606_v20, %v3603_v57  ;;  %v7300_v59 = vld [vmem:[#allocation14 + $0xd0] sm:$0xf]  ;;  %v8501_v57 = vld [vmem:[#allocation14 + $0xd4] sm:$0xf]  ;;  %v7692_v26 = vld [vmem:[#allocation14 + $0x3d8] sm:$0xf] }
 0x79b   : > { %v8505_v20 = vld [vmem:[#allocation14 + $0xec] sm:$0xf0]  ;;  %v8598_v15 = vld [vmem:[#allocation14 + $0x3dc] sm:$0xf] }
 0x79c   : > { %v3616_v60 = vadd.f32 %v3612_v22, %v3609_v29  ;;  %v3617_v7 = vadd.f32 %v3613_v24, %v3610_v58  ;;  %v7593_v22 = vor.u32 %v8573_v16, %v7590_v17  ;;  %v7556_v24 = vld [vmem:[#allocation14 + $0x2d0] sm:$0xf]  ;;  %v7302_v29 = vld [vmem:[#allocation14 + $0xf0] sm:$0xf0]  ;;  %v7694_v16 = vld [vmem:[#allocation14 + $0x3f8] sm:$0xf0]  ;;  %v7209_v17 = vor.u32 %v8477_v62, %v7206_v63 }
 0x79d   : > { %v8569_v9 = vld [vmem:[#allocation14 + $0x2ec] sm:$0xf0]  ;;  %v8565_v58 = vld [vmem:[#allocation14 + $0x2d4] sm:$0xf]  ;;  %v7305_v33 = vor.u32 %v8501_v57, %v7302_v29  ;;  %v8594_v57 = vld [vmem:[#allocation14 + $0x3b4] sm:$0xf0] }
 0x79e   : > { %v3618_v5 = vmax.f32 %v3616_v60, 0.0  ;;  %v3619_v48 = vmax.f32 %v3617_v7, 0.0  ;;  %v7558_v60 = vld [vmem:[#allocation14 + $0x2f0] sm:$0xf0]  ;;  %v7301_v7 = vor.u32 %v8505_v20, %v7300_v59  ;;  %v7557_v30 = vor.u32 %v8569_v9, %v7556_v24  ;;  %v7404_v20 = vld [vmem:[#allocation14 + $0x198] sm:$0xf] }
 0x79f   : > { %v7561_v1 = vor.u32 %v8565_v58, %v7558_v60  ;;  %v7697_v24 = vor.u32 %v8598_v15, %v7694_v16  ;;  %v7660_v9 = vld [vmem:[#allocation14 + $0x398] sm:$0xf]  ;;  %v8526_v29 = vld [vmem:[#allocation14 + $0x19c] sm:$0xf] }
 0x7a0   : > { %v10406_v12 = vpack.c.bf16 %v3618_v5, %v3618_v5  ;;  %v10408_v2 = vpack.c.bf16 %v3619_v48, %v3619_v48  ;;  %v8561_v5 = vld [vmem:[#allocation14 + $0x2ac] sm:$0xf0]  ;;  %v8493_v48 = vld [vmem:[#allocation14 + $0x94] sm:$0xf]  ;;  %v7406_v58 = vld [vmem:[#allocation14 + $0x1b8] sm:$0xf0] }
 0x7a1   : > { %v7525_v38 = vor.u32 %v8561_v5, %v7524_v34  ;;  %v8590_v60 = vld [vmem:[#allocation14 + $0x39c] sm:$0xf]  ;;  %v7628_v5 = vld [vmem:[#allocation14 + $0x358] sm:$0xf] }
 0x7a2   : > { %4419 = vmatmul.bf16.vlgmr.msra.gmra.mxu0 %v10406_v12  ;;  %4432 = vmatmul.bf16.vlgmr.msra.gmra.mxu1 %v10408_v2  ;;  %v8570_v62 = vld [vmem:[#allocation14 + $0x2f4] sm:$0xf0]  ;;  %v8502_v63 = vld [vmem:[#allocation14 + $0xdc] sm:$0xf] }
 0x7a3   : > { %4445 = vmatmul.bf16.vlgmr.msra.gmra.mxu2 %v10406_v12  ;;  %4458 = vmatmul.bf16.vlgmr.msra.gmra.mxu3 %v10408_v2  ;;  %v8562_v15 = vld [vmem:[#allocation14 + $0x2b4] sm:$0xf0]  ;;  %v8494_v16 = vld [vmem:[#allocation14 + $0x9c] sm:$0xf] }
 0x7a4   : > { %4515 = vmatpush.bf16.msra.mxu0 %v7429_v13  ;;  %4528 = vmatpush.bf16.msra.mxu1 %v7685_v41  ;;  %v7526_v13 = vld [vmem:[#allocation14 + $0x2b0] sm:$0xf0]  ;;  %v7269_v41 = vor.u32 %v8497_v32, %v7268_v31  ;;  %v7661_v31 = vor.u32 %v8594_v57, %v7660_v9  ;;  %v7372_v32 = vld [vmem:[#allocation14 + $0x158] sm:$0xf] }
 0x7a5   : > { %4541 = vmatpush.bf16.msra.mxu2 %v7433_v3  ;;  %4554 = vmatpush.bf16.msra.mxu3 %v7689_v39  ;;  %v8489_v3 = vld [vmem:[#allocation14 + $0x6c] sm:$0xf0]  ;;  %v7273_v39 = vor.u32 %v8493_v48, %v7270_v11  ;;  %v7529_v4 = vor.u32 %v8557_v37, %v7526_v13  ;;  %v8586_v48 = vld [vmem:[#allocation14 + $0x374] sm:$0xf0]  ;;  %v8518_v11 = vld [vmem:[#allocation14 + $0x15c] sm:$0xf] }
 0x7a6   : > { %v7237_v52 = vor.u32 %v8489_v3, %v7236_v8  ;;  %v7374_v37 = vld [vmem:[#allocation14 + $0x178] sm:$0xf0]  ;;  %v7629_v8 = vor.u32 %v8586_v48, %v7628_v5  ;;  %v7340_v3 = vld [vmem:[#allocation14 + $0x118] sm:$0xf] }
 0x7a7   : > { %v8582_v13 = vld [vmem:[#allocation14 + $0x35c] sm:$0xf]  ;;  %v7500_v57 = vld [vmem:[#allocation14 + $0x258] sm:$0xf] }
 0x7a8   : > { %4516 = vmatpush.bf16.msra.mxu0 %v7397_v50  ;;  %4529 = vmatpush.bf16.msra.mxu1 %v7653_v51  ;;  %v7494_v50 = vld [vmem:[#allocation14 + $0x270] sm:$0xf0]  ;;  %v7204_v51 = vld [vmem:[#allocation14 + $0x10] sm:$0xf]  ;;  %v7468_v48 = vld [vmem:[#allocation14 + $0x218] sm:$0xf] }
 0x7a9   : > { %4542 = vmatpush.bf16.msra.mxu2 %v7401_v54  ;;  %4555 = vmatpush.bf16.msra.mxu3 %v7657_v55  ;;  %v8481_v54 = vld [vmem:[#allocation14 + $0x2c] sm:$0xf0]  ;;  %v7497_v10 = vor.u32 %v8549_v49, %v7494_v50  ;;  %v7342_v49 = vld [vmem:[#allocation14 + $0x138] sm:$0xf0] }
 0x7aa   : > { %v7460_v55 = vld [vmem:[#allocation14 + $0x210] sm:$0xf]  ;;  %v7205_v36 = vor.u32 %v8481_v54, %v7204_v51  ;;  %v8574_v50 = vld [vmem:[#allocation14 + $0x31c] sm:$0xf]  ;;  %v7308_v54 = vld [vmem:[#allocation14 + $0xd8] sm:$0xf] }
 0x7ab   : > { %v7461_v47 = vor.u32 %v8545_v61, %v7460_v55  ;;  %v7598_v51 = vld [vmem:[#allocation14 + $0x338] sm:$0xf0]  ;;  %v8506_v55 = vld [vmem:[#allocation14 + $0xf4] sm:$0xf0]  ;;  %v7345_v61 = vor.u32 %v8510_v56, %v7342_v49 }
 0x7ac   : > { %4517 = vmatpush.bf16.msra.mxu0 %v7365_v19  ;;  %4530 = vmatpush.bf16.msra.mxu1 %v7621_v28  ;;  %v7462_v19 = vld [vmem:[#allocation14 + $0x230] sm:$0xf0]  ;;  %v7436_v28 = vld [vmem:[#allocation14 + $0x1d8] sm:$0xf] }
 0x7ad   : > { %4543 = vmatpush.bf16.msra.mxu2 %v7369_v27  ;;  %4556 = vmatpush.bf16.msra.mxu3 %v7625_v35  ;;  %v8602_v27 = vld [vmem:[#allocation14 + $0x3f4] sm:$0xf0]  ;;  %v8534_v35 = vld [vmem:[#allocation14 + $0x1dc] sm:$0xf] }
 0x7ae   : > { %v7693_v59 = vor.u32 %v8602_v27, %v7692_v26  ;;  %v7276_v27 = vld [vmem:[#allocation14 + $0x98] sm:$0xf] }
 0x7b0   : > { %4518 = vmatpush.bf16.msra.mxu0 %v7333_v18  ;;  %4531 = vmatpush.bf16.msra.mxu1 %v7589_v43  ;;  %v7465_v18 = vor.u32 %v8541_v0, %v7462_v19  ;;  %v7437_v43 = vor.u32 %v8538_v6, %v7436_v28  ;;  %v7310_v0 = vld [vmem:[#allocation14 + $0xf8] sm:$0xf0]  ;;  %v7309_v6 = vor.u32 %v8506_v55, %v7308_v54 }
 0x7b1   : > { %4544 = vmatpush.bf16.msra.mxu2 %v7337_v21  ;;  %4557 = vmatpush.bf16.msra.mxu3 %v7593_v22  ;;  %v8530_v21 = vld [vmem:[#allocation14 + $0x1b4] sm:$0xf0]  ;;  %v7441_v22 = vor.u32 %v8534_v35, %v7438_v14  ;;  %v8566_v19 = vld [vmem:[#allocation14 + $0x2dc] sm:$0xf] }
 0x7b2   : > { %4471 = vmatmul.bf16.vlgmr.msrb.gmra.mxu0 %v10406_v12  ;;  %4484 = vmatmul.bf16.vlgmr.msrb.gmra.mxu1 %v10408_v2  ;;  %v7566_v28 = vld [vmem:[#allocation14 + $0x2f8] sm:$0xf0]  ;;  %v8498_v35 = vld [vmem:[#allocation14 + $0xb4] sm:$0xf0] }
 0x7b3   : > { %4497 = vmatmul.bf16.vlgmr.msrb.gmra.mxu2 %v10406_v12  ;;  %4510 = vmatmul.bf16.vlgmr.msrb.gmra.mxu3 %v10408_v2  ;;  %v7532_v14 = vld [vmem:[#allocation14 + $0x298] sm:$0xf] }
 0x7b4   : > { %4519 = vmatpush.bf16.msra.mxu0 %v7301_v7  ;;  %4532 = vmatpush.bf16.msra.mxu1 %v7557_v30  ;;  %v7662_v7 = vld [vmem:[#allocation14 + $0x3b8] sm:$0xf0]  ;;  %v7405_v30 = vor.u32 %v8530_v21, %v7404_v20  ;;  %v7533_v20 = vor.u32 %v8562_v15, %v7532_v14  ;;  %v7244_v21 = vld [vmem:[#allocation14 + $0x58] sm:$0xf]  ;;  %v4781_v14 = vld [vmem:[%s10932_s21 + $0x18] sm:$0xff] }
 0x7b5   : > { %4545 = vmatpush.bf16.msra.mxu2 %v7305_v33  ;;  %4558 = vmatpush.bf16.msra.mxu3 %v7561_v1  ;;  %v8522_v33 = vld [vmem:[#allocation14 + $0x174] sm:$0xf0]  ;;  %v7409_v1 = vor.u32 %v8526_v29, %v7406_v58  ;;  %v7665_v34 = vor.u32 %v8590_v60, %v7662_v7  ;;  %v8486_v58 = vld [vmem:[#allocation14 + $0x5c] sm:$0xf] }
 0x7b6   : > { %v8554_v29 = vld [vmem:[#allocation14 + $0x274] sm:$0xf0]  ;;  %v7246_v60 = vld [vmem:[#allocation14 + $0x78] sm:$0xf0] }
 0x7b7   : > { %v8550_v7 = vld [vmem:[#allocation14 + $0x25c] sm:$0xf]  ;;  %v3751_v15 = vld [vmem:[#allocation17 + $0x43] ss:$8 sm:$0xf] }
 0x7b8   : > { %4520 = vmatpush.bf16.msra.mxu0 %v7269_v41  ;;  %4533 = vmatpush.bf16.msra.mxu1 %v7525_v38  ;;  %v7630_v41 = vld [vmem:[#allocation14 + $0x378] sm:$0xf0]  ;;  %v7373_v38 = vor.u32 %v8522_v33, %v7372_v32  ;;  %v7501_v32 = vor.u32 %v8554_v29, %v7500_v57  ;;  %v7212_v33 = vld [vmem:[#allocation14 + $0x18] sm:$0xf] }
 0x7b9   : > { %4546 = vmatpush.bf16.msra.mxu2 %v7273_v39  ;;  %4559 = vmatpush.bf16.msra.mxu3 %v7529_v4  ;;  %v8514_v39 = vld [vmem:[#allocation14 + $0x134] sm:$0xf0]  ;;  %v7377_v4 = vor.u32 %v8518_v11, %v7374_v37  ;;  %v7633_v40 = vor.u32 %v8582_v13, %v7630_v41  ;;  %v8478_v37 = vld [vmem:[#allocation14 + $0x1c] sm:$0xf] }
 0x7ba   : > { %v8546_v11 = vld [vmem:[#allocation14 + $0x234] sm:$0xf0]  ;;  %v7214_v13 = vld [vmem:[#allocation14 + $0x38] sm:$0xf0] }
 0x7bb   : > { %v8542_v41 = vld [vmem:[#allocation14 + $0x21c] sm:$0xf] }
 0x7bc   : > { %4521 = vmatpush.bf16.msra.mxu0 %v7237_v52  ;;  %4534 = vmatpush.bf16.msra.mxu1 %v7493_v53  ;;  %v7341_v52 = vor.u32 %v8514_v39, %v7340_v3  ;;  %v7597_v53 = vor.u32 %v8578_v44, %v7596_v42  ;;  %v7469_v3 = vor.u32 %v8546_v11, %v7468_v48  ;;  %v4748_v42 = vld [vmem:[#allocation15] sm:$0xff] }
 0x7bd   : > { %4547 = vmatpush.bf16.msra.mxu2 %v7241_v45  ;;  %4560 = vmatpush.bf16.msra.mxu3 %v7497_v10  ;;  %v7601_v45 = vor.u32 %v8574_v50, %v7598_v51  ;;  %v7564_v10 = vld [vmem:[#allocation14 + $0x2d8] sm:$0xf]  ;;  %v7217_v39 = vor.u32 %v8478_v37, %v7214_v13 }
 0x7be   : > { %v7565_v26 = vor.u32 %v8570_v62, %v7564_v10 }
 0x7c0   : > { %4522 = vmatpush.bf16.msra.mxu0 %v7205_v36  ;;  %4535 = vmatpush.bf16.msra.mxu1 %v7461_v47  ;;  %v7313_v36 = vor.u32 %v8502_v63, %v7310_v0  ;;  %v7569_v47 = vor.u32 %v8566_v19, %v7566_v28  ;;  %v4784_v28 = vld [vmem:[%s10932_s21 + $0x30] sm:$0xff] }
 0x7c1   : > { %4548 = vmatpush.bf16.msra.mxu2 %v7209_v17  ;;  %4561 = vmatpush.bf16.msra.mxu3 %v7465_v18  ;;  %v7278_v17 = vld [vmem:[#allocation14 + $0xb8] sm:$0xf0] }
 0x7c2   : > { %v8558_v18 = vld [vmem:[#allocation14 + $0x29c] sm:$0xf] }
 0x7c3   : > { %4523 = vmatmul.bf16.vlgmr.msra.gmra.mxu0 %v10406_v12  ;;  %4536 = vmatmul.bf16.vlgmr.msra.gmra.mxu1 %v10408_v2 }
 0x7c4   : > { %4567 = vmatpush.bf16.msrb.mxu0 %v7437_v43  ;;  %4580 = vmatpush.bf16.msrb.mxu1 %v7693_v59  ;;  %v7534_v43 = vld [vmem:[#allocation14 + $0x2b8] sm:$0xf0]  ;;  %v7277_v59 = vor.u32 %v8498_v35, %v7276_v27  ;;  %v4783_v27 = vld [vmem:[%s10932_s21 + $0x28] sm:$0xff]  ;;  %v4782_v35 = vld [vmem:[%s10932_s21 + $0x20] sm:$0xff] }
 0x7c5   : > { %4593 = vmatpush.bf16.msrb.mxu2 %v7441_v22  ;;  %4606 = vmatpush.bf16.msrb.mxu3 %v7697_v24  ;;  %v8490_v22 = vld [vmem:[#allocation14 + $0x74] sm:$0xf0]  ;;  %v7281_v24 = vor.u32 %v8494_v16, %v7278_v17  ;;  %v7537_v9 = vor.u32 %v8558_v18, %v7534_v43 }
 0x7c6   : > { %4549 = vmatmul.bf16.vlgmr.msra.gmra.mxu2 %v10406_v12  ;;  %4562 = vmatmul.bf16.vlgmr.msra.gmra.mxu3 %v10408_v2  ;;  %v3752_v16 = vld [vmem:[#allocation17 + $0x43] ss:$8 sm:$0xf0] }
 0x7c7   : > { %v4780_v17 = vld [vmem:[%s10932_s21 + $0x10] sm:$0xff]  ;;  %v3753_v18 = vor.u32 %v3752_v16, %v3751_v15 }
 0x7c8   : > { %4568 = vmatpush.bf16.msrb.mxu0 %v7405_v30  ;;  %4581 = vmatpush.bf16.msrb.mxu1 %v7661_v31  ;;  %v7502_v30 = vld [vmem:[#allocation14 + $0x278] sm:$0xf0]  ;;  %v7245_v31 = vor.u32 %v8490_v22, %v7244_v21  ;;  %v4778_v21 = vld [vmem:[%s10932_s21] sm:$0xff] }
 0x7c9   : > { %4594 = vmatpush.bf16.msrb.mxu2 %v7409_v1  ;;  %4607 = vmatpush.bf16.msrb.mxu3 %v7665_v34  ;;  %v8482_v1 = vld [vmem:[#allocation14 + $0x34] sm:$0xf0]  ;;  %v7249_v34 = vor.u32 %v8486_v58, %v7246_v60  ;;  %v7505_v5 = vor.u32 %v8550_v7, %v7502_v30  ;;  %v3756_v22 = vperm.slane %v3753_v18, 1  ;;  %v3758_v29 = vperm.slane %v3753_v18, 3 }
 0x7ca   : > { %v3759_v7 = vperm.slane %v3753_v18, 4 }
 0x7cc   : > { %4569 = vmatpush.bf16.msrb.mxu0 %v7373_v38  ;;  %4582 = vmatpush.bf16.msrb.mxu1 %v7629_v8  ;;  %v7470_v38 = vld [vmem:[#allocation14 + $0x238] sm:$0xf0]  ;;  %v7213_v8 = vor.u32 %v8482_v1, %v7212_v33 }
 0x7cd   : > { %4595 = vmatpush.bf16.msrb.mxu2 %v7377_v4  ;;  %4608 = vmatpush.bf16.msrb.mxu3 %v7633_v40  ;;  %v7473_v4 = vor.u32 %v8542_v41, %v7470_v38  ;;  %v4749_v40 = vld [vmem:[#allocation15 + $0x8] sm:$0xff] }
 0x7d0   : > { %4570 = vmatpush.bf16.msrb.mxu0 %v7341_v52  ;;  %4583 = vmatpush.bf16.msrb.mxu1 %v7597_v53 }
 0x7d1   : > { %4596 = vmatpush.bf16.msrb.mxu2 %v7345_v61  ;;  %4609 = vmatpush.bf16.msrb.mxu3 %v7601_v45 }
 0x7d4   : > { %4571 = vmatpush.bf16.msrb.mxu0 %v7309_v6  ;;  %4584 = vmatpush.bf16.msrb.mxu1 %v7565_v26 }
 0x7d5   : > { %4597 = vmatpush.bf16.msrb.mxu2 %v7313_v36  ;;  %4610 = vmatpush.bf16.msrb.mxu3 %v7569_v47 }
 0x7d8   : > { %4572 = vmatpush.bf16.msrb.mxu0 %v7277_v59  ;;  %4585 = vmatpush.bf16.msrb.mxu1 %v7533_v20  ;;  %v4779_v20 = vld [vmem:[%s10932_s21 + $0x8] sm:$0xff] }
 0x7d9   : > { %4598 = vmatpush.bf16.msrb.mxu2 %v7281_v24  ;;  %4611 = vmatpush.bf16.msrb.mxu3 %v7537_v9  ;;  %v3755_v24 = vperm.slane %v3753_v18, 0  ;;  %v3757_v9 = vperm.slane %v3753_v18, 2 }
 0x7dc   : > { %4573 = vmatpush.bf16.msrb.mxu0 %v7245_v31  ;;  %4586 = vmatpush.bf16.msrb.mxu1 %v7501_v32  ;;  %v3760_v32 = vperm.slane %v3753_v18, 5 }
 0x7dd   : > { %4599 = vmatpush.bf16.msrb.mxu2 %v7249_v34  ;;  %4612 = vmatpush.bf16.msrb.mxu3 %v7505_v5  ;;  %v3761_v5 = vperm.slane %v3753_v18, 6 }
 0x7e0   : > { %4574 = vmatpush.bf16.msrb.mxu0 %v7213_v8  ;;  %4587 = vmatpush.bf16.msrb.mxu1 %v7469_v3 }
 0x7e1   : > { %4600 = vmatpush.bf16.msrb.mxu2 %v7217_v39  ;;  %4613 = vmatpush.bf16.msrb.mxu3 %v7473_v4 }
 0x7e3   : > { %4575 = vmatmul.bf16.vlgmr.msrb.gmra.mxu0 %v10406_v12  ;;  %4588 = vmatmul.bf16.vlgmr.msrb.gmra.mxu1 %v10408_v2 }
 0x7e4   : > { %4771 = vmatpush.msra.mxu0 %v4749_v40  ;;  %4601 = vmatmul.bf16.vlgmr.msrb.gmra.mxu2 %v10406_v12  ;;  %v3762_v40 = vperm.slane %v3753_v18, 7 }
 0x7e5   : > { %4614 = vmatmul.bf16.vlgmr.msrb.gmra.mxu3 %v10408_v2 }
 0x7e6   : > { %4772 = vmatpush.msra.mxu0 %v4748_v42 }
 0x7f3   : > { %7698 = vmatmul.msk.f32.vlgmr.msra.gmra.mxu0 %vm3516_vm9, %v10387_v25  ;;  %v4785_v25 = vld [vmem:[%s10932_s21 + $0x38] sm:$0xff] }
 0x7f4   : > { %4805 = vmatpush.msra.mxu1 %v4785_v25 }
 0x7f6   : > { %4806 = vmatpush.msra.mxu1 %v4784_v28  ;;  %v4821_v28 = vld [vmem:[%s10933_s28 + $0x18] sm:$0xff] }
 0x7f7   : > { %4845 = vmatpush.msra.mxu2 %v4821_v28 }
 0x7f8   : > { %4807 = vmatpush.msra.mxu1 %v4783_v27  ;;  %v4818_v27 = vld [vmem:[%s10934_s12] sm:$0xff] }
 0x7fa   : > { %4808 = vmatpush.msra.mxu1 %v4782_v35 }
 0x7fc   : > { %4809 = vmatpush.msra.mxu1 %v4781_v14 }
 0x7fe   : > { %4810 = vmatpush.msra.mxu1 %v4780_v17 }
 0x800   : > { %4811 = vmatpush.msra.mxu1 %v4779_v20 }
 0x802   : > { %4812 = vmatpush.msra.mxu1 %v4778_v21 }
 0x81f   : > { %v4420_v44 = vpop.f32.mrf.mxu0  ;;  %v4433_v56 = vpop.f32.mrf.mxu1 }
 0x820   : > { %v4421_v58 = vadd.f32 %v4420_v44, %v3755_v24 }
 0x822   : > { %v4434_v33 = vadd.f32 %v4433_v56, %v4421_v58 }
 0x826   : > { %v4446_v49 = vpop.f32.mrf.mxu2  ;;  %v4459_v50 = vpop.f32.mrf.mxu3 }
 0x827   : > { %v4422_v51 = vpop.f32.mrf.mxu0  ;;  %v4435_v52 = vpop.f32.mrf.mxu1  ;;  %v4447_v57 = vadd.f32 %v4446_v49, %v3756_v22  ;;  %v4751_v49 = vld [vmem:[#allocation17 + $0x46] ss:$8 sm:$0xf] }
 0x829   : > { %v4460_v30 = vadd.f32 %v4459_v50, %v4447_v57  ;;  %v4752_v50 = vld [vmem:[#allocation17 + $0x46] ss:$8 sm:$0xf0] }
 0x82b   : > { %v4627_v48 = vadd.f32 %v4460_v30, %v4434_v33 }
 0x82e   : > { %v4448_v53 = vpop.f32.mrf.mxu2  ;;  %v4461_v54 = vpop.f32.mrf.mxu3 }
 0x82f   : > { %v4472_v55 = vpop.f32.mrf.mxu0  ;;  %v4485_v61 = vpop.f32.mrf.mxu1 }
 0x830   : > { %v4473_v60 = vadd.f32 %v4472_v55, %v3757_v9 }
 0x832   : > { %v4486_v1 = vadd.f32 %v4485_v61, %v4473_v60  ;;  %v4753_v61 = vor.u32 %v4752_v50, %v4751_v49 }
 0x834   : > { %v4628_v38 = vadd.f32 %v4627_v48, %v4486_v1 }
 0x836   : > { %v4498_v45 = vpop.f32.mrf.mxu2  ;;  %v4511_v10 = vpop.f32.mrf.mxu3 }
 0x837   : > { %v4474_v62 = vpop.f32.mrf.mxu0  ;;  %v4487_v12 = vpop.f32.mrf.mxu1  ;;  %v4499_v31 = vadd.f32 %v4498_v45, %v3758_v29 }
 0x838   : > { %v4755_v12 = vperm.slane %v4753_v61, 0 }
 0x839   : > { %v4512_v11 = vadd.f32 %v4511_v10, %v4499_v31 }
 0x83b   : > { %v4629_v39 = vadd.f32 %v4628_v38, %v4512_v11 }
 0x83e   : > { %v4500_v63 = vpop.f32.mrf.mxu2  ;;  %v4513_v2 = vpop.f32.mrf.mxu3 }
 0x840   : > { %v4524_v0 = vpop.f32.mrf.mxu0  ;;  %v4537_v19 = vpop.f32.mrf.mxu1 }
 0x841   : > { %v4525_v34 = vadd.f32 %v4524_v0, %v3759_v7 }
 0x843   : > { %v4538_v8 = vadd.f32 %v4537_v19, %v4525_v34 }
 0x845   : > { %v4630_v42 = vadd.f32 %v4629_v39, %v4538_v8  ;;  %v4823_v39 = vld [vmem:[#allocation17 + $0x80] ss:$8 sm:$0xf] }
 0x848   : > { %v4526_v36 = vpop.f32.mrf.mxu0  ;;  %v4539_v47 = vpop.f32.mrf.mxu1 }
 0x849   : > { %v4550_v6 = vpop.f32.mrf.mxu2  ;;  %v4563_v26 = vpop.f32.mrf.mxu3 }
 0x84a   : > { %v4551_v37 = vadd.f32 %v4550_v6, %v3760_v32  ;;  %v4820_v6 = vld [vmem:[%s10934_s12 + $0x10] sm:$0xff] }
 0x84b   : > { %4846 = vmatpush.msra.mxu2 %v4820_v6 }
 0x84c   : > { %v4564_v4 = vadd.f32 %v4563_v26, %v4551_v37  ;;  %v4819_v26 = vld [vmem:[%s10934_s12 + $0x8] sm:$0xff] }
 0x84d   : > { %4847 = vmatpush.msra.mxu2 %v4819_v26 }
 0x84e   : > { %v4631_v52 = vadd.f32 %v4630_v42, %v4564_v4  ;;  %v4621_v42 = vld [vmem:[#allocation17 + $0x44] ss:$8 sm:$0xf0] }
 0x84f   : > { %4848 = vmatpush.msra.mxu2 %v4818_v27 }
 0x851   : > { %v4552_v43 = vpop.f32.mrf.mxu2  ;;  %v4565_v59 = vpop.f32.mrf.mxu3 }
 0x852   : > { %v4787_v43 = vld [vmem:[#allocation17 + $0x47] ss:$8 sm:$0xf] }
 0x853   : > { %v4788_v59 = vld [vmem:[#allocation17 + $0x47] ss:$8 sm:$0xf0] }
 0x854   : > { %v4789_v29 = vor.u32 %v4788_v59, %v4787_v43 }
 0x860   : > { %v4576_v13 = vpop.f32.mrf.mxu0  ;;  %v4589_v41 = vpop.f32.mrf.mxu1 }
 0x861   : > { %v4577_v3 = vadd.f32 %v4576_v13, %v3761_v5 }
 0x863   : > { %v4590_v44 = vadd.f32 %v4589_v41, %v4577_v3 }
 0x865   : > { %v4632_v45 = vadd.f32 %v4631_v52, %v4590_v44  ;;  %v4625_v52 = vld [vmem:[#allocation17 + $0x45] ss:$8 sm:$0xf0] }
 0x867   : > { %v4602_v51 = vpop.f32.mrf.mxu2 }
 0x868   : > { %v4615_v56 = vpop.f32.mrf.mxu3  ;;  %v4603_v53 = vadd.f32 %v4602_v51, %v3762_v40  ;;  %v4578_v54 = vpop.f32.mrf.mxu0  ;;  %v4620_v40 = vld [vmem:[#allocation17 + $0x44] ss:$8 sm:$0xf] }
 0x869   : > { %v4591_v55 = vpop.f32.mrf.mxu1  ;;  %v4622_v51 = vor.u32 %v4621_v42, %v4620_v40 }
 0x86a   : > { %v4616_v10 = vadd.f32 %v4615_v56, %v4603_v53  ;;  %v4624_v56 = vld [vmem:[#allocation17 + $0x45] ss:$8 sm:$0xf] }
 0x86b   : > { %v4626_v55 = vor.u32 %v4625_v52, %v4624_v56  ;;  %v4690_v28 = vperm.slane %v4622_v51, 7  ;;  %v4855_v56 = vpop.permute.xlu2 %4854 }
 0x86c   : > { %v4633_v62 = vadd.f32 %v4632_v45, %v4616_v10  ;;  %v4683_v45 = vperm.slane %v4622_v51, 0  ;;  %v4861_v52 = vsel %vm3516_vm9, %v10384_v23, %v4855_v56 }
 0x86d   : > { %v4708_v6 = vperm.slane %v4626_v55, 0  ;;  %v4709_v27 = vperm.slane %v4626_v55, 1  ;;  %v4714_v43 = vperm.slane %v4626_v55, 6  ;;  %v4715_v59 = vperm.slane %v4626_v55, 7 }
 0x86e   : > { %4634 = vadd.xlane.f32.xlu0 %v4633_v62 }
 0x86f   : > { %v4604_v63 = vpop.f32.mrf.mxu2 }
 0x870   : > { %v4617_v2 = vpop.f32.mrf.mxu3  ;;  %v4774_v0 = vpop.f32.mrf.mxu0 }
 0x871   : > { %v4775_v19 = vadd.f32 %v4774_v0, %v4755_v12  ;;  %v4686_v2 = vperm.slane %v4622_v51, 3  ;;  %v4687_v0 = vperm.slane %v4622_v51, 4 }
 0x873   : > { %v4777_v25 = vmax.f32 %v4775_v19, 0.0  ;;  %v4688_v19 = vperm.slane %v4622_v51, 5 }
 0x875   : > { %7699 = vmatmul.msk.f32.vlgmr.msra.gmra.mxu1 %vm4793_vm13, %v4777_v25  ;;  %v4689_v25 = vperm.slane %v4622_v51, 6 }
 0x8e1   : > { %v4635_v35 = vpop.xlane.xlu0 %4634 }
 0x8e2   : > { %v4636_v36 = vmul.f32 %v4635_v35, %v10056_v46  ;;  %v4710_v35 = vperm.slane %v4626_v55, 2 }
 0x8e4   : > { %v10465_v47 = vsub.f32 %v4434_v33, %v4636_v36  ;;  %v10467_v14 = vsub.f32 %v4460_v30, %v4636_v36  ;;  %v10469_v15 = vsub.f32 %v4486_v1, %v4636_v36  ;;  %v10471_v16 = vsub.f32 %v4512_v11, %v4636_v36 }
 0x8e5   : > { %v10477_v20 = vsub.f32 %v4538_v8, %v4636_v36  ;;  %v10481_v24 = vsub.f32 %v4564_v4, %v4636_v36  ;;  %v10485_v58 = vsub.f32 %v4590_v44, %v4636_v36  ;;  %v10489_v30 = vsub.f32 %v4616_v10, %v4636_v36  ;;  %v4824_v4 = vld [vmem:[#allocation17 + $0x80] ss:$8 sm:$0xf0] }
 0x8e6   : > { %v4645_v17 = vmul.f32 %v10465_v47, %v10465_v47  ;;  %v4646_v18 = vmul.f32 %v10467_v14, %v10467_v14  ;;  %v4647_v21 = vmul.f32 %v10469_v15, %v10469_v15  ;;  %v4648_v9 = vmul.f32 %v10471_v16, %v10471_v16 }
 0x8e7   : > { %v4649_v60 = vmul.f32 %v10477_v20, %v10477_v20  ;;  %v4650_v31 = vmul.f32 %v10481_v24, %v10481_v24  ;;  %v4791_v33 = vperm.slane %v4789_v29, 0  ;;  %v4651_v1 = vmul.f32 %v10485_v58, %v10485_v58 }
 0x8e8   : > { %v4653_v22 = vadd.f32 %v4646_v18, %v4645_v17  ;;  %v4652_v48 = vmul.f32 %v10489_v30, %v10489_v30  ;;  %v4825_v44 = vor.u32 %v4824_v4, %v4823_v39  ;;  %v4684_v10 = vperm.slane %v4622_v51, 1 }
 0x8e9   : > { %v4711_v36 = vperm.slane %v4626_v55, 3  ;;  %v4712_v17 = vperm.slane %v4626_v55, 4  ;;  %v4713_v18 = vperm.slane %v4626_v55, 5 }
 0x8ea   : > { %v4654_v57 = vadd.f32 %v4653_v22, %v4647_v21  ;;  %v4827_v54 = vperm.slane %v4825_v44, 0 }
 0x8ec   : > { %v4655_v7 = vadd.f32 %v4654_v57, %v4648_v9 }
 0x8ee   : > { %v4656_v32 = vadd.f32 %v4655_v7, %v4649_v60 }
 0x8f0   : > { %v4657_v34 = vadd.f32 %v4656_v32, %v4650_v31 }
 0x8f2   : > { %v4814_v5 = vpop.f32.mrf.mxu1  ;;  %v4658_v11 = vadd.f32 %v4657_v34, %v4651_v1 }
 0x8f3   : > { %v4815_v37 = vadd.f32 %v4814_v5, %v4791_v33 }
 0x8f4   : > { %v4659_v13 = vadd.f32 %v4658_v11, %v4652_v48 }
 0x8f5   : > { %v4817_v41 = vmax.f32 %v4815_v37, 0.0 }
 0x8f6   : > { %4660 = vadd.xlane.f32.xlu1 %v4659_v13 }
 0x8f7   : > { %7700 = vmatmul.msk.f32.vlgmr.msra.gmra.mxu2 %vm4829_vm14, %v4817_v41 }
 0x969   : > { %v4661_v38 = vpop.xlane.xlu1 %4660 }
 0x96a   : > { %v4662_v8 = vmul.f32 %v4661_v38, %v10056_v46  ;;  %v4685_v46 = vperm.slane %v4622_v51, 2 }
 0x96c   : > { %v4663_v3 = vadd.f32 1e-05, %v4662_v8 }
 0x96e   : > { %8911 = vrsqrt.f32 %v4663_v3  ;;  %vm4670_vm0 = vweird.f32 %v4663_v3 }
 0x974   : > { %v8912_v49 = vpop.eup %8911 }
 0x975   : > { %v4665_v50 = vmul.f32 %v8912_v49, %v4663_v3  ;;  %vm4671_vm15 = vweird.f32 %v8912_v49 }
 0x976   : > { %vm4672_vm1 = vmor %vm4670_vm0, %vm4671_vm15 }
 0x977   : > { %v4666_v53 = vmul.f32 %v8912_v49, %v4665_v50 }
 0x979   : > { %v4667_v61 = vmul.f32 0.5, %v4666_v53 }
 0x97a   : > { %v4850_v62 = vpop.f32.mrf.mxu2 }
 0x97b   : > { %v4668_v12 = vsub.f32 1.5, %v4667_v61  ;;  %v4851_v63 = vadd.f32 %v4850_v62, %v4827_v54 }
 0x97d   : > { %v4669_v26 = vmul.f32 %v8912_v49, %v4668_v12  ;;  %4858 = vrot.lane.b32.xlu0 %v4851_v63, %s9349_s26 }
 0x97f   : > { %v4673_v21 = vsel %vm4672_vm1, %v8912_v49, %v4669_v26 }
 0x980   : > { %v4674_v22 = vmul.f32 %v4673_v21, %v10465_v47  ;;  %v4675_v9 = vmul.f32 %v4673_v21, %v10467_v14  ;;  %v4676_v57 = vmul.f32 %v4673_v21, %v10469_v15  ;;  %v4677_v29 = vmul.f32 %v4673_v21, %v10471_v16 }
 0x981   : > { %v4678_v60 = vmul.f32 %v4673_v21, %v10477_v20  ;;  %v4679_v7 = vmul.f32 %v4673_v21, %v10481_v24  ;;  %v4680_v31 = vmul.f32 %v4673_v21, %v10485_v58  ;;  %v4681_v32 = vmul.f32 %v4673_v21, %v10489_v30 }
 0x982   : > { %v4699_v33 = vmul.f32 %v4683_v45, %v4674_v22  ;;  %v4700_v1 = vmul.f32 %v4684_v10, %v4675_v9  ;;  %v4701_v34 = vmul.f32 %v4685_v46, %v4676_v57  ;;  %v4702_v5 = vmul.f32 %v4686_v2, %v4677_v29 }
 0x983   : > { %v4703_v48 = vmul.f32 %v4687_v0, %v4678_v60  ;;  %v4704_v47 = vmul.f32 %v4688_v19, %v4679_v7  ;;  %v4705_v11 = vmul.f32 %v4689_v25, %v4680_v31  ;;  %v4706_v14 = vmul.f32 %v4690_v28, %v4681_v32 }
 0x984   : > { %v4724_v37 = vadd.f32 %v4708_v6, %v4699_v33  ;;  %v4725_v15 = vadd.f32 %v4709_v27, %v4700_v1  ;;  %v4726_v13 = vadd.f32 %v4710_v35, %v4701_v34  ;;  %v4727_v16 = vadd.f32 %v4711_v36, %v4702_v5 }
 0x985   : > { %v4728_v41 = vadd.f32 %v4712_v17, %v4703_v48  ;;  %v4729_v20 = vadd.f32 %v4713_v18, %v4704_v47  ;;  %v4730_v38 = vadd.f32 %v4714_v43, %v4705_v11  ;;  %v4731_v24 = vadd.f32 %v4715_v59, %v4706_v14 }
 0x986   : > { %v4732_v8 = vmax.f32 %v4724_v37, 0.0  ;;  %v4733_v58 = vmax.f32 %v4725_v15, 0.0  ;;  %v4734_v3 = vmax.f32 %v4726_v13, 0.0  ;;  %v4735_v30 = vmax.f32 %v4727_v16, 0.0 }
 0x987   : > { %v4736_v39 = vmax.f32 %v4728_v41, 0.0  ;;  %v4737_v4 = vmax.f32 %v4729_v20, 0.0  ;;  %v4738_v40 = vmax.f32 %v4730_v38, 0.0  ;;  %v4739_v42 = vmax.f32 %v4731_v24, 0.0 }
 0x988   : > { %v4740_v44 = vpack.c.bf16 %v4733_v58, %v4732_v8  ;;  %v4741_v49 = vpack.c.bf16 %v4735_v30, %v4734_v3 }
 0x989   : > { %v4742_v50 = vpack.c.bf16 %v4737_v4, %v4736_v39  ;;  %v4743_v51 = vpack.c.bf16 %v4739_v42, %v4738_v40 }
 0x98a   : > { %4744 = vst [vmem:[#allocation3] sm:$0xff] %v4740_v44 }
 0x98b   : > { %4745 = vst [vmem:[#allocation3 + $0x18] sm:$0xff] %v4741_v49 }
 0x98c   : > { %4746 = vst [vmem:[#allocation3 + $0x10] sm:$0xff] %v4742_v50 }
 0x98d   : > { %4747 = vst [vmem:[#allocation3 + $0x8] sm:$0xff] %v4743_v51 }
 0x9ef   : > { %v4859_v53 = vpop.permute.xlu0 %4858 }
 0x9f0   : > { %v4862_v54 = vsel %vm4829_vm14, %v4861_v52, %v4859_v53 }
 0x9f1   : > { %v4864_v55 = vsel %vm4863_vm2, %v4862_v54, 0.0 }
 0x9f2   : > { %4865 = vst [vmem:[%s10935_s4] sm:$0xff] %v4864_v55 }
 0x9f3 PF: > { %p7701_p0 = scmp.lt.s32.totalorder %s9484_s2, 3 }
 0x9f5   : > { %4869 = sbr.rel (%p7701_p0) target bundleno = 2827 (0xb0b), region = 148 }
 0x9fa   : > { %v7760_v23 = vld [vmem:[%s9716_s24 + $0x70] sm:$0xf]  ;;  %v8618_v61 = vld [vmem:[%s9716_s24 + $0x74] sm:$0xf0]  ;;  %v7752_v25 = vld [vmem:[%s9716_s24 + $0x60] sm:$0xf] }
 0x9fb   : > { %v7824_v45 = vld [vmem:[%s9716_s24 + $0xf0] sm:$0xf]  ;;  %v7761_v10 = vor.u32 %v8618_v61, %v7760_v23  ;;  %v8634_v62 = vld [vmem:[%s9716_s24 + $0xf4] sm:$0xf0]  ;;  %v8616_v6 = vld [vmem:[%s9716_s24 + $0x64] sm:$0xf0] }
 0x9fc   : > { %v7888_v46 = vld [vmem:[%s9716_s24 + $0x170] sm:$0xf]  ;;  %v8650_v12 = vld [vmem:[%s9716_s24 + $0x174] sm:$0xf0]  ;;  %v7825_v63 = vor.u32 %v8634_v62, %v7824_v45  ;;  %v7816_v26 = vld [vmem:[%s9716_s24 + $0xe0] sm:$0xf]  ;;  %v7753_v35 = vor.u32 %v8616_v6, %v7752_v25 }
 0x9fd   : > { %v7889_v2 = vor.u32 %v8650_v12, %v7888_v46  ;;  %v7952_v0 = vld [vmem:[%s9716_s24 + $0x1f0] sm:$0xf]  ;;  %v8666_v19 = vld [vmem:[%s9716_s24 + $0x1f4] sm:$0xf0]  ;;  %5676 = vmatpush.bf16.msra.mxu0 %v7761_v10  ;;  %v8632_v27 = vld [vmem:[%s9716_s24 + $0xe4] sm:$0xf0] }
 0x9fe   : > { %v7953_v28 = vor.u32 %v8666_v19, %v7952_v0  ;;  %5689 = vmatpush.bf16.msra.mxu1 %v7825_v63  ;;  %v7817_v36 = vor.u32 %v8632_v27, %v7816_v26  ;;  %v7880_v17 = vld [vmem:[%s9716_s24 + $0x160] sm:$0xf]  ;;  %v8648_v18 = vld [vmem:[%s9716_s24 + $0x164] sm:$0xf0]  ;;  %v7744_v22 = vld [vmem:[%s9716_s24 + $0x50] sm:$0xf] }
 0x9ff   : > { %5702 = vmatpush.bf16.msra.mxu2 %v7889_v2  ;;  %v7944_v43 = vld [vmem:[%s9716_s24 + $0x1e0] sm:$0xf]  ;;  %v7881_v59 = vor.u32 %v8648_v18, %v7880_v17  ;;  %v8664_v21 = vld [vmem:[%s9716_s24 + $0x1e4] sm:$0xf0]  ;;  %v8614_v9 = vld [vmem:[%s9716_s24 + $0x54] sm:$0xf0] }
 0xa00   : > { %5715 = vmatpush.bf16.msra.mxu3 %v7953_v28  ;;  %v7945_v57 = vor.u32 %v8664_v21, %v7944_v43  ;;  %v7808_v29 = vld [vmem:[%s9716_s24 + $0xd0] sm:$0xf]  ;;  %v8630_v60 = vld [vmem:[%s9716_s24 + $0xd4] sm:$0xf0]  ;;  %v7745_v31 = vor.u32 %v8614_v9, %v7744_v22  ;;  %v7736_v48 = vld [vmem:[%s9716_s24 + $0x40] sm:$0xf] }
 0xa01   : > { %v7872_v7 = vld [vmem:[%s9716_s24 + $0x150] sm:$0xf]  ;;  %5677 = vmatpush.bf16.msra.mxu0 %v7753_v35  ;;  %v8646_v32 = vld [vmem:[%s9716_s24 + $0x154] sm:$0xf0]  ;;  %v7809_v34 = vor.u32 %v8630_v60, %v7808_v29  ;;  %v8612_v47 = vld [vmem:[%s9716_s24 + $0x44] sm:$0xf0] }
 0xa02   : > { %v7936_v33 = vld [vmem:[%s9716_s24 + $0x1d0] sm:$0xf]  ;;  %v8662_v1 = vld [vmem:[%s9716_s24 + $0x1d4] sm:$0xf0]  ;;  %5690 = vmatpush.bf16.msra.mxu1 %v7817_v36  ;;  %v7873_v5 = vor.u32 %v8646_v32, %v7872_v7  ;;  %v7800_v11 = vld [vmem:[%s9716_s24 + $0xc0] sm:$0xf]  ;;  %v7737_v20 = vor.u32 %v8612_v47, %v7736_v48 }
 0xa03   : > { %5703 = vmatpush.bf16.msra.mxu2 %v7881_v59  ;;  %v7937_v14 = vor.u32 %v8662_v1, %v7936_v33  ;;  %v8628_v37 = vld [vmem:[%s9716_s24 + $0xc4] sm:$0xf0]  ;;  %v7864_v15 = vld [vmem:[%s9716_s24 + $0x140] sm:$0xf]  ;;  %v7728_v8 = vld [vmem:[%s9716_s24 + $0x30] sm:$0xf] }
 0xa04   : > { %5716 = vmatpush.bf16.msra.mxu3 %v7945_v57  ;;  %v8644_v13 = vld [vmem:[%s9716_s24 + $0x144] sm:$0xf0]  ;;  %v7928_v16 = vld [vmem:[%s9716_s24 + $0x1c0] sm:$0xf]  ;;  %v7801_v38 = vor.u32 %v8628_v37, %v7800_v11  ;;  %v8610_v58 = vld [vmem:[%s9716_s24 + $0x34] sm:$0xf0] }
 0xa05   : > { %v8660_v41 = vld [vmem:[%s9716_s24 + $0x1c4] sm:$0xf0]  ;;  %5678 = vmatpush.bf16.msra.mxu0 %v7745_v31  ;;  %v7865_v24 = vor.u32 %v8644_v13, %v7864_v15  ;;  %v7792_v3 = vld [vmem:[%s9716_s24 + $0xb0] sm:$0xf]  ;;  %v8626_v39 = vld [vmem:[%s9716_s24 + $0xb4] sm:$0xf0]  ;;  %v7729_v49 = vor.u32 %v8610_v58, %v7728_v8 }
 0xa06   : > { %5691 = vmatpush.bf16.msra.mxu1 %v7809_v34  ;;  %v7929_v30 = vor.u32 %v8660_v41, %v7928_v16  ;;  %v7856_v4 = vld [vmem:[%s9716_s24 + $0x130] sm:$0xf]  ;;  %v8642_v40 = vld [vmem:[%s9716_s24 + $0x134] sm:$0xf0]  ;;  %v7793_v50 = vor.u32 %v8626_v39, %v7792_v3  ;;  %v7720_v56 = vld [vmem:[%s9716_s24 + $0x20] sm:$0xf] }
 0xa07   : > { %5704 = vmatpush.bf16.msra.mxu2 %v7873_v5  ;;  %v7920_v42 = vld [vmem:[%s9716_s24 + $0x1b0] sm:$0xf]  ;;  %v8658_v44 = vld [vmem:[%s9716_s24 + $0x1b4] sm:$0xf0]  ;;  %v7857_v51 = vor.u32 %v8642_v40, %v7856_v4  ;;  %v8608_v52 = vld [vmem:[%s9716_s24 + $0x24] sm:$0xf0] }
 0xa08   : > { %5717 = vmatpush.bf16.msra.mxu3 %v7937_v14  ;;  %v7784_v53 = vld [vmem:[%s9716_s24 + $0xa0] sm:$0xf]  ;;  %v7921_v54 = vor.u32 %v8658_v44, %v7920_v42  ;;  %v8624_v55 = vld [vmem:[%s9716_s24 + $0xa4] sm:$0xf0]  ;;  %v7721_v62 = vor.u32 %v8608_v52, %v7720_v56  ;;  %v7712_v63 = vld [vmem:[%s9716_s24 + $0x10] sm:$0xf] }
 0xa09   : > { %5679 = vmatpush.bf16.msra.mxu0 %v7737_v20  ;;  %v7848_v23 = vld [vmem:[%s9716_s24 + $0x120] sm:$0xf]  ;;  %v8640_v61 = vld [vmem:[%s9716_s24 + $0x124] sm:$0xf0]  ;;  %v7785_v46 = vor.u32 %v8624_v55, %v7784_v53  ;;  %v8606_v2 = vld [vmem:[%s9716_s24 + $0x14] sm:$0xf0] }
 0xa0a   : > { %5692 = vmatpush.bf16.msra.mxu1 %v7801_v38  ;;  %v7912_v45 = vld [vmem:[%s9716_s24 + $0x1a0] sm:$0xf]  ;;  %v8656_v10 = vld [vmem:[%s9716_s24 + $0x1a4] sm:$0xf0]  ;;  %v7849_v12 = vor.u32 %v8640_v61, %v7848_v23  ;;  %v7776_v0 = vld [vmem:[%s9716_s24 + $0x90] sm:$0xf]  ;;  %v7713_v35 = vor.u32 %v8606_v2, %v7712_v63 }
 0xa0b   : > { %5705 = vmatpush.bf16.msra.mxu2 %v7865_v24  ;;  %v7913_v19 = vor.u32 %v8656_v10, %v7912_v45  ;;  %v8622_v25 = vld [vmem:[%s9716_s24 + $0x94] sm:$0xf0]  ;;  %v7840_v28 = vld [vmem:[%s9716_s24 + $0x110] sm:$0xf]  ;;  %v7704_v36 = vld [vmem:[%s9716_s24] sm:$0xf] }
 0xa0c   : > { %5718 = vmatpush.bf16.msra.mxu3 %v7929_v30  ;;  %v8638_v6 = vld [vmem:[%s9716_s24 + $0x114] sm:$0xf0]  ;;  %v7904_v26 = vld [vmem:[%s9716_s24 + $0x190] sm:$0xf]  ;;  %v8604_v17 = vld [vmem:[%s9716_s24 + $0x4] sm:$0xf0]  ;;  %v7777_v18 = vor.u32 %v8622_v25, %v7776_v0 }
 0xa0d   : > { %5680 = vmatpush.bf16.msra.mxu0 %v7729_v49  ;;  %v8654_v27 = vld [vmem:[%s9716_s24 + $0x194] sm:$0xf0]  ;;  %v7841_v43 = vor.u32 %v8638_v6, %v7840_v28  ;;  %v7768_v59 = vld [vmem:[%s9716_s24 + $0x80] sm:$0xf]  ;;  %v8620_v21 = vld [vmem:[%s9716_s24 + $0x84] sm:$0xf0]  ;;  %v7705_v33 = vor.u32 %v8604_v17, %v7704_v36 }
 0xa0e   : > { %5693 = vmatpush.bf16.msra.mxu1 %v7793_v50  ;;  %v7832_v22 = vld [vmem:[%s9716_s24 + $0x100] sm:$0xf]  ;;  %v7905_v9 = vor.u32 %v8654_v27, %v7904_v26  ;;  %v8636_v57 = vld [vmem:[%s9716_s24 + $0x104] sm:$0xf0]  ;;  %v8016_v7 = vld [vmem:[%s9716_s24 + $0x270] sm:$0xf]  ;;  %v7769_v48 = vor.u32 %v8620_v21, %v7768_v59 }
 0xa0f   : > { %5706 = vmatpush.bf16.msra.mxu2 %v7857_v51  ;;  %v7896_v29 = vld [vmem:[%s9716_s24 + $0x180] sm:$0xf]  ;;  %v8652_v60 = vld [vmem:[%s9716_s24 + $0x184] sm:$0xf0]  ;;  %v8682_v31 = vld [vmem:[%s9716_s24 + $0x274] sm:$0xf0]  ;;  %v7833_v47 = vor.u32 %v8636_v57, %v7832_v22 }
 0xa10   : > { %5719 = vmatpush.bf16.msra.mxu3 %v7921_v54  ;;  %v8080_v32 = vld [vmem:[%s9716_s24 + $0x2f0] sm:$0xf]  ;;  %v8698_v1 = vld [vmem:[%s9716_s24 + $0x2f4] sm:$0xf0]  ;;  %v7897_v37 = vor.u32 %v8652_v60, %v7896_v29  ;;  %v8017_v15 = vor.u32 %v8682_v31, %v8016_v7  ;;  %v8008_v41 = vld [vmem:[%s9716_s24 + $0x260] sm:$0xf] }
 0xa11   : > { %5681 = vmatpush.bf16.msra.mxu0 %v7721_v62  ;;  %v8144_v34 = vld [vmem:[%s9716_s24 + $0x370] sm:$0xf]  ;;  %v8714_v5 = vld [vmem:[%s9716_s24 + $0x374] sm:$0xf0]  ;;  %v8081_v13 = vor.u32 %v8698_v1, %v8080_v32  ;;  %v8680_v20 = vld [vmem:[%s9716_s24 + $0x264] sm:$0xf0] }
 0xa12   : > { %5694 = vmatpush.bf16.msra.mxu1 %v7785_v46  ;;  %v8208_v11 = vld [vmem:[%s9716_s24 + $0x3f0] sm:$0xf]  ;;  %v8730_v14 = vld [vmem:[%s9716_s24 + $0x3f4] sm:$0xf0]  ;;  %v8145_v16 = vor.u32 %v8714_v5, %v8144_v34  ;;  %v8072_v38 = vld [vmem:[%s9716_s24 + $0x2e0] sm:$0xf]  ;;  %v8009_v4 = vor.u32 %v8680_v20, %v8008_v41 }
 0xa13   : > { %5707 = vmatpush.bf16.msra.mxu2 %v7849_v12  ;;  %v8209_v24 = vor.u32 %v8730_v14, %v8208_v11  ;;  %v8696_v8 = vld [vmem:[%s9716_s24 + $0x2e4] sm:$0xf0]  ;;  %v8136_v58 = vld [vmem:[%s9716_s24 + $0x360] sm:$0xf]  ;;  %v8000_v40 = vld [vmem:[%s9716_s24 + $0x250] sm:$0xf] }
 0xa14   : > { %5720 = vmatpush.bf16.msra.mxu3 %v7913_v19  ;;  %v8712_v3 = vld [vmem:[%s9716_s24 + $0x364] sm:$0xf0]  ;;  %v8200_v30 = vld [vmem:[%s9716_s24 + $0x3e0] sm:$0xf]  ;;  %v8073_v42 = vor.u32 %v8696_v8, %v8072_v38  ;;  %v8678_v49 = vld [vmem:[%s9716_s24 + $0x254] sm:$0xf0] }
 0xa15   : > { %5682 = vmatpush.bf16.msra.mxu0 %v7713_v35  ;;  %v8728_v39 = vld [vmem:[%s9716_s24 + $0x3e4] sm:$0xf0]  ;;  %v8137_v44 = vor.u32 %v8712_v3, %v8136_v58  ;;  %v8064_v50 = vld [vmem:[%s9716_s24 + $0x2d0] sm:$0xf]  ;;  %v8694_v52 = vld [vmem:[%s9716_s24 + $0x2d4] sm:$0xf0]  ;;  %v8001_v10 = vor.u32 %v8678_v49, %v8000_v40 }
 0xa16   : > { %5695 = vmatpush.bf16.msra.mxu1 %v7777_v18  ;;  %v4871_v51 = vld [vmem:[#allocation3 + $0x18] sm:$0xff]  ;;  %v8201_v56 = vor.u32 %v8728_v39, %v8200_v30  ;;  %v8710_v54 = vld [vmem:[%s9716_s24 + $0x354] sm:$0xf0]  ;;  %v8065_v63 = vor.u32 %v8694_v52, %v8064_v50  ;;  %v7992_v0 = vld [vmem:[%s9716_s24 + $0x240] sm:$0xf] }
 0xa17   : > { %5708 = vmatpush.bf16.msra.mxu2 %v7841_v43  ;;  %v8128_v53 = vld [vmem:[%s9716_s24 + $0x350] sm:$0xf]  ;;  %v5014_v55 = vunpack.c.l.b16 %v4871_v51  ;;  %v5015_v23 = vunpack.c.h.b16 %v4871_v51  ;;  %v8726_v45 = vld [vmem:[%s9716_s24 + $0x3d4] sm:$0xf0]  ;;  %v8676_v19 = vld [vmem:[%s9716_s24 + $0x244] sm:$0xf0] }
 0xa18   : > { %5721 = vmatpush.bf16.msra.mxu3 %v7905_v9  ;;  %v8192_v61 = vld [vmem:[%s9716_s24 + $0x3d0] sm:$0xf]  ;;  %v4870_v46 = vld [vmem:[#allocation3] sm:$0xff]  ;;  %v8129_v2 = vor.u32 %v8710_v54, %v8128_v53  ;;  %v8056_v25 = vld [vmem:[%s9716_s24 + $0x2c0] sm:$0xf]  ;;  %v7993_v21 = vor.u32 %v8676_v19, %v7992_v0 }
 0xa19   : > { %5683 = vmatpush.bf16.msra.mxu0 %v7705_v33  ;;  %v10603_v62 = vpack.c.b16 %v5014_v55, %v5014_v55  ;;  %v10605_v12 = vpack.c.b16 %v5015_v23, %v5015_v23  ;;  %v5012_v28 = vunpack.c.l.b16 %v4870_v46  ;;  %v5013_v6 = vunpack.c.h.b16 %v4870_v46  ;;  %v8692_v27 = vld [vmem:[%s9716_s24 + $0x2c4] sm:$0xf0]  ;;  %v8120_v35 = vld [vmem:[%s9716_s24 + $0x340] sm:$0xf]  ;;  %v7984_v57 = vld [vmem:[%s9716_s24 + $0x230] sm:$0xf] }
 0xa1a   : > { %5696 = vmatpush.bf16.msra.mxu1 %v7769_v48  ;;  %v8193_v26 = vor.u32 %v8726_v45, %v8192_v61  ;;  %v8708_v36 = vld [vmem:[%s9716_s24 + $0x344] sm:$0xf0]  ;;  %v8184_v17 = vld [vmem:[%s9716_s24 + $0x3c0] sm:$0xf]  ;;  %v8057_v22 = vor.u32 %v8692_v27, %v8056_v25  ;;  %v8674_v29 = vld [vmem:[%s9716_s24 + $0x234] sm:$0xf0] }
 0xa1b   : > { %5709 = vmatpush.bf16.msra.mxu2 %v7833_v47  ;;  %v8724_v18 = vld [vmem:[%s9716_s24 + $0x3c4] sm:$0xf0]  ;;  %v10616_v43 = vpack.c.b16 %v5012_v28, %v5012_v28  ;;  %v10619_v59 = vpack.c.b16 %v5013_v6, %v5013_v6  ;;  %v8121_v9 = vor.u32 %v8708_v36, %v8120_v35  ;;  %v8048_v60 = vld [vmem:[%s9716_s24 + $0x2b0] sm:$0xf]  ;;  %v8690_v31 = vld [vmem:[%s9716_s24 + $0x2b4] sm:$0xf0]  ;;  %v7985_v5 = vor.u32 %v8674_v29, %v7984_v57 }
 0xa1c   : > { %5722 = vmatpush.bf16.msra.mxu3 %v7897_v37  ;;  %v8185_v7 = vor.u32 %v8724_v18, %v8184_v17  ;;  %v8112_v32 = vld [vmem:[%s9716_s24 + $0x330] sm:$0xf]  ;;  %v8706_v33 = vld [vmem:[%s9716_s24 + $0x334] sm:$0xf0]  ;;  %v8049_v48 = vor.u32 %v8690_v31, %v8048_v60  ;;  %v7976_v11 = vld [vmem:[%s9716_s24 + $0x220] sm:$0xf] }
 0xa1d   : > { %5728 = vmatpush.bf16.msrb.mxu0 %v8017_v15  ;;  %v8176_v1 = vld [vmem:[%s9716_s24 + $0x3b0] sm:$0xf]  ;;  %v8722_v34 = vld [vmem:[%s9716_s24 + $0x3b4] sm:$0xf0]  ;;  %5697 = vmatmul.bf16.vlgmr.msra.gmra.mxu1 %v10619_v59  ;;  %v8113_v47 = vor.u32 %v8706_v33, %v8112_v32  ;;  %v8672_v14 = vld [vmem:[%s9716_s24 + $0x224] sm:$0xf0] }
 0xa1e   : > { %5741 = vmatpush.bf16.msrb.mxu1 %v8081_v13  ;;  %5710 = vmatmul.bf16.vlgmr.msra.gmra.mxu2 %v10603_v62  ;;  %v8040_v37 = vld [vmem:[%s9716_s24 + $0x2a0] sm:$0xf]  ;;  %v8177_v15 = vor.u32 %v8722_v34, %v8176_v1  ;;  %v8688_v13 = vld [vmem:[%s9716_s24 + $0x2a4] sm:$0xf0]  ;;  %v7968_v3 = vld [vmem:[%s9716_s24 + $0x210] sm:$0xf] }
 0xa1f   : > { %5754 = vmatpush.bf16.msrb.mxu2 %v8145_v16  ;;  %5723 = vmatmul.bf16.vlgmr.msra.gmra.mxu3 %v10605_v12  ;;  %v8104_v16 = vld [vmem:[%s9716_s24 + $0x320] sm:$0xf]  ;;  %v8704_v41 = vld [vmem:[%s9716_s24 + $0x324] sm:$0xf0]  ;;  %v8041_v8 = vor.u32 %v8688_v13, %v8040_v37  ;;  %v8670_v30 = vld [vmem:[%s9716_s24 + $0x214] sm:$0xf0] }
 0xa20   : > { %5767 = vmatpush.bf16.msrb.mxu3 %v8209_v24  ;;  %5684 = vmatmul.bf16.vlgmr.msra.gmra.mxu0 %v10616_v43  ;;  %v8168_v20 = vld [vmem:[%s9716_s24 + $0x3a0] sm:$0xf]  ;;  %v8720_v38 = vld [vmem:[%s9716_s24 + $0x3a4] sm:$0xf0]  ;;  %v7977_v24 = vor.u32 %v8672_v14, %v7976_v11  ;;  %v8105_v58 = vor.u32 %v8704_v41, %v8104_v16  ;;  %v8032_v39 = vld [vmem:[%s9716_s24 + $0x290] sm:$0xf] }
 0xa21   : > { %5729 = vmatpush.bf16.msrb.mxu0 %v8009_v4  ;;  %v8169_v4 = vor.u32 %v8720_v38, %v8168_v20  ;;  %v8686_v40 = vld [vmem:[%s9716_s24 + $0x294] sm:$0xf0]  ;;  %v8160_v49 = vld [vmem:[%s9716_s24 + $0x390] sm:$0xf]  ;;  %v7960_v51 = vld [vmem:[%s9716_s24 + $0x200] sm:$0xf] }
 0xa22   : > { %5742 = vmatpush.bf16.msrb.mxu1 %v8073_v42  ;;  %v8096_v42 = vld [vmem:[%s9716_s24 + $0x310] sm:$0xf]  ;;  %v8718_v50 = vld [vmem:[%s9716_s24 + $0x394] sm:$0xf0]  ;;  %v8668_v52 = vld [vmem:[%s9716_s24 + $0x204] sm:$0xf0]  ;;  %v8033_v55 = vor.u32 %v8686_v40, %v8032_v39 }
 0xa23   : > { %5755 = vmatpush.bf16.msrb.mxu2 %v8137_v44  ;;  %v8702_v44 = vld [vmem:[%s9716_s24 + $0x314] sm:$0xf0]  ;;  %v8024_v53 = vld [vmem:[%s9716_s24 + $0x280] sm:$0xf]  ;;  %v8684_v54 = vld [vmem:[%s9716_s24 + $0x284] sm:$0xf0]  ;;  %v8161_v46 = vor.u32 %v8718_v50, %v8160_v49  ;;  %v7961_v6 = vor.u32 %v8668_v52, %v7960_v51 }
 0xa24   : > { %5768 = vmatpush.bf16.msrb.mxu3 %v8201_v56  ;;  %v7969_v56 = vor.u32 %v8670_v30, %v7968_v3  ;;  %v8097_v23 = vor.u32 %v8702_v44, %v8096_v42  ;;  %v8088_v61 = vld [vmem:[%s9716_s24 + $0x300] sm:$0xf]  ;;  %v8700_v45 = vld [vmem:[%s9716_s24 + $0x304] sm:$0xf0]  ;;  %v8617_v19 = vld [vmem:[%s9716_s24 + $0x74] sm:$0xf]  ;;  %v8025_v17 = vor.u32 %v8684_v54, %v8024_v53 }
 0xa25   : > { %5730 = vmatpush.bf16.msrb.mxu0 %v8001_v10  ;;  %v4873_v10 = vld [vmem:[#allocation3 + $0x8] sm:$0xff]  ;;  %v4872_v0 = vld [vmem:[#allocation3 + $0x10] sm:$0xff]  ;;  %v7762_v25 = vld [vmem:[%s9716_s24 + $0x78] sm:$0xf0]  ;;  %v8089_v18 = vor.u32 %v8700_v45, %v8088_v61 }
 0xa26   : > { %5743 = vmatpush.bf16.msrb.mxu1 %v8065_v63  ;;  %v8152_v63 = vld [vmem:[%s9716_s24 + $0x380] sm:$0xf]  ;;  %v8633_v28 = vld [vmem:[%s9716_s24 + $0xf4] sm:$0xf]  ;;  %v7890_v35 = vld [vmem:[%s9716_s24 + $0x178] sm:$0xf0]  ;;  %v5018_v36 = vunpack.c.l.b16 %v4873_v10  ;;  %v5019_v57 = vunpack.c.h.b16 %v4873_v10  ;;  %v7765_v60 = vor.u32 %v8617_v19, %v7762_v25 }
 0xa27   : > { %5756 = vmatpush.bf16.msrb.mxu2 %v8129_v2  ;;  %v8716_v2 = vld [vmem:[%s9716_s24 + $0x384] sm:$0xf0]  ;;  %v8649_v27 = vld [vmem:[%s9716_s24 + $0x174] sm:$0xf]  ;;  %v8615_v33 = vld [vmem:[%s9716_s24 + $0x64] sm:$0xf] }
 0xa28   : > { %5769 = vmatpush.bf16.msrb.mxu3 %v8193_v26  ;;  %v7826_v26 = vld [vmem:[%s9716_s24 + $0xf8] sm:$0xf0]  ;;  %v8153_v29 = vor.u32 %v8716_v2, %v8152_v63  ;;  %v7893_v32 = vor.u32 %v8649_v27, %v7890_v35  ;;  %v7754_v1 = vld [vmem:[%s9716_s24 + $0x68] sm:$0xf0]  ;;  %v8631_v34 = vld [vmem:[%s9716_s24 + $0xe4] sm:$0xf]  ;;  %v10669_v14 = vpack.c.b16 %v5018_v36, %v5018_v36  ;;  %v10675_v16 = vpack.c.b16 %v5019_v57, %v5019_v57 }
 0xa29   : > { %5731 = vmatpush.bf16.msrb.mxu0 %v7993_v21  ;;  %v8665_v21 = vld [vmem:[%s9716_s24 + $0x1f4] sm:$0xf]  ;;  %v7829_v31 = vor.u32 %v8633_v28, %v7826_v26  ;;  %v7882_v11 = vld [vmem:[%s9716_s24 + $0x168] sm:$0xf0]  ;;  %v8663_v37 = vld [vmem:[%s9716_s24 + $0x1e4] sm:$0xf]  ;;  %v7757_v41 = vor.u32 %v8615_v33, %v7754_v1 }
 0xa2a   : > { %5744 = vmatpush.bf16.msrb.mxu1 %v8057_v22  ;;  %v7954_v22 = vld [vmem:[%s9716_s24 + $0x1f8] sm:$0xf0]  ;;  %v8629_v3 = vld [vmem:[%s9716_s24 + $0xd4] sm:$0xf]  ;;  %v7738_v52 = vld [vmem:[%s9716_s24 + $0x48] sm:$0xf0] }
 0xa2b   : > { %5757 = vmatpush.bf16.msrb.mxu2 %v8121_v9  ;;  %v5016_v9 = vunpack.c.l.b16 %v4872_v0  ;;  %v7810_v39 = vld [vmem:[%s9716_s24 + $0xd8] sm:$0xf0]  ;;  %v8661_v42 = vld [vmem:[%s9716_s24 + $0x1d4] sm:$0xf]  ;;  %v8627_v53 = vld [vmem:[%s9716_s24 + $0xc4] sm:$0xf] }
 0xa2c   : > { %5770 = vmatpush.bf16.msrb.mxu3 %v8185_v7  ;;  %v5017_v7 = vunpack.c.h.b16 %v4872_v0  ;;  %v7874_v40 = vld [vmem:[%s9716_s24 + $0x158] sm:$0xf0]  ;;  %v7813_v50 = vor.u32 %v8629_v3, %v7810_v39  ;;  %v7866_v61 = vld [vmem:[%s9716_s24 + $0x148] sm:$0xf0]  ;;  %v8659_v45 = vld [vmem:[%s9716_s24 + $0x1c4] sm:$0xf] }
 0xa2d   : > { %5732 = vmatpush.bf16.msrb.mxu0 %v7985_v5  ;;  %v7957_v5 = vor.u32 %v8665_v21, %v7954_v22  ;;  %v10673_v13 = vpack.c.b16 %v5016_v9, %v5016_v9  ;;  %v7938_v44 = vld [vmem:[%s9716_s24 + $0x1d8] sm:$0xf0]  ;;  %v7930_v10 = vld [vmem:[%s9716_s24 + $0x1c8] sm:$0xf0]  ;;  %v8609_v0 = vld [vmem:[%s9716_s24 + $0x34] sm:$0xf] }
 0xa2e   : > { %5745 = vmatpush.bf16.msrb.mxu1 %v8049_v48  ;;  %v7818_v48 = vld [vmem:[%s9716_s24 + $0xe8] sm:$0xf0]  ;;  %v10677_v20 = vpack.c.b16 %v5017_v7, %v5017_v7  ;;  %v7941_v54 = vor.u32 %v8661_v42, %v7938_v44  ;;  %v7730_v19 = vld [vmem:[%s9716_s24 + $0x38] sm:$0xf0]  ;;  %v8625_v25 = vld [vmem:[%s9716_s24 + $0xb4] sm:$0xf]  ;;  %v7933_v28 = vor.u32 %v8659_v45, %v7930_v10 }
 0xa2f   : > { %5758 = vmatpush.bf16.msrb.mxu2 %v8113_v47  ;;  %v8647_v47 = vld [vmem:[%s9716_s24 + $0x164] sm:$0xf]  ;;  %v7821_v38 = vor.u32 %v8631_v34, %v7818_v48  ;;  %v8641_v26 = vld [vmem:[%s9716_s24 + $0x134] sm:$0xf]  ;;  %v7858_v27 = vld [vmem:[%s9716_s24 + $0x138] sm:$0xf0] }
 0xa30   : > { %5771 = vmatpush.bf16.msrb.mxu3 %v8177_v15  ;;  %v7946_v15 = vld [vmem:[%s9716_s24 + $0x1e8] sm:$0xf0]  ;;  %v8657_v35 = vld [vmem:[%s9716_s24 + $0x1b4] sm:$0xf]  ;;  %v7922_v36 = vld [vmem:[%s9716_s24 + $0x1b8] sm:$0xf0]  ;;  %v7861_v21 = vor.u32 %v8641_v26, %v7858_v27 }
 0xa31   : > { %5733 = vmatpush.bf16.msrb.mxu0 %v7977_v24  ;;  %v7885_v24 = vor.u32 %v8647_v47, %v7882_v11  ;;  %v7949_v30 = vor.u32 %v8663_v37, %v7946_v15  ;;  %v8607_v22 = vld [vmem:[%s9716_s24 + $0x24] sm:$0xf]  ;;  %v7722_v9 = vld [vmem:[%s9716_s24 + $0x28] sm:$0xf0]  ;;  %v8605_v48 = vld [vmem:[%s9716_s24 + $0x14] sm:$0xf] }
 0xa32   : > { %5746 = vmatpush.bf16.msrb.mxu1 %v8041_v8  ;;  %v8613_v8 = vld [vmem:[%s9716_s24 + $0x54] sm:$0xf]  ;;  %v8623_v57 = vld [vmem:[%s9716_s24 + $0xa4] sm:$0xf]  ;;  %v7914_v33 = vld [vmem:[%s9716_s24 + $0x1a8] sm:$0xf0]  ;;  %v7725_v1 = vor.u32 %v8607_v22, %v7722_v9 }
 0xa33   : > { %5759 = vmatpush.bf16.msrb.mxu2 %v8105_v58  ;;  %v7746_v58 = vld [vmem:[%s9716_s24 + $0x58] sm:$0xf0]  ;;  %v8639_v7 = vld [vmem:[%s9716_s24 + $0x124] sm:$0xf]  ;;  %v8621_v11 = vld [vmem:[%s9716_s24 + $0x94] sm:$0xf] }
 0xa34   : > { %5772 = vmatpush.bf16.msrb.mxu3 %v8169_v4  ;;  %v8645_v4 = vld [vmem:[%s9716_s24 + $0x154] sm:$0xf]  ;;  %v7749_v49 = vor.u32 %v8613_v8, %v7746_v58  ;;  %v7714_v47 = vld [vmem:[%s9716_s24 + $0x18] sm:$0xf0]  ;;  %v8603_v3 = vld [vmem:[%s9716_s24 + $0x4] sm:$0xf] }
 0xa35   : > { %5734 = vmatpush.bf16.msrb.mxu0 %v7969_v56  ;;  %v7877_v51 = vor.u32 %v8645_v4, %v7874_v40  ;;  %v8611_v56 = vld [vmem:[%s9716_s24 + $0x44] sm:$0xf]  ;;  %v7778_v15 = vld [vmem:[%s9716_s24 + $0x98] sm:$0xf0]  ;;  %v7717_v58 = vor.u32 %v8605_v48, %v7714_v47  ;;  %v7770_v42 = vld [vmem:[%s9716_s24 + $0x88] sm:$0xf0] }
 0xa36   : > { %5747 = vmatpush.bf16.msrb.mxu1 %v8033_v55  ;;  %v7802_v55 = vld [vmem:[%s9716_s24 + $0xc8] sm:$0xf0]  ;;  %v7906_v8 = vld [vmem:[%s9716_s24 + $0x198] sm:$0xf0]  ;;  %v7781_v39 = vor.u32 %v8621_v11, %v7778_v15  ;;  %v8619_v40 = vld [vmem:[%s9716_s24 + $0x84] sm:$0xf] }
 0xa37   : > { %5760 = vmatpush.bf16.msrb.mxu2 %v8097_v23  ;;  %v8643_v23 = vld [vmem:[%s9716_s24 + $0x144] sm:$0xf]  ;;  %v7805_v63 = vor.u32 %v8627_v53, %v7802_v55  ;;  %v8018_v53 = vld [vmem:[%s9716_s24 + $0x278] sm:$0xf0]  ;;  %v7773_v10 = vor.u32 %v8619_v40, %v7770_v42  ;;  %v8010_v26 = vld [vmem:[%s9716_s24 + $0x268] sm:$0xf0] }
 0xa38   : > { %5773 = vmatpush.bf16.msrb.mxu3 %v8161_v46  ;;  %v7741_v46 = vor.u32 %v8611_v56, %v7738_v52  ;;  %v7869_v2 = vor.u32 %v8643_v23, %v7866_v61  ;;  %v8635_v44 = vld [vmem:[%s9716_s24 + $0x104] sm:$0xf]  ;;  %v7898_v56 = vld [vmem:[%s9716_s24 + $0x188] sm:$0xf0]  ;;  %v8681_v52 = vld [vmem:[%s9716_s24 + $0x274] sm:$0xf] }
 0xa39   : > { %5735 = vmatpush.bf16.msrb.mxu0 %v7961_v6  ;;  %v7794_v6 = vld [vmem:[%s9716_s24 + $0xb8] sm:$0xf0]  ;;  %v8713_v61 = vld [vmem:[%s9716_s24 + $0x374] sm:$0xf]  ;;  %v8695_v27 = vld [vmem:[%s9716_s24 + $0x2e4] sm:$0xf] }
 0xa3a   : > { %5748 = vmatpush.bf16.msrb.mxu1 %v8025_v17  ;;  %v7733_v17 = vor.u32 %v8609_v0, %v7730_v19  ;;  %v8082_v23 = vld [vmem:[%s9716_s24 + $0x2f8] sm:$0xf0]  ;;  %v8021_v19 = vor.u32 %v8681_v52, %v8018_v53  ;;  %v8202_v22 = vld [vmem:[%s9716_s24 + $0x3e8] sm:$0xf0]  ;;  %v8691_v15 = vld [vmem:[%s9716_s24 + $0x2c4] sm:$0xf] }
 0xa3b   : > { %5761 = vmatpush.bf16.msrb.mxu2 %v8089_v18  ;;  %v7797_v18 = vor.u32 %v8625_v25, %v7794_v6  ;;  %v8146_v45 = vld [vmem:[%s9716_s24 + $0x378] sm:$0xf0]  ;;  %v8679_v6 = vld [vmem:[%s9716_s24 + $0x264] sm:$0xf]  ;;  %v8689_v40 = vld [vmem:[%s9716_s24 + $0x2b4] sm:$0xf] }
 0xa3c   : > { %5774 = vmatpush.bf16.msrb.mxu3 %v8153_v29  ;;  %5736 = vmatmul.bf16.vlgmr.msrb.gmra.mxu0 %v10673_v13  ;;  %v7925_v29 = vor.u32 %v8657_v35, %v7922_v36  ;;  %v8074_v36 = vld [vmem:[%s9716_s24 + $0x2e8] sm:$0xf0]  ;;  %v8013_v9 = vor.u32 %v8679_v6, %v8010_v26  ;;  %v8194_v48 = vld [vmem:[%s9716_s24 + $0x3d8] sm:$0xf0]  ;;  %v8669_v6 = vld [vmem:[%s9716_s24 + $0x214] sm:$0xf] }
 0xa3d   : > { %5780 = vmatpush.bf16.msra.mxu0 %v7765_v60  ;;  %5749 = vmatmul.bf16.vlgmr.msrb.gmra.mxu1 %v10677_v20  ;;  %v7786_v60 = vld [vmem:[%s9716_s24 + $0xa8] sm:$0xf0]  ;;  %v7970_v26 = vld [vmem:[%s9716_s24 + $0x218] sm:$0xf0] }
 0xa3e   : > { %5793 = vmatpush.bf16.msra.mxu1 %v7829_v31  ;;  %5762 = vmatmul.bf16.vlgmr.msrb.gmra.mxu2 %v10669_v14  ;;  %v7850_v31 = vld [vmem:[%s9716_s24 + $0x128] sm:$0xf0]  ;;  %v7789_v34 = vor.u32 %v8623_v57, %v7786_v60  ;;  %v8077_v57 = vor.u32 %v8695_v27, %v8074_v36  ;;  %v8677_v60 = vld [vmem:[%s9716_s24 + $0x254] sm:$0xf]  ;;  %v8034_v36 = vld [vmem:[%s9716_s24 + $0x298] sm:$0xf0] }
 0xa3f   : > { %5806 = vmatpush.bf16.msra.mxu2 %v7893_v32  ;;  %5775 = vmatmul.bf16.vlgmr.msrb.gmra.mxu3 %v10675_v16  ;;  %v8655_v32 = vld [vmem:[%s9716_s24 + $0x1a4] sm:$0xf]  ;;  %v8685_v27 = vld [vmem:[%s9716_s24 + $0x294] sm:$0xf] }
 0xa40   : > { %5819 = vmatpush.bf16.msra.mxu3 %v7957_v5  ;;  %v7853_v5 = vor.u32 %v8639_v7, %v7850_v31  ;;  %v7917_v37 = vor.u32 %v8655_v32, %v7914_v33  ;;  %v8002_v7 = vld [vmem:[%s9716_s24 + $0x258] sm:$0xf0]  ;;  %v8693_v31 = vld [vmem:[%s9716_s24 + $0x2d4] sm:$0xf] }
 0xa41   : > { %5781 = vmatpush.bf16.msra.mxu0 %v7757_v41  ;;  %v8637_v41 = vld [vmem:[%s9716_s24 + $0x114] sm:$0xf]  ;;  %v8066_v33 = vld [vmem:[%s9716_s24 + $0x2d8] sm:$0xf0]  ;;  %v8005_v47 = vor.u32 %v8677_v60, %v8002_v7  ;;  %v8667_v60 = vld [vmem:[%s9716_s24 + $0x204] sm:$0xf] }
 0xa42   : > { %5794 = vmatpush.bf16.msra.mxu1 %v7821_v38  ;;  %v7842_v38 = vld [vmem:[%s9716_s24 + $0x118] sm:$0xf0]  ;;  %v7962_v7 = vld [vmem:[%s9716_s24 + $0x208] sm:$0xf0] }
 0xa43   : > { %5807 = vmatpush.bf16.msra.mxu2 %v7885_v24  ;;  %v8653_v24 = vld [vmem:[%s9716_s24 + $0x194] sm:$0xf]  ;;  %v7845_v4 = vor.u32 %v8637_v41, %v7842_v38  ;;  %v8058_v38 = vld [vmem:[%s9716_s24 + $0x2c8] sm:$0xf0] }
 0xa44   : > { %5820 = vmatpush.bf16.msra.mxu3 %v7949_v30  ;;  %v7706_v30 = vld [vmem:[%s9716_s24 + $0x8] sm:$0xf0] }
 0xa45   : > { %5782 = vmatpush.bf16.msra.mxu0 %v7749_v49  ;;  %v7909_v49 = vor.u32 %v8653_v24, %v7906_v8  ;;  %v7709_v55 = vor.u32 %v8603_v3, %v7706_v30  ;;  %v8122_v24 = vld [vmem:[%s9716_s24 + $0x348] sm:$0xf0]  ;;  %v8723_v8 = vld [vmem:[%s9716_s24 + $0x3c4] sm:$0xf]  ;;  %v8061_v3 = vor.u32 %v8691_v15, %v8058_v38  ;;  %v5002_v15 = vld [vmem:[%s781_s9] sm:$0x3] }
 0xa46   : > { %5795 = vmatpush.bf16.msra.mxu1 %v7813_v50  ;;  %v7834_v50 = vld [vmem:[%s9716_s24 + $0x108] sm:$0xf0] }
 0xa47   : > { %5808 = vmatpush.bf16.msra.mxu2 %v7877_v51  ;;  %v8651_v51 = vld [vmem:[%s9716_s24 + $0x184] sm:$0xf] }
 0xa48   : > { %5821 = vmatpush.bf16.msra.mxu3 %v7941_v54  ;;  %v8697_v54 = vld [vmem:[%s9716_s24 + $0x2f4] sm:$0xf]  ;;  %v7901_v0 = vor.u32 %v8651_v51, %v7898_v56  ;;  %v8178_v56 = vld [vmem:[%s9716_s24 + $0x3b8] sm:$0xf0] }
 0xa49   : > { %5783 = vmatpush.bf16.msra.mxu0 %v7741_v46  ;;  %v7837_v46 = vor.u32 %v8635_v44, %v7834_v50  ;;  %v8085_v25 = vor.u32 %v8697_v54, %v8082_v23  ;;  %v8050_v44 = vld [vmem:[%s9716_s24 + $0x2b8] sm:$0xf0]  ;;  %v8721_v51 = vld [vmem:[%s9716_s24 + $0x3b4] sm:$0xf]  ;;  %v7978_v23 = vld [vmem:[%s9716_s24 + $0x228] sm:$0xf0] }
 0xa4a   : > { %5796 = vmatpush.bf16.msra.mxu1 %v7805_v63  ;;  %v8729_v63 = vld [vmem:[%s9716_s24 + $0x3f4] sm:$0xf]  ;;  %v8114_v50 = vld [vmem:[%s9716_s24 + $0x338] sm:$0xf0]  ;;  %v8053_v53 = vor.u32 %v8689_v40, %v8050_v44 }
 0xa4b   : > { %5809 = vmatpush.bf16.msra.mxu2 %v7869_v2  ;;  %v8210_v2 = vld [vmem:[%s9716_s24 + $0x3f8] sm:$0xf0] }
 0xa4c   : > { %5822 = vmatpush.bf16.msra.mxu3 %v7933_v28  ;;  %v8149_v28 = vor.u32 %v8713_v61, %v8146_v45  ;;  %v8213_v35 = vor.u32 %v8729_v63, %v8210_v2  ;;  %v8687_v61 = vld [vmem:[%s9716_s24 + $0x2a4] sm:$0xf]  ;;  %v8181_v45 = vor.u32 %v8721_v51, %v8178_v56  ;;  %v8106_v63 = vld [vmem:[%s9716_s24 + $0x328] sm:$0xf0] }
 0xa4d   : > { %5784 = vmatpush.bf16.msra.mxu0 %v7733_v17  ;;  %v8711_v17 = vld [vmem:[%s9716_s24 + $0x364] sm:$0xf] }
 0xa4e   : > { %5797 = vmatpush.bf16.msra.mxu1 %v7797_v18  ;;  %v8138_v18 = vld [vmem:[%s9716_s24 + $0x368] sm:$0xf0]  ;;  %v8719_v2 = vld [vmem:[%s9716_s24 + $0x3a4] sm:$0xf] }
 0xa4f   : > { %5810 = vmatpush.bf16.msra.mxu2 %v7861_v21  ;;  %v8727_v21 = vld [vmem:[%s9716_s24 + $0x3e4] sm:$0xf] }
 0xa50   : > { %5823 = vmatpush.bf16.msra.mxu3 %v7925_v29  ;;  %v8141_v29 = vor.u32 %v8711_v17, %v8138_v18  ;;  %v8205_v32 = vor.u32 %v8727_v21, %v8202_v22  ;;  %v8701_v17 = vld [vmem:[%s9716_s24 + $0x314] sm:$0xf]  ;;  %v8098_v18 = vld [vmem:[%s9716_s24 + $0x318] sm:$0xf0] }
 0xa51   : > { %5785 = vmatpush.bf16.msra.mxu0 %v7725_v1  ;;  %v8709_v1 = vld [vmem:[%s9716_s24 + $0x354] sm:$0xf]  ;;  %v8162_v22 = vld [vmem:[%s9716_s24 + $0x398] sm:$0xf0] }
 0xa52   : > { %5798 = vmatpush.bf16.msra.mxu1 %v7789_v34  ;;  %v8130_v34 = vld [vmem:[%s9716_s24 + $0x358] sm:$0xf0]  ;;  %v8717_v21 = vld [vmem:[%s9716_s24 + $0x394] sm:$0xf] }
 0xa53   : > { %5811 = vmatpush.bf16.msra.mxu2 %v7853_v5  ;;  %v8725_v5 = vld [vmem:[%s9716_s24 + $0x3d4] sm:$0xf]  ;;  %v8133_v11 = vor.u32 %v8709_v1, %v8130_v34  ;;  %v8699_v1 = vld [vmem:[%s9716_s24 + $0x304] sm:$0xf]  ;;  %v8090_v34 = vld [vmem:[%s9716_s24 + $0x308] sm:$0xf0] }
 0xa54   : > { %5824 = vmatpush.bf16.msra.mxu3 %v7917_v37  ;;  %v8675_v37 = vld [vmem:[%s9716_s24 + $0x244] sm:$0xf]  ;;  %v8197_v41 = vor.u32 %v8725_v5, %v8194_v48  ;;  %v8154_v48 = vld [vmem:[%s9716_s24 + $0x388] sm:$0xf0] }
 0xa55   : > { %5786 = vmatpush.bf16.msra.mxu0 %v7717_v58  ;;  %v8715_v5 = vld [vmem:[%s9716_s24 + $0x384] sm:$0xf] }
 0xa56   : > { %5799 = vmatpush.bf16.msra.mxu1 %v7781_v39  ;;  %v8673_v39 = vld [vmem:[%s9716_s24 + $0x234] sm:$0xf] }
 0xa57   : > { %5812 = vmatpush.bf16.msra.mxu2 %v7845_v4  ;;  %v7986_v4 = vld [vmem:[%s9716_s24 + $0x238] sm:$0xf0] }
 0xa58   : > { %5825 = vmatpush.bf16.msra.mxu3 %v7909_v49  ;;  %v8705_v49 = vld [vmem:[%s9716_s24 + $0x334] sm:$0xf]  ;;  %v7989_v52 = vor.u32 %v8673_v39, %v7986_v4 }
 0xa59   : > { %5787 = vmatpush.bf16.msra.mxu0 %v7709_v55  ;;  %v8117_v54 = vor.u32 %v8705_v49, %v8114_v50  ;;  %v8671_v55 = vld [vmem:[%s9716_s24 + $0x224] sm:$0xf] }
 0xa5a   : > { %5800 = vmatpush.bf16.msra.mxu1 %v7773_v10  ;;  %v8042_v10 = vld [vmem:[%s9716_s24 + $0x2a8] sm:$0xf0] }
 0xa5b   : > { %5813 = vmatpush.bf16.msra.mxu2 %v7837_v46  ;;  %v8703_v46 = vld [vmem:[%s9716_s24 + $0x324] sm:$0xf] }
 0xa5c   : > { %5826 = vmatpush.bf16.msra.mxu3 %v7901_v0  ;;  %5788 = vmatmul.bf16.vlgmr.msra.gmra.mxu0 %v10616_v43  ;;  %v8707_v43 = vld [vmem:[%s9716_s24 + $0x344] sm:$0xf]  ;;  %v8170_v0 = vld [vmem:[%s9716_s24 + $0x3a8] sm:$0xf0] }
 0xa5d   : > { %5832 = vmatpush.bf16.msrb.mxu0 %v8021_v19  ;;  %5801 = vmatmul.bf16.vlgmr.msra.gmra.mxu1 %v10619_v59  ;;  %v8186_v59 = vld [vmem:[%s9716_s24 + $0x3c8] sm:$0xf0]  ;;  %v8125_v30 = vor.u32 %v8707_v43, %v8122_v24  ;;  %v7981_v19 = vor.u32 %v8671_v55, %v7978_v23  ;;  %v5004_v24 = vperm.slane %v5002_v15, 0 }
 0xa5e   : > { %5845 = vmatpush.bf16.msrb.mxu1 %v8085_v25  ;;  %5814 = vmatmul.bf16.vlgmr.msra.gmra.mxu2 %v10603_v62  ;;  %v8069_v62 = vor.u32 %v8693_v31, %v8066_v33  ;;  %v8189_v42 = vor.u32 %v8723_v8, %v8186_v59  ;;  %v8045_v25 = vor.u32 %v8687_v61, %v8042_v10  ;;  %v8683_v31 = vld [vmem:[%s9716_s24 + $0x284] sm:$0xf]  ;;  %v8026_v33 = vld [vmem:[%s9716_s24 + $0x288] sm:$0xf0] }
 0xa5f   : > { %5858 = vmatpush.bf16.msrb.mxu2 %v8149_v28  ;;  %5827 = vmatmul.bf16.vlgmr.msra.gmra.mxu3 %v10605_v12  ;;  %v7994_v12 = vld [vmem:[%s9716_s24 + $0x248] sm:$0xf0]  ;;  %v8109_v28 = vor.u32 %v8703_v46, %v8106_v63  ;;  %v5005_v46 = vperm.slane %v5002_v15, 1 }
 0xa60   : > { %5871 = vmatpush.bf16.msrb.mxu3 %v8213_v35  ;;  %v7997_v58 = vor.u32 %v8675_v37, %v7994_v12  ;;  %v8173_v35 = vor.u32 %v8719_v2, %v8170_v0  ;;  %v8157_v37 = vor.u32 %v8715_v5, %v8154_v48 }
 0xa61   : > { %5833 = vmatpush.bf16.msrb.mxu0 %v8013_v9  ;;  %v7973_v9 = vor.u32 %v8669_v6, %v7970_v26 }
 0xa62   : > { %5846 = vmatpush.bf16.msrb.mxu1 %v8077_v57  ;;  %v8037_v57 = vor.u32 %v8685_v27, %v8034_v36 }
 0xa63   : > { %5859 = vmatpush.bf16.msrb.mxu2 %v8141_v29  ;;  %v8101_v29 = vor.u32 %v8701_v17, %v8098_v18 }
 0xa64   : > { %5872 = vmatpush.bf16.msrb.mxu3 %v8205_v32  ;;  %v8165_v32 = vor.u32 %v8717_v21, %v8162_v22 }
 0xa65   : > { %5834 = vmatpush.bf16.msrb.mxu0 %v8005_v47  ;;  %v7965_v47 = vor.u32 %v8667_v60, %v7962_v7 }
 0xa66   : > { %5847 = vmatpush.bf16.msrb.mxu1 %v8069_v62  ;;  %v8029_v62 = vor.u32 %v8683_v31, %v8026_v33 }
 0xa67   : > { %5860 = vmatpush.bf16.msrb.mxu2 %v8133_v11  ;;  %v8093_v11 = vor.u32 %v8699_v1, %v8090_v34 }
 0xa68   : > { %5873 = vmatpush.bf16.msrb.mxu3 %v8197_v41 }
 0xa69   : > { %5835 = vmatpush.bf16.msrb.mxu0 %v7997_v58 }
 0xa6a   : > { %5848 = vmatpush.bf16.msrb.mxu1 %v8061_v3 }
 0xa6b   : > { %5861 = vmatpush.bf16.msrb.mxu2 %v8125_v30 }
 0xa6c   : > { %5874 = vmatpush.bf16.msrb.mxu3 %v8189_v42 }
 0xa6d   : > { %5836 = vmatpush.bf16.msrb.mxu0 %v7989_v52 }
 0xa6e   : > { %5849 = vmatpush.bf16.msrb.mxu1 %v8053_v53 }
 0xa6f   : > { %5862 = vmatpush.bf16.msrb.mxu2 %v8117_v54 }
 0xa70   : > { %5875 = vmatpush.bf16.msrb.mxu3 %v8181_v45 }
 0xa71   : > { %5837 = vmatpush.bf16.msrb.mxu0 %v7981_v19 }
 0xa72   : > { %5850 = vmatpush.bf16.msrb.mxu1 %v8045_v25 }
 0xa73   : > { %5863 = vmatpush.bf16.msrb.mxu2 %v8109_v28 }
 0xa74   : > { %5876 = vmatpush.bf16.msrb.mxu3 %v8173_v35 }
 0xa75   : > { %5838 = vmatpush.bf16.msrb.mxu0 %v7973_v9 }
 0xa76   : > { %5851 = vmatpush.bf16.msrb.mxu1 %v8037_v57 }
 0xa77   : > { %5864 = vmatpush.bf16.msrb.mxu2 %v8101_v29 }
 0xa78   : > { %5877 = vmatpush.bf16.msrb.mxu3 %v8165_v32 }
 0xa79   : > { %5839 = vmatpush.bf16.msrb.mxu0 %v7965_v47 }
 0xa7a   : > { %5852 = vmatpush.bf16.msrb.mxu1 %v8029_v62 }
 0xa7b   : > { %5865 = vmatpush.bf16.msrb.mxu2 %v8093_v11 }
 0xa7c   : > { %5878 = vmatpush.bf16.msrb.mxu3 %v8157_v37  ;;  %5840 = vmatmul.bf16.vlgmr.msrb.gmra.mxu0 %v10673_v13 }
 0xa7d   : > { %5853 = vmatmul.bf16.vlgmr.msrb.gmra.mxu1 %v10677_v20 }
 0xa7e   : > { %5866 = vmatmul.bf16.vlgmr.msrb.gmra.mxu2 %v10669_v14 }
 0xa7f   : > { %5879 = vmatmul.bf16.vlgmr.msrb.gmra.mxu3 %v10675_v16 }
 0xa9a   : > { %v5698_v41 = vpop.f32.mrf.mxu1 }
 0xa9d   : > { %v5685_v12 = vpop.f32.mrf.mxu0 }
 0xa9e   : > { %v5686_v8 = vadd.f32 %v5685_v12, %v5004_v24 }
 0xaa0   : > { %v5699_v13 = vadd.f32 %v5698_v41, %v5686_v8 }
 0xaa1   : > { %v5711_v38 = vpop.f32.mrf.mxu2 }
 0xaa2   : > { %v5724_v43 = vpop.f32.mrf.mxu3  ;;  %v5700_v58 = vpop.f32.mrf.mxu1  ;;  %v5712_v39 = vadd.f32 %v5711_v38, %v5699_v13 }
 0xaa4   : > { %v5725_v20 = vadd.f32 %v5724_v43, %v5712_v39 }
 0xaa5   : > { %v5687_v59 = vpop.f32.mrf.mxu0 }
 0xaa9   : > { %v5713_v3 = vpop.f32.mrf.mxu2 }
 0xaaa   : > { %v5726_v30 = vpop.f32.mrf.mxu3 }
 0xab9   : > { %v5737_v4 = vpop.f32.mrf.mxu0 }
 0xaba   : > { %v5738_v14 = vadd.f32 %v5737_v4, %v5725_v20  ;;  %v5750_v40 = vpop.f32.mrf.mxu1 }
 0xabc   : > { %v5751_v16 = vadd.f32 %v5750_v40, %v5738_v14 }
 0xac1   : > { %v5763_v42 = vpop.f32.mrf.mxu2  ;;  %v5739_v51 = vpop.f32.mrf.mxu0 }
 0xac2   : > { %v5764_v44 = vadd.f32 %v5763_v42, %v5751_v16  ;;  %v5776_v49 = vpop.f32.mrf.mxu3  ;;  %v5752_v56 = vpop.f32.mrf.mxu1 }
 0xac4   : > { %v5777_v50 = vadd.f32 %v5776_v49, %v5764_v44 }
 0xac6   : > { %5884 = vst [vmem:[%s9735_s1] sm:$0xff] %v5777_v50 }
 0xac9   : > { %v5765_v52 = vpop.f32.mrf.mxu2 }
 0xaca   : > { %v5778_v53 = vpop.f32.mrf.mxu3 }
 0xad9   : > { %v5789_v54 = vpop.f32.mrf.mxu0 }
 0xada   : > { %v5802_v55 = vpop.f32.mrf.mxu1  ;;  %v5790_v0 = vadd.f32 %v5789_v54, %v5005_v46 }
 0xadc   : > { %v5803_v19 = vadd.f32 %v5802_v55, %v5790_v0 }
 0xae1   : > { %v5815_v23 = vpop.f32.mrf.mxu2  ;;  %v5791_v45 = vpop.f32.mrf.mxu0 }
 0xae2   : > { %v5828_v61 = vpop.f32.mrf.mxu3  ;;  %v5804_v10 = vpop.f32.mrf.mxu1  ;;  %v5816_v25 = vadd.f32 %v5815_v23, %v5803_v19 }
 0xae4   : > { %v5829_v28 = vadd.f32 %v5828_v61, %v5816_v25 }
 0xae9   : > { %v5817_v63 = vpop.f32.mrf.mxu2 }
 0xaea   : > { %v5830_v2 = vpop.f32.mrf.mxu3 }
 0xaf9   : > { %v5841_v6 = vpop.f32.mrf.mxu0 }
 0xafa   : > { %v5854_v26 = vpop.f32.mrf.mxu1  ;;  %v5842_v27 = vadd.f32 %v5841_v6, %v5829_v28 }
 0xafc   : > { %v5855_v35 = vadd.f32 %v5854_v26, %v5842_v27 }
 0xb01   : > { %v5867_v36 = vpop.f32.mrf.mxu2  ;;  %v5843_v21 = vpop.f32.mrf.mxu0 }
 0xb02   : > { %v5868_v17 = vadd.f32 %v5867_v36, %v5855_v35  ;;  %v5880_v18 = vpop.f32.mrf.mxu3  ;;  %v5856_v22 = vpop.f32.mrf.mxu1 }
 0xb04   : > { %v5881_v9 = vadd.f32 %v5880_v18, %v5868_v17 }
 0xb06   : > { %5885 = vst [vmem:[%s9735_s1 + $0x8] sm:$0xff] %v5881_v9 }
 0xb09   : > { %v5869_v57 = vpop.f32.mrf.mxu2 }
 0xb0a   : > { %v5882_v29 = vpop.f32.mrf.mxu3 }
 0xb0b PF: > { %s10936_s2 = sld [smem:[#allocation28_spill]]  ;;  %s10937_s24 = smov %s9607_s27 }
 0xb0c   : > { %p36_p3 = scmp.ge.s32.totalorder %s9607_s27, 8   ;;  %s10939_s28 = smov %s9310_s29 }
 0xb0d   : > { %s10940_s29 = smov %s9642_s7  ;;  %s10941_s30 = smov %s9318_s0 }
 0xb0e   : > { %s10942_s0 = smov %s9322_s19  ;;  %s10943_s19 = smov %s9632_s23 }
 0xb0f   : > { %s10944_s1 = smov %s10937_s24  ;;  %38 = sbr.rel (!%p36_p3) target bundleno = 30 (0x1e), region = 228 }
 0xb11   : > { %s10938_s27 = smov %s10936_s2 }
 0xb14   :  { %5923 = vsyncpa [#allocation5], 1 }
 0xb15   :  { %5925 = vsyncpa [#allocation5 + $0x1], 1 }
 0xb16   :  { %5926 = vsyncpa [#allocation7], 1 }
 0xb17   :  { %5928 = vsyncpa [#allocation7 + $0x1], 1 }
 0xb18   :  { %5929 = vsyncpa [#allocation10], 1 }
 0xb19   :  { %5930 = vsyncpa [#allocation13], 1 }
 0xb1a   :  { %5931 = vsyncpa [#allocation16], 1 }
 0xb1b   :  { %5932 = vsyncpa [#allocation19], 1 }
 0xb1c   :  { %5934 = vsyncpa [#allocation19 + $0x1], 1 }

</bundles_post_ra>
